<compile_context>
chip_gen: v6e
topology: v6e:2x2x1
jax: 0.10.0
libtpu: 0.0.40
codegen_flags: <defaults>
</compile_context>

<pallas_src>
import functools
import math

import jax
import jax.numpy as jnp
from jax import lax
from jax.experimental import pallas as pl
from jax.experimental.pallas import tpu as pltpu


# ----------------------------------------------------------------------------
# Fused kernel: one grid step == block_b batch elements, everything in VMEM.
# ----------------------------------------------------------------------------
def _sa_layer_kernel(x_ref, mask_ref, wqkv_ref, bqkv_ref, wo_ref, bo_ref,
                     out_ref, attn_ref, *,
                     num_heads, dim_per_head, block_b, seq_len, d_model):
    H, dh = num_heads, dim_per_head
    Bt, S, D = block_b, seq_len, d_model
    N = Bt * S

    x = x_ref[...]                              # (Bt, S, D) f32
    x2d = x.reshape(N, D)                       # merge batch/seq rows (S % 8 == 0 -> clean)
    xb = x2d.astype(jnp.bfloat16)               # bf16 MXU operand

    # Fused QKV projection: one wide (N, D) @ (D, 3D) bf16 matmul, f32 accumulation.
    qkv = jnp.dot(xb, wqkv_ref[...], preferred_element_type=jnp.float32)
    qkv = (qkv + bqkv_ref[...]).reshape(Bt, S, 3 * D)

    scale = 1.0 / math.sqrt(dh)
    q = (qkv[..., 0 * D:1 * D] * scale).astype(jnp.bfloat16)   # (Bt, S, D)
    k = qkv[..., 1 * D:2 * D].astype(jnp.bfloat16)
    v = qkv[..., 2 * D:3 * D].astype(jnp.bfloat16)

    # Hoisted mask broadcast: built once, reused by every head and both `where`s.
    key_mask = jnp.broadcast_to(mask_ref[...] > 0, (Bt, S, S))  # True == masked key

    attn_heads = []
    ctx_heads = []
    for h in range(H):                          # static unroll over heads (small, static)
        lo = h * dh
        q_h = q[..., lo:lo + dh]                # (Bt, S, dh) bf16 (32-aligned lane slice)
        k_h = k[..., lo:lo + dh]
        v_h = v[..., lo:lo + dh]

        # Scores batched over the block_b axis: (Bt,S,dh) x (Bt,S,dh) -> (Bt,S,S), f32 acc.
        s = jnp.einsum('bqd,bkd->bqk', q_h, k_h,
                       preferred_element_type=jnp.float32)
        s = jnp.where(key_mask, -1e18, s)

        # Numerically stable softmax along keys; reciprocal goes to the EUP slot.
        m = jnp.max(s, axis=-1, keepdims=True)
        e = jnp.exp(s - m)
        attn = e * pl.reciprocal(jnp.sum(e, axis=-1, keepdims=True), approx=True)
        attn_heads.append(attn)

        # dropout == identity at inference; masked_fill(mask, 0) kept for parity.
        p = jnp.where(key_mask, 0.0, attn).astype(jnp.bfloat16)
        ctx_heads.append(jnp.einsum('bqk,bkd->bqd', p, v_h,
                                    preferred_element_type=jnp.float32))

    # Single batched store of all attention maps for this block.
    attn_ref[...] = jnp.stack(attn_heads, axis=1).astype(attn_ref.dtype)

    # Output projection + bias + residual (residual added in f32).
    context = jnp.concatenate(ctx_heads, axis=-1).reshape(N, D)
    out = jnp.dot(context.astype(jnp.bfloat16), wo_ref[...],
                  preferred_element_type=jnp.float32) + bo_ref[...]
    out = out + x2d
    out_ref[...] = out.reshape(Bt, S, D).astype(out_ref.dtype)


# ----------------------------------------------------------------------------
# Parameter packing: fused QKV weight, bf16 weights (biases stay f32).
# ----------------------------------------------------------------------------
def pack_sa_layer_params(params):
    wq, bq, wk, bk, wv, bv, wo, bo = params
    wqkv = jnp.concatenate([wq, wk, wv], axis=1).astype(jnp.bfloat16)   # (D, 3D)
    bqkv = jnp.concatenate([bq, bk, bv], axis=1)                        # (1, 3D) f32
    return wqkv, bqkv, wo.astype(jnp.bfloat16), bo


# ----------------------------------------------------------------------------
# Wrapper
# ----------------------------------------------------------------------------
def sa_layer_forward(inputs, mask, packed_params, num_heads, block_b=None):
    """Fused SALayerXL forward (with_pe=False, eval mode).

    inputs: (B, S, D) float32
    mask:   (B, 1, S) int32, 1 == masked (padded) key position
    packed_params: output of pack_sa_layer_params
    Returns (out (B,S,D) f32, attns (B,H,S,S) f32).
    """
    B, S, D = inputs.shape
    assert D % num_heads == 0
    dh = D // num_heads
    wqkv, bqkv, wo, bo = packed_params

    # Rows per grid step: target ~256 projection rows (fills the 256-wide MXU on v6e/v7x,
    # >=128 already saturates v5e) while keeping >= 2 grid steps when possible so the
    # "parallel" batch axis can actually split across v7x's two TensorCores.
    if block_b is None:
        block_b = max(1, min(B, 256 // max(S, 1)))
        if B // block_b < 2:
            block_b = max(1, B // 2)
        while B % block_b:
            block_b -= 1
    assert B % block_b == 0
    grid = (B // block_b,)

    flops = B * (8 * S * D * D + 4 * S * S * D)
    bytes_accessed = (4 * (2 * B * S * D + B * S + 4 * D + B * num_heads * S * S)
                      + 2 * (3 * D * D + D * D))

    kernel = functools.partial(
        _sa_layer_kernel, num_heads=num_heads, dim_per_head=dh,
        block_b=block_b, seq_len=S, d_model=D)

    out, attns = pl.pallas_call(
        kernel,
        out_shape=(
            jax.ShapeDtypeStruct((B, S, D), inputs.dtype),
            jax.ShapeDtypeStruct((B, num_heads, S, S), jnp.float32),
        ),
        grid=grid,
        in_specs=[
            pl.BlockSpec((block_b, S, D), lambda b: (b, 0, 0)),    # inputs
            pl.BlockSpec((block_b, 1, S), lambda b: (b, 0, 0)),    # mask
            pl.BlockSpec((D, 3 * D), lambda b: (0, 0)),            # fused QKV weight (bf16)
            pl.BlockSpec((1, 3 * D), lambda b: (0, 0)),            # fused QKV bias   (f32)
            pl.BlockSpec((D, D), lambda b: (0, 0)),                # Wo (bf16)
            pl.BlockSpec((1, D), lambda b: (0, 0)),                # bo (f32)
        ],
        out_specs=[
            pl.BlockSpec((block_b, S, D), lambda b: (b, 0, 0)),
            pl.BlockSpec((block_b, num_heads, S, S), lambda b: (b, 0, 0, 0)),
        ],
        compiler_params=pltpu.CompilerParams(
            dimension_semantics=("parallel",),       # shard batch blocks over TCs
            vmem_limit_bytes=32 * 1024 * 1024,
        ),
        cost_estimate=pl.CostEstimate(
            flops=flops,
            transcendentals=B * num_heads * S * S,
            bytes_accessed=bytes_accessed,
        ),
    )(inputs, mask, wqkv, bqkv, wo, bo)
    return out, attns


# ----------------------------------------------------------------------------
# Parameter construction (uniform +/- 1/sqrt(fan_in), biases stored as (1, D))
# ----------------------------------------------------------------------------
def init_sa_layer_params(key, d_model):
    keys = jax.random.split(key, 8)
    bound = 1.0 / math.sqrt(d_model)

    def lin(kw, kb):
        w = jax.random.uniform(kw, (d_model, d_model), jnp.float32, -bound, bound)
        b = jax.random.uniform(kb, (1, d_model), jnp.float32, -bound, bound)
        return w, b

    wq, bq = lin(keys[0], keys[1])
    wk, bk = lin(keys[2], keys[3])
    wv, bv = lin(keys[4], keys[5])
    wo, bo = lin(keys[6], keys[7])
    return (wq, bq, wk, bk, wv, bv, wo, bo)


# ----------------------------------------------------------------------------
# Pure-JAX f32 reference (module semantics) for sanity checking
# ----------------------------------------------------------------------------
def sa_layer_forward_ref(inputs, mask, params, num_heads):
    wq, bq, wk, bk, wv, bv, wo, bo = params
    B, S, D = inputs.shape
    dh = D // num_heads

    def split(t):
        return t.reshape(B, S, num_heads, dh).transpose(0, 2, 1, 3)   # (B,H,S,dh)

    q = split(inputs @ wq + bq) / math.sqrt(dh)
    k = split(inputs @ wk + bk)
    v = split(inputs @ wv + bv)

    scores = jnp.einsum('bhqd,bhkd->bhqk', q, k)
    m = mask[:, None, :, :] > 0                          # (B,1,1,S)
    scores = jnp.where(m, -1e18, scores)
    attn = jax.nn.softmax(scores, axis=-1)
    drop_attn = jnp.where(m, 0.0, attn)
    ctx = jnp.einsum('bhqk,bhkd->bhqd', drop_attn, v)
    ctx = ctx.transpose(0, 2, 1, 3).reshape(B, S, D)
    out = ctx @ wo + bo + inputs
    return out, attn


if __name__ == "__main__":
    key = jax.random.PRNGKey(0)

    # Small, module-consistent shapes; D lane-dense (multiple of 128), S a multiple of 8.
    B, S, D, H = 16, 16, 128, 4        # dim_per_head = 32; block_b heuristic -> 8, grid=(2,)

    key, kx, kp = jax.random.split(key, 3)
    x = jax.random.normal(kx, (B, S, D), jnp.float32)

    # mask (B, 1, S): 1 == padded key position (varying sequence lengths)
    lens = S - (jnp.arange(B) % 3) * 5                   # 16, 11, 6, 16, ...
    mask = (jnp.arange(S)[None, :] >= lens[:, None]).astype(jnp.int32)[:, None, :]

    params = init_sa_layer_params(kp, D)
    packed = pack_sa_layer_params(params)

    out, attns = sa_layer_forward(x, mask, packed, H)
    out = jax.block_until_ready(out)
    attns = jax.block_until_ready(attns)

    ref_out, ref_attn = sa_layer_forward_ref(x, mask, params, H)
    assert out.shape == (B, S, D) and attns.shape == (B, H, S, S)
    # bf16 MXU operands + approx reciprocal -> loosened tolerances vs the f32 reference.
    assert jnp.allclose(out, ref_out, atol=3e-2, rtol=3e-2)
    assert jnp.allclose(attns, ref_attn, atol=1e-2, rtol=1e-2)

    print("KERNEL_OK")
</pallas_src>

<mosaic_0001>
module attributes {stable_mosaic.version = 11 : i64} {
  func.func @_sa_layer_kernel(%arg0: i32, %arg1: memref<8x16x128xf32, #tpu.memory_space<vmem>>, %arg2: memref<8x1x16xi32, #tpu.memory_space<vmem>>, %arg3: memref<128x384xbf16, #tpu.memory_space<vmem>>, %arg4: memref<1x384xf32, #tpu.memory_space<vmem>>, %arg5: memref<128x128xbf16, #tpu.memory_space<vmem>>, %arg6: memref<1x128xf32, #tpu.memory_space<vmem>>, %arg7: memref<8x16x128xf32, #tpu.memory_space<vmem>>, %arg8: memref<8x4x16x16xf32, #tpu.memory_space<vmem>>) attributes {dimension_semantics = [#tpu.dimension_semantics<parallel>], iteration_bounds = array<i64: 2>, scalar_prefetch = 0 : i64, scratch_operands = 0 : i64, tpu.core_type = #tpu.core_type<tc>, window_params = [{transform_indices = @transform_0, window_bounds = array<i64: 8, 16, 128>}, {transform_indices = @transform_1, window_bounds = array<i64: 8, 1, 16>}, {pipeline_mode = #tpu.pipeline_mode<synchronous>, transform_indices = @transform_2, window_bounds = array<i64: 128, 384>}, {pipeline_mode = #tpu.pipeline_mode<synchronous>, transform_indices = @transform_3, window_bounds = array<i64: 1, 384>}, {pipeline_mode = #tpu.pipeline_mode<synchronous>, transform_indices = @transform_4, window_bounds = array<i64: 128, 128>}, {pipeline_mode = #tpu.pipeline_mode<synchronous>, transform_indices = @transform_5, window_bounds = array<i64: 1, 128>}, {transform_indices = @transform_6, window_bounds = array<i64: 8, 16, 128>}, {transform_indices = @transform_7, window_bounds = array<i64: 8, 4, 16, 16>}]} {
    %c0 = arith.constant 0 : index
    %c0_0 = arith.constant 0 : index
    %c0_1 = arith.constant 0 : index
    %0 = vector.load %arg1[%c0, %c0_0, %c0_1] : memref<8x16x128xf32, #tpu.memory_space<vmem>>, vector<8x16x128xf32>
    %1 = vector.shape_cast %0 : vector<8x16x128xf32> to vector<128x128xf32>
    %2 = arith.truncf %1 : vector<128x128xf32> to vector<128x128xbf16>
    %c0_2 = arith.constant 0 : index
    %c0_3 = arith.constant 0 : index
    %3 = vector.load %arg3[%c0_2, %c0_3] : memref<128x384xbf16, #tpu.memory_space<vmem>>, vector<128x384xbf16>
    %cst = arith.constant dense<0.000000e+00> : vector<128x384xf32>
    %4 = tpu.matmul %2, %3, %cst {dimension_numbers = #tpu.dot_dimension_numbers<[1], [0], [0], [1], [0, 0, 1, 1], [], []>} : vector<128x128xbf16>, vector<128x384xbf16>, vector<128x384xf32> -> vector<128x384xf32>
    %c0_4 = arith.constant 0 : index
    %c0_5 = arith.constant 0 : index
    %5 = vector.load %arg4[%c0_4, %c0_5] : memref<1x384xf32, #tpu.memory_space<vmem>>, vector<1x384xf32>
    %6 = vector.broadcast %5 : vector<1x384xf32> to vector<128x384xf32>
    %7 = arith.addf %4, %6 : vector<128x384xf32>
    %8 = vector.shape_cast %7 : vector<128x384xf32> to vector<8x16x384xf32>
    %9 = vector.extract_strided_slice %8 {offsets = [0, 0, 0], sizes = [8, 16, 128], strides = [1, 1, 1]} : vector<8x16x384xf32> to vector<8x16x128xf32>
    %cst_6 = arith.constant 0.176776692 : f32
    %10 = vector.broadcast %cst_6 : f32 to vector<8x16x128xf32>
    %11 = arith.mulf %9, %10 : vector<8x16x128xf32>
    %12 = arith.truncf %11 : vector<8x16x128xf32> to vector<8x16x128xbf16>
    %13 = vector.extract_strided_slice %8 {offsets = [0, 0, 128], sizes = [8, 16, 128], strides = [1, 1, 1]} : vector<8x16x384xf32> to vector<8x16x128xf32>
    %14 = arith.truncf %13 : vector<8x16x128xf32> to vector<8x16x128xbf16>
    %15 = vector.extract_strided_slice %8 {offsets = [0, 0, 256], sizes = [8, 16, 128], strides = [1, 1, 1]} : vector<8x16x384xf32> to vector<8x16x128xf32>
    %16 = arith.truncf %15 : vector<8x16x128xf32> to vector<8x16x128xbf16>
    %c0_7 = arith.constant 0 : index
    %c0_8 = arith.constant 0 : index
    %c0_9 = arith.constant 0 : index
    %17 = vector.load %arg2[%c0_7, %c0_8, %c0_9] : memref<8x1x16xi32, #tpu.memory_space<vmem>>, vector<8x1x16xi32>
    %c0_i32 = arith.constant 0 : i32
    %18 = vector.broadcast %c0_i32 : i32 to vector<8x1x16xi32>
    %19 = arith.cmpi sgt, %17, %18 : vector<8x1x16xi32>
    %20 = vector.shape_cast %19 : vector<8x1x16xi1> to vector<8x1x16xi1>
    %21 = vector.broadcast %20 : vector<8x1x16xi1> to vector<8x16x16xi1>
    %22 = vector.extract_strided_slice %12 {offsets = [0, 0, 0], sizes = [8, 16, 32], strides = [1, 1, 1]} : vector<8x16x128xbf16> to vector<8x16x32xbf16>
    %23 = vector.extract_strided_slice %14 {offsets = [0, 0, 0], sizes = [8, 16, 32], strides = [1, 1, 1]} : vector<8x16x128xbf16> to vector<8x16x32xbf16>
    %24 = vector.extract_strided_slice %16 {offsets = [0, 0, 0], sizes = [8, 16, 32], strides = [1, 1, 1]} : vector<8x16x128xbf16> to vector<8x16x32xbf16>
    "tpu.trace_start"() <{level = 10 : i32, message = "bqd,bkd->bqk"}> : () -> ()
    %cst_10 = arith.constant dense<0.000000e+00> : vector<8x16x16xf32>
    %25 = tpu.matmul %22, %23, %cst_10 {dimension_numbers = #tpu.dot_dimension_numbers<[2], [2], [1], [1], [0, 0, 0, 1, 1, 1], [0], [0]>} : vector<8x16x32xbf16>, vector<8x16x32xbf16>, vector<8x16x16xf32> -> vector<8x16x16xf32>
    %cst_11 = arith.constant -9.99999984E+17 : f32
    "tpu.trace_stop"() : () -> ()
    %26 = vector.broadcast %cst_11 : f32 to vector<8x16x16xf32>
    %27 = arith.select %21, %26, %25 : vector<8x16x16xi1>, vector<8x16x16xf32>
    %cst_12 = arith.constant dense<0xFF800000> : vector<8x16xf32>
    %28 = vector.multi_reduction <maximumf>, %27, %cst_12 [2] : vector<8x16x16xf32> to vector<8x16xf32>
    %29 = vector.shape_cast %28 : vector<8x16xf32> to vector<8x16x1xf32>
    %30 = vector.broadcast %29 : vector<8x16x1xf32> to vector<8x16x16xf32>
    %31 = arith.subf %27, %30 : vector<8x16x16xf32>
    %32 = math.exp %31 : vector<8x16x16xf32>
    %cst_13 = arith.constant dense<0.000000e+00> : vector<8x16xf32>
    %33 = vector.multi_reduction <add>, %32, %cst_13 [2] : vector<8x16x16xf32> to vector<8x16xf32>
    %34 = vector.shape_cast %33 : vector<8x16xf32> to vector<8x16x1xf32>
    %35 = tpu.reciprocal %34 {approx = true} : vector<8x16x1xf32> -> vector<8x16x1xf32>
    %36 = vector.broadcast %35 : vector<8x16x1xf32> to vector<8x16x16xf32>
    %37 = arith.mulf %32, %36 : vector<8x16x16xf32>
    %cst_14 = arith.constant 0.000000e+00 : f32
    %38 = vector.broadcast %cst_14 : f32 to vector<8x16x16xf32>
    %39 = arith.select %21, %38, %37 : vector<8x16x16xi1>, vector<8x16x16xf32>
    %40 = arith.truncf %39 : vector<8x16x16xf32> to vector<8x16x16xbf16>
    "tpu.trace_start"() <{level = 10 : i32, message = "bqk,bkd->bqd"}> : () -> ()
    %cst_15 = arith.constant dense<0.000000e+00> : vector<8x16x32xf32>
    %41 = tpu.matmul %40, %24, %cst_15 {dimension_numbers = #tpu.dot_dimension_numbers<[2], [1], [1], [2], [0, 0, 0, 1, 1, 2], [0], [0]>} : vector<8x16x16xbf16>, vector<8x16x32xbf16>, vector<8x16x32xf32> -> vector<8x16x32xf32>
    "tpu.trace_stop"() : () -> ()
    %42 = vector.extract_strided_slice %12 {offsets = [0, 0, 32], sizes = [8, 16, 32], strides = [1, 1, 1]} : vector<8x16x128xbf16> to vector<8x16x32xbf16>
    %43 = vector.extract_strided_slice %14 {offsets = [0, 0, 32], sizes = [8, 16, 32], strides = [1, 1, 1]} : vector<8x16x128xbf16> to vector<8x16x32xbf16>
    %44 = vector.extract_strided_slice %16 {offsets = [0, 0, 32], sizes = [8, 16, 32], strides = [1, 1, 1]} : vector<8x16x128xbf16> to vector<8x16x32xbf16>
    "tpu.trace_start"() <{level = 10 : i32, message = "bqd,bkd->bqk"}> : () -> ()
    %cst_16 = arith.constant dense<0.000000e+00> : vector<8x16x16xf32>
    %45 = tpu.matmul %42, %43, %cst_16 {dimension_numbers = #tpu.dot_dimension_numbers<[2], [2], [1], [1], [0, 0, 0, 1, 1, 1], [0], [0]>} : vector<8x16x32xbf16>, vector<8x16x32xbf16>, vector<8x16x16xf32> -> vector<8x16x16xf32>
    %cst_17 = arith.constant -9.99999984E+17 : f32
    "tpu.trace_stop"() : () -> ()
    %46 = vector.broadcast %cst_17 : f32 to vector<8x16x16xf32>
    %47 = arith.select %21, %46, %45 : vector<8x16x16xi1>, vector<8x16x16xf32>
    %cst_18 = arith.constant dense<0xFF800000> : vector<8x16xf32>
    %48 = vector.multi_reduction <maximumf>, %47, %cst_18 [2] : vector<8x16x16xf32> to vector<8x16xf32>
    %49 = vector.shape_cast %48 : vector<8x16xf32> to vector<8x16x1xf32>
    %50 = vector.broadcast %49 : vector<8x16x1xf32> to vector<8x16x16xf32>
    %51 = arith.subf %47, %50 : vector<8x16x16xf32>
    %52 = math.exp %51 : vector<8x16x16xf32>
    %cst_19 = arith.constant dense<0.000000e+00> : vector<8x16xf32>
    %53 = vector.multi_reduction <add>, %52, %cst_19 [2] : vector<8x16x16xf32> to vector<8x16xf32>
    %54 = vector.shape_cast %53 : vector<8x16xf32> to vector<8x16x1xf32>
    %55 = tpu.reciprocal %54 {approx = true} : vector<8x16x1xf32> -> vector<8x16x1xf32>
    %56 = vector.broadcast %55 : vector<8x16x1xf32> to vector<8x16x16xf32>
    %57 = arith.mulf %52, %56 : vector<8x16x16xf32>
    %cst_20 = arith.constant 0.000000e+00 : f32
    %58 = vector.broadcast %cst_20 : f32 to vector<8x16x16xf32>
    %59 = arith.select %21, %58, %57 : vector<8x16x16xi1>, vector<8x16x16xf32>
    %60 = arith.truncf %59 : vector<8x16x16xf32> to vector<8x16x16xbf16>
    "tpu.trace_start"() <{level = 10 : i32, message = "bqk,bkd->bqd"}> : () -> ()
    %cst_21 = arith.constant dense<0.000000e+00> : vector<8x16x32xf32>
    %61 = tpu.matmul %60, %44, %cst_21 {dimension_numbers = #tpu.dot_dimension_numbers<[2], [1], [1], [2], [0, 0, 0, 1, 1, 2], [0], [0]>} : vector<8x16x16xbf16>, vector<8x16x32xbf16>, vector<8x16x32xf32> -> vector<8x16x32xf32>
    "tpu.trace_stop"() : () -> ()
    %62 = vector.extract_strided_slice %12 {offsets = [0, 0, 64], sizes = [8, 16, 32], strides = [1, 1, 1]} : vector<8x16x128xbf16> to vector<8x16x32xbf16>
    %63 = vector.extract_strided_slice %14 {offsets = [0, 0, 64], sizes = [8, 16, 32], strides = [1, 1, 1]} : vector<8x16x128xbf16> to vector<8x16x32xbf16>
    %64 = vector.extract_strided_slice %16 {offsets = [0, 0, 64], sizes = [8, 16, 32], strides = [1, 1, 1]} : vector<8x16x128xbf16> to vector<8x16x32xbf16>
    "tpu.trace_start"() <{level = 10 : i32, message = "bqd,bkd->bqk"}> : () -> ()
    %cst_22 = arith.constant dense<0.000000e+00> : vector<8x16x16xf32>
    %65 = tpu.matmul %62, %63, %cst_22 {dimension_numbers = #tpu.dot_dimension_numbers<[2], [2], [1], [1], [0, 0, 0, 1, 1, 1], [0], [0]>} : vector<8x16x32xbf16>, vector<8x16x32xbf16>, vector<8x16x16xf32> -> vector<8x16x16xf32>
    %cst_23 = arith.constant -9.99999984E+17 : f32
    "tpu.trace_stop"() : () -> ()
    %66 = vector.broadcast %cst_23 : f32 to vector<8x16x16xf32>
    %67 = arith.select %21, %66, %65 : vector<8x16x16xi1>, vector<8x16x16xf32>
    %cst_24 = arith.constant dense<0xFF800000> : vector<8x16xf32>
    %68 = vector.multi_reduction <maximumf>, %67, %cst_24 [2] : vector<8x16x16xf32> to vector<8x16xf32>
    %69 = vector.shape_cast %68 : vector<8x16xf32> to vector<8x16x1xf32>
    %70 = vector.broadcast %69 : vector<8x16x1xf32> to vector<8x16x16xf32>
    %71 = arith.subf %67, %70 : vector<8x16x16xf32>
    %72 = math.exp %71 : vector<8x16x16xf32>
    %cst_25 = arith.constant dense<0.000000e+00> : vector<8x16xf32>
    %73 = vector.multi_reduction <add>, %72, %cst_25 [2] : vector<8x16x16xf32> to vector<8x16xf32>
    %74 = vector.shape_cast %73 : vector<8x16xf32> to vector<8x16x1xf32>
    %75 = tpu.reciprocal %74 {approx = true} : vector<8x16x1xf32> -> vector<8x16x1xf32>
    %76 = vector.broadcast %75 : vector<8x16x1xf32> to vector<8x16x16xf32>
    %77 = arith.mulf %72, %76 : vector<8x16x16xf32>
    %cst_26 = arith.constant 0.000000e+00 : f32
    %78 = vector.broadcast %cst_26 : f32 to vector<8x16x16xf32>
    %79 = arith.select %21, %78, %77 : vector<8x16x16xi1>, vector<8x16x16xf32>
    %80 = arith.truncf %79 : vector<8x16x16xf32> to vector<8x16x16xbf16>
    "tpu.trace_start"() <{level = 10 : i32, message = "bqk,bkd->bqd"}> : () -> ()
    %cst_27 = arith.constant dense<0.000000e+00> : vector<8x16x32xf32>
    %81 = tpu.matmul %80, %64, %cst_27 {dimension_numbers = #tpu.dot_dimension_numbers<[2], [1], [1], [2], [0, 0, 0, 1, 1, 2], [0], [0]>} : vector<8x16x16xbf16>, vector<8x16x32xbf16>, vector<8x16x32xf32> -> vector<8x16x32xf32>
    "tpu.trace_stop"() : () -> ()
    %82 = vector.extract_strided_slice %12 {offsets = [0, 0, 96], sizes = [8, 16, 32], strides = [1, 1, 1]} : vector<8x16x128xbf16> to vector<8x16x32xbf16>
    %83 = vector.extract_strided_slice %14 {offsets = [0, 0, 96], sizes = [8, 16, 32], strides = [1, 1, 1]} : vector<8x16x128xbf16> to vector<8x16x32xbf16>
    %84 = vector.extract_strided_slice %16 {offsets = [0, 0, 96], sizes = [8, 16, 32], strides = [1, 1, 1]} : vector<8x16x128xbf16> to vector<8x16x32xbf16>
    "tpu.trace_start"() <{level = 10 : i32, message = "bqd,bkd->bqk"}> : () -> ()
    %cst_28 = arith.constant dense<0.000000e+00> : vector<8x16x16xf32>
    %85 = tpu.matmul %82, %83, %cst_28 {dimension_numbers = #tpu.dot_dimension_numbers<[2], [2], [1], [1], [0, 0, 0, 1, 1, 1], [0], [0]>} : vector<8x16x32xbf16>, vector<8x16x32xbf16>, vector<8x16x16xf32> -> vector<8x16x16xf32>
    %cst_29 = arith.constant -9.99999984E+17 : f32
    "tpu.trace_stop"() : () -> ()
    %86 = vector.broadcast %cst_29 : f32 to vector<8x16x16xf32>
    %87 = arith.select %21, %86, %85 : vector<8x16x16xi1>, vector<8x16x16xf32>
    %cst_30 = arith.constant dense<0xFF800000> : vector<8x16xf32>
    %88 = vector.multi_reduction <maximumf>, %87, %cst_30 [2] : vector<8x16x16xf32> to vector<8x16xf32>
    %89 = vector.shape_cast %88 : vector<8x16xf32> to vector<8x16x1xf32>
    %90 = vector.broadcast %89 : vector<8x16x1xf32> to vector<8x16x16xf32>
    %91 = arith.subf %87, %90 : vector<8x16x16xf32>
    %92 = math.exp %91 : vector<8x16x16xf32>
    %cst_31 = arith.constant dense<0.000000e+00> : vector<8x16xf32>
    %93 = vector.multi_reduction <add>, %92, %cst_31 [2] : vector<8x16x16xf32> to vector<8x16xf32>
    %94 = vector.shape_cast %93 : vector<8x16xf32> to vector<8x16x1xf32>
    %95 = tpu.reciprocal %94 {approx = true} : vector<8x16x1xf32> -> vector<8x16x1xf32>
    %96 = vector.broadcast %95 : vector<8x16x1xf32> to vector<8x16x16xf32>
    %97 = arith.mulf %92, %96 : vector<8x16x16xf32>
    %cst_32 = arith.constant 0.000000e+00 : f32
    %98 = vector.broadcast %cst_32 : f32 to vector<8x16x16xf32>
    %99 = arith.select %21, %98, %97 : vector<8x16x16xi1>, vector<8x16x16xf32>
    %100 = arith.truncf %99 : vector<8x16x16xf32> to vector<8x16x16xbf16>
    "tpu.trace_start"() <{level = 10 : i32, message = "bqk,bkd->bqd"}> : () -> ()
    %cst_33 = arith.constant dense<0.000000e+00> : vector<8x16x32xf32>
    %101 = tpu.matmul %100, %84, %cst_33 {dimension_numbers = #tpu.dot_dimension_numbers<[2], [1], [1], [2], [0, 0, 0, 1, 1, 2], [0], [0]>} : vector<8x16x16xbf16>, vector<8x16x32xbf16>, vector<8x16x32xf32> -> vector<8x16x32xf32>
    "tpu.trace_stop"() : () -> ()
    %102 = vector.shape_cast %37 : vector<8x16x16xf32> to vector<8x1x16x16xf32>
    %103 = vector.shape_cast %57 : vector<8x16x16xf32> to vector<8x1x16x16xf32>
    %104 = vector.shape_cast %77 : vector<8x16x16xf32> to vector<8x1x16x16xf32>
    %105 = vector.shape_cast %97 : vector<8x16x16xf32> to vector<8x1x16x16xf32>
    %106 = tpu.concatenate %102, %103, %104, %105 in 1 : vector<8x1x16x16xf32>, vector<8x1x16x16xf32>, vector<8x1x16x16xf32>, vector<8x1x16x16xf32> -> vector<8x4x16x16xf32>
    %c0_34 = arith.constant 0 : index
    %c0_35 = arith.constant 0 : index
    %c0_36 = arith.constant 0 : index
    %c0_37 = arith.constant 0 : index
    %107 = vector.load %arg8[%c0_34, %c0_35, %c0_36, %c0_37] : memref<8x4x16x16xf32, #tpu.memory_space<vmem>>, vector<8x4x16x16xf32>
    tpu.vector_store %arg8[%c0_34, %c0_35, %c0_36, %c0_37], %106 {strides = array<i32>} : memref<8x4x16x16xf32, #tpu.memory_space<vmem>>, vector<8x4x16x16xf32>,
    %108 = tpu.concatenate %41, %61, %81, %101 in 2 : vector<8x16x32xf32>, vector<8x16x32xf32>, vector<8x16x32xf32>, vector<8x16x32xf32> -> vector<8x16x128xf32>
    %109 = vector.shape_cast %108 : vector<8x16x128xf32> to vector<128x128xf32>
    %110 = arith.truncf %109 : vector<128x128xf32> to vector<128x128xbf16>
    %c0_38 = arith.constant 0 : index
    %c0_39 = arith.constant 0 : index
    %111 = vector.load %arg5[%c0_38, %c0_39] : memref<128x128xbf16, #tpu.memory_space<vmem>>, vector<128x128xbf16>
    %cst_40 = arith.constant dense<0.000000e+00> : vector<128x128xf32>
    %112 = tpu.matmul %110, %111, %cst_40 {dimension_numbers = #tpu.dot_dimension_numbers<[1], [0], [0], [1], [0, 0, 1, 1], [], []>} : vector<128x128xbf16>, vector<128x128xbf16>, vector<128x128xf32> -> vector<128x128xf32>
    %c0_41 = arith.constant 0 : index
    %c0_42 = arith.constant 0 : index
    %113 = vector.load %arg6[%c0_41, %c0_42] : memref<1x128xf32, #tpu.memory_space<vmem>>, vector<1x128xf32>
    %114 = vector.broadcast %113 : vector<1x128xf32> to vector<128x128xf32>
    %115 = arith.addf %112, %114 : vector<128x128xf32>
    %116 = arith.addf %115, %1 : vector<128x128xf32>
    %117 = vector.shape_cast %116 : vector<128x128xf32> to vector<8x16x128xf32>
    %c0_43 = arith.constant 0 : index
    %c0_44 = arith.constant 0 : index
    %c0_45 = arith.constant 0 : index
    %118 = vector.load %arg7[%c0_43, %c0_44, %c0_45] : memref<8x16x128xf32, #tpu.memory_space<vmem>>, vector<8x16x128xf32>
    tpu.vector_store %arg7[%c0_43, %c0_44, %c0_45], %117 {strides = array<i32>} : memref<8x16x128xf32, #tpu.memory_space<vmem>>, vector<8x16x128xf32>,
    return
  }
  func.func @transform_0(%arg0: i32) -> (i32, i32, i32) {
    %c0_i32 = arith.constant 0 : i32
    %c0_i32_0 = arith.constant 0 : i32
    %c0_i32_1 = arith.constant 0 : i32
    return %arg0, %c0_i32, %c0_i32_0 : i32, i32, i32
  }
  func.func @transform_1(%arg0: i32) -> (i32, i32, i32) {
    %c0_i32 = arith.constant 0 : i32
    %c0_i32_0 = arith.constant 0 : i32
    %c0_i32_1 = arith.constant 0 : i32
    return %arg0, %c0_i32, %c0_i32_0 : i32, i32, i32
  }
  func.func @transform_2(%arg0: i32) -> (i32, i32) {
    %c0_i32 = arith.constant 0 : i32
    %c0_i32_0 = arith.constant 0 : i32
    %c0_i32_1 = arith.constant 0 : i32
    return %c0_i32, %c0_i32_0 : i32, i32
  }
  func.func @transform_3(%arg0: i32) -> (i32, i32) {
    %c0_i32 = arith.constant 0 : i32
    %c0_i32_0 = arith.constant 0 : i32
    %c0_i32_1 = arith.constant 0 : i32
    return %c0_i32, %c0_i32_0 : i32, i32
  }
  func.func @transform_4(%arg0: i32) -> (i32, i32) {
    %c0_i32 = arith.constant 0 : i32
    %c0_i32_0 = arith.constant 0 : i32
    %c0_i32_1 = arith.constant 0 : i32
    return %c0_i32, %c0_i32_0 : i32, i32
  }
  func.func @transform_5(%arg0: i32) -> (i32, i32) {
    %c0_i32 = arith.constant 0 : i32
    %c0_i32_0 = arith.constant 0 : i32
    %c0_i32_1 = arith.constant 0 : i32
    return %c0_i32, %c0_i32_0 : i32, i32
  }
  func.func @transform_6(%arg0: i32) -> (i32, i32, i32) {
    %c0_i32 = arith.constant 0 : i32
    %c0_i32_0 = arith.constant 0 : i32
    %c0_i32_1 = arith.constant 0 : i32
    return %arg0, %c0_i32, %c0_i32_0 : i32, i32, i32
  }
  func.func @transform_7(%arg0: i32) -> (i32, i32, i32, i32) {
    %c0_i32 = arith.constant 0 : i32
    %c0_i32_0 = arith.constant 0 : i32
    %c0_i32_1 = arith.constant 0 : i32
    %c0_i32_2 = arith.constant 0 : i32
    return %arg0, %c0_i32, %c0_i32_0, %c0_i32_1 : i32, i32, i32, i32
  }
}

</mosaic_0001>

<bundles_post_ra>
// kernel: tpu_custom_call.1
= control target key start
LH: loop header
LB: loop body
LE: loop exit
PB: predicated region body
PF: predicated region fallthrough
CT: control target
= control target key end

     0   :  { %s9496_s0 = inlined_call_operand.hbm [shape: f32[16,16,128], index: 0, kind: input, shape index: {}]   ;;  %s9497_s1 = inlined_call_operand.hbm [shape: s32[16,1,16], index: 1, kind: input, shape index: {}]   ;;  %s9498_s2 = inlined_call_operand.hbm [shape: bf16[128,384], index: 2, kind: input, shape index: {}]   ;;  %s9499_s3 = inlined_call_operand.vmem [shape: f32[1,384], index: 3, kind: input, shape index: {}]   ;;  %s9500_s4 = inlined_call_operand.hbm [shape: bf16[128,128], index: 4, kind: input, shape index: {}]   ;;  %s9501_s5 = inlined_call_operand.vmem [shape: f32[1,128], index: 5, kind: input, shape index: {}]   ;;  %s9502_s6 = inlined_call_operand.hbm [shape: f32[16,16,128], index: 6, kind: output, shape index: {0}]   ;;  %s9503_s7 = inlined_call_operand.hbm [shape: f32[16,4,16,16], index: 7, kind: output, shape index: {1}]  }
   0x1   :  { %9525 = sst [smem:[#allocation52_spill]] %s9496_s0 }
   0x2   :  { %9526 = sst [smem:[#allocation53_spill]] %s9498_s2 }
   0x3   :  { %9527 = sst [smem:[#allocation54_spill]] %s9500_s4 }
   0x4   :  { %13 = vsyncpa [#allocation3], 0 }
   0x5   :  { %15 = vsyncpa [#allocation3 + $0x1], 0 }
   0x6   :  { %16 = vsyncpa [#allocation6], 0 }
   0x7   :  { %18 = vsyncpa [#allocation6 + $0x1], 0 }
   0x8   :  { %19 = vsyncpa [#allocation9], 0 }
   0x9   :  { %20 = vsyncpa [#allocation4], 0 }
   0xa   :  { %22 = vsyncpa [#allocation4 + $0x1], 0 }
   0xb   :  { %23 = vsyncpa [#allocation12], 0 }
   0xc   :  { %25 = vsyncpa [#allocation12 + $0x1], 0  ;;  %s7126_s24 = smov 0   ;;  %s7128_s25 = smov 0  }
   0xd   :  { %s7130_s26 = smov 0   ;;  %s7132_s27 = smov 0  }
   0xe LB: > { %9528 = sst [smem:[#allocation19_spill]] %s7058_s26  ;;  %s7147_s28 = sadd.s32 4294967295, %s7062_s27   ;;  %s7062_s27 = sphi %s7132_s27, %s9644_s27   ;;  %s7058_s26 = sphi %s7130_s26, %s9641_s26   ;;  %s7054_s25 = sphi %s7128_s25, %s9643_s25   ;;  %s7050_s24 = sphi %s7126_s24, %s9642_s24  }
   0xf   : > { %s5566_s29 = sadd.s32 4294967294, %s7062_s27   ;;  %p51_p0 = scmp.ne.s32.totalorder %s7054_s25, %s7050_s24 }
  0x10   : > { %p9504_p1 = scmp.eq.s32.totalorder %s7147_s28, 0  ;;  %p191_p3 = scmp.eq.s32.totalorder %s5566_s29, 1 }
  0x11   : > { %p5567_p5 = scmp.ge.s32.totalorder %s7062_s27, 1  ;;  %p224_p7 = scmp.lt.s32.totalorder %s7062_s27, 3 }
  0x12   : > { %p7156_p4 = por %p9504_p1, %p51_p0  ;;  %p7161_p6 = por %p191_p3, %p51_p0 }
  0x13   : > { %p7166_p8 = pnand %p5567_p5, %p224_p7  ;;  %s7064_s10 = smov [#allocation7]  }
  0x14   : > { %s9529_s30 = scalar_select %p7156_p4, 1, 0 }
  0x15   : > { %s9530_s8 = scalar_select %p7161_p6, 1, 0 }
  0x16   : > { %s236_s11 = sshll.u32 %s7064_s10, 4  ;;  %p6339_p9 = pneg %p7166_p8  ;;  %s237_s11 = int_to_ptr.vmem [resolvable:$true] %s236_s11 }
  0x17   : > { %s7065_s13 = smov [#allocation8]   ;;  %s6859_s15 = scalar_lea.vmem %s237_s11, 3072 }
  0x18   : > { %p7175_p11 = pnand %p6339_p9, %p9504_p1  ;;  %s252_s14 = sshll.u32 %s7065_s13, 4  ;;  %s253_s14 = int_to_ptr.vmem [resolvable:$true] %s252_s14 }
  0x19   : > { %p6860_p13 = scmp.ne.s32.totalorder %s237_s11, %s6859_s15  ;;  %p6867_p5 = scmp.lt.s32.totalorder %s237_s11, %s237_s11 }
  0x1a   : > { %p6850_p12 = pneg %p7175_p11  ;;  %p6868_p7 = scmp.lt.s32.totalorder %s6859_s15, %s6859_s15 }
  0x1c   : > { %p6862_p0 = pnand %p6860_p13, %p6850_p12  ;;  %p6869_p10 = por %p6868_p7, %p6867_p5 }
  0x1e   : > { %p6863_p3 = pneg %p6862_p0 }
  0x20   : > { %p6870_p9 = pnand %p6869_p10, %p6863_p3 }
  0x22   : > { %6873 = shalt.err (!%p6870_p9)
}
  0x23   : > { %s7066_s16 = smov 192   ;;  %s7067_s17 = smov 12  }
  0x24   : > { %s9533_s2 = sld [smem:[#allocation53_spill]]  ;;  %s6885_s20 = scalar_lea.vmem %s253_s14, 1024 }
  0x25   : > { %p6886_p1 = scmp.ne.s32.totalorder %s253_s14, %s6885_s20  ;;  %p6893_p2 = scmp.lt.s32.totalorder %s253_s14, %s253_s14 }
  0x26   : > { %p6894_p6 = scmp.lt.s32.totalorder %s6885_s20, %s6885_s20 }
  0x27   : > { %p6888_p13 = pnand %p6886_p1, %p6850_p12 }
  0x28   : > { %p6895_p5 = por %p6894_p6, %p6893_p2 }
  0x29   : > { %p6889_p0 = pneg %p6888_p13 }
  0x2a   : > { %6342 = dma.hbm_to_vmem [thread:$0]  (!%p7175_p11), %s9533_s2, 3072, %s237_s11, [#allocation6], %s7066_s16, %s7066_s16, %s7067_s17  }
  0x2b   : > { %p6896_p10 = pnand %p6895_p5, %p6889_p0 }
  0x2d   : > { %6899 = shalt.err (!%p6896_p10)
}
  0x2e   : > { %s7068_s21 = smov 64   ;;  %s7069_s22 = smov 4  }
  0x2f   : > { %s9534_s4 = sld [smem:[#allocation54_spill]]  ;;  %s7198_s10 = sadd.s32 1, %s7062_s27  }
  0x30   : > { %s35_s11 = ssub.s32 %s7062_s27, %s7198_s10  ;;  %s38_s13 = sadd.s32 1, %s7058_s26 }
  0x31   : > { %p36_p1 = scmp.eq.s32.totalorder %s35_s11, 0  ;;  %p45_p2 = scmp.ne.s32.totalorder %s7058_s26, %s7054_s25 }
  0x32   : > { %p46_p6 = scmp.eq.s32.totalorder %s7062_s27, 0  ;;  %p9536_p3 = scmp.eq.s32.totalorder %s7147_s28, 1 }
  0x33   : > { %s7207_s15 = scalar_select %p36_p1, %s7058_s26, %s38_s13  }
  0x34   : > { %p47_p12 = por %p46_p6, %p45_p2  ;;  %p7211_p7 = por %p9536_p3, %p45_p2 }
  0x35   : > { %6345 = dma.hbm_to_vmem [thread:$0]  (!%p7175_p11), %s9534_s4, 1024, %s253_s14, [#allocation9], %s7068_s21, %s7068_s21, %s7069_s22  }
  0x36   : > { %9535 = sst [smem:[#allocation20_spill]] %s7207_s15  ;;  %p6362_p9 = scmp.lt.s32.totalorder %s7062_s27, 2 }
  0x37   : > { %s9537_s16 = scalar_select %p7211_p7, 1, 0 }
  0x38   : > { %s7217_s12 = sand.u32 1, %s7058_s26   ;;  %s5693_s17 = sshll.u32 %s7062_s27, 11 }
  0x39   : > { %s5571_s14 = sshll.u32 %s7217_s12, 7  ;;  %s9538_s0 = sld [smem:[#allocation52_spill]] }
  0x3a   : > { %s273_s21 = scalar_lea.vmem [#allocation2], %s5571_s14  ;;  %p7228_p11 = pnand %p6362_p9, %p47_p12 }
  0x3b   : > { %s281_s22 = sshll.u32 %s273_s21, 4  ;;  %s7226_s22 = int_to_ptr.vmem [resolvable:$true] %s281_s22 }
  0x3c   : > { %p6902_p0 = pneg %p7228_p11 }
  0x3f   : > { %s7224_s20 = scalar_lea.hbm %s9538_s0, %s5693_s17  ;;  %s6905_s18 = scalar_lea.hbm %s9538_s0, 4096 }
  0x40   : > { %s6900_s13 = scalar_lea.hbm %s7224_s20, 2048  ;;  %p6906_p1 = scmp.lt.s32.totalorder %s7224_s20, %s9538_s0 }
  0x41   : > { %p6901_p13 = scmp.ne.s32.totalorder %s7224_s20, %s6900_s13  ;;  %p6907_p2 = scmp.lt.s32.totalorder %s6905_s18, %s6900_s13 }
  0x43   : > { %p6903_p5 = pnand %p6902_p0, %p6901_p13  ;;  %p6908_p6 = por %p6907_p2, %p6906_p1 }
  0x45   : > { %p6904_p10 = pneg %p6903_p5 }
  0x47   : > { %p6909_p12 = pnand %p6908_p6, %p6904_p10 }
  0x49   : > { %6912 = shalt.err (!%p6909_p12)
}
  0x4a   : > { %s6913_s29 = scalar_lea.vmem %s7226_s22, 2048  ;;  %s7070_s14 = smov [#allocation2]  }
  0x4b   : > { %p6914_p3 = scmp.ne.s32.totalorder %s7226_s22, %s6913_s29  ;;  %s6918_s17 = sshll.u32 %s7070_s14, 4  ;;  %s6919_s17 = int_to_ptr.vmem [resolvable:$false] %s6918_s17 }
  0x4c   : > { %s6920_s11 = scalar_lea.vmem %s6919_s17, 4096  ;;  %p6921_p5 = scmp.lt.s32.totalorder %s7226_s22, %s6919_s17 }
  0x4d   : > { %p6916_p9 = pnand %p6914_p3, %p6902_p0  ;;  %p6922_p7 = scmp.lt.s32.totalorder %s6920_s11, %s6913_s29 }
  0x4f   : > { %p6917_p13 = pneg %p6916_p9  ;;  %p6923_p4 = por %p6922_p7, %p6921_p5 }
  0x51   : > { %p6924_p1 = pnand %p6923_p4, %p6917_p13 }
  0x53   : > { %6927 = shalt.err (!%p6924_p1)
}
  0x54   : > { %s7071_s13 = smov 128   ;;  %s7072_s18 = smov 8  }
  0x55   : > { %s9540_s19 = scalar_lea.sflag [#allocation3], %s7217_s12  ;;  %s5575_s21 = sshll.u32 %s7217_s12, 3 }
  0x56   : > { %6349 = dma.hbm_to_vmem [thread:$0]  (!%p7228_p11), %s7224_s20, 2048, %s7226_s22, %s9540_s19, %s7071_s13, %s7071_s13, %s7072_s18  }
  0x57   : > { %s5694_s14 = sshll.u32 %s7062_s27, 7  ;;  %s295_s0 = scalar_lea.vmem [#allocation5], %s5575_s21 }
  0x58   : > { %s7265_s11 = scalar_lea.hbm %s9497_s1, %s5694_s14  ;;  %s302_s2 = sshll.u32 %s295_s0, 4  ;;  %s7267_s2 = int_to_ptr.vmem [resolvable:$true] %s302_s2 }
  0x59   : > { %s9541_s4 = sand.u32 1, %s7062_s27   ;;  %s6928_s26 = scalar_lea.hbm %s7265_s11, 128 }
  0x5a   : > { %s7271_s15 = scalar_lea.sflag [#allocation6], %s9541_s4  ;;  %p6929_p4 = scmp.ne.s32.totalorder %s7265_s11, %s6928_s26 }
  0x5b   : > { %s6933_s22 = scalar_lea.hbm %s9497_s1, 256  ;;  %p6934_p2 = scmp.lt.s32.totalorder %s7265_s11, %s9497_s1 }
  0x5c   : > { %p6931_p7 = pnand %p6929_p4, %p6902_p0  ;;  %p6935_p6 = scmp.lt.s32.totalorder %s6933_s22, %s6928_s26 }
  0x5e   : > { %p6932_p10 = pneg %p6931_p7  ;;  %p6936_p12 = por %p6935_p6, %p6934_p2 }
  0x60   : > { %p6937_p3 = pnand %p6936_p12, %p6932_p10 }
  0x62   : > { %6940 = shalt.err (!%p6937_p3)
}
  0x63   : > { %s6941_s0 = scalar_lea.vmem %s7267_s2, 128  ;;  %s7073_s4 = smov [#allocation5]  }
  0x64   : > { %p6942_p9 = scmp.ne.s32.totalorder %s7267_s2, %s6941_s0  ;;  %s6946_s19 = sshll.u32 %s7073_s4, 4  ;;  %s6947_s19 = int_to_ptr.vmem [resolvable:$false] %s6946_s19 }
  0x65   : > { %s6948_s21 = scalar_lea.vmem %s6947_s19, 256  ;;  %p6949_p1 = scmp.lt.s32.totalorder %s7267_s2, %s6947_s19 }
  0x66   : > { %p6944_p13 = pnand %p6942_p9, %p6902_p0  ;;  %p6950_p4 = scmp.lt.s32.totalorder %s6948_s21, %s6941_s0 }
  0x68   : > { %p6945_p5 = pneg %p6944_p13  ;;  %p6951_p7 = por %p6950_p4, %p6949_p1 }
  0x6a   : > { %p6952_p2 = pnand %p6951_p7, %p6945_p5 }
  0x6c   : > { %6955 = shalt.err (!%p6952_p2)
}
  0x6d   : > { %s7074_s26 = smov 16   ;;  %s7075_s14 = smov 1  }
  0x6e   : > { %6352 = dma.hbm_to_vmem [thread:$0]  (!%p7228_p11), %s7265_s11, 128, %s7267_s2, %s7271_s15, %s7074_s26, %s7074_s26, %s7075_s14  }
  0x6f   : > { %314 = sbr.rel (%p7166_p8) target bundleno = 3340 (0xd0c), region = 44 }
  0x74   : > { %s7299_s17 = sand.u32 1, %s7054_s25   ;;  %p9542_p0 = scmp.ne.s32.totalorder %s9529_s30, 0 }
  0x75   : > { %s5579_s29 = sshll.u32 %s7299_s17, 7  ;;  %s317_s12 = scalar_lea.sflag [#allocation3], %s7299_s17 }
  0x76   : > { %s7305_s20 = scalar_lea.vmem [#allocation2], %s5579_s29 }
  0x77   : > { %7025 = dma.done.wait (%p9542_p0), %s317_s12, 2048  }
  0x78   : > { %7027 = vsyncadd (%p9542_p0), %s317_s12, 4294965248  ;;  %s325_s2 = sand.u32 1, %s7147_s28   ;;  %s5580_s9 = sshll.u32 %s7299_s17, 3 }
  0x79   : > { %s326_s15 = scalar_lea.sflag [#allocation6], %s325_s2  ;;  %s7313_s23 = scalar_lea.vmem [#allocation5], %s5580_s9 }
  0x7a   : > { %7029 = dma.done.wait (%p9542_p0), %s326_s15, 128  }
  0x7b   : > { %7031 = vsyncadd (%p9542_p0), %s326_s15, 4294967168  ;;  %p9543_p8 = scmp.eq.s32.totalorder %s7147_s28, 0 }
  0x7d   : > { %7033 = dma.done.wait (%p9543_p8), [#allocation6], 3072   ;;  %p9544_p11 = pmov %p9543_p8 }
  0x7e   : > { %p9545_p10 = pmov %p9543_p8 }
  0x7f   : > { %7035 = vsyncadd (%p9544_p11), [#allocation6], 4294964224 }
  0x80   : > { %7037 = dma.done.wait (%p9545_p10), [#allocation9], 1024   ;;  %p9546_p6 = pmov %p9543_p8 }
  0x81   : > { %v7076_v0 = vmov 0   ;;  %v6536_v1 = vld [vmem:[#allocation7 + $0xac] ss:$12 sps:$4 sm:$0xff]   ;;  %v6538_v2 = vld [vmem:[#allocation7 + $0xa8] ss:$12 sps:$4 sm:$0xff]   ;;  %v385_v26 = vld [vmem:[%s7305_s20 + $0x10] sm:$0xff]  ;;  %v441_v50 = vlaneseq }
  0x82   : > { %7039 = vsyncadd (%p9546_p6), [#allocation9], 4294966272  ;;  %616 = vmatprep.mubr.bf16.mxu0 %v7076_v0  ;;  %584 = vmatprep.subr.bf16.mxu0 %v6536_v1  ;;  %v6539_v3 = vld [vmem:[#allocation7 + $0x94] ss:$12 sps:$4 sm:$0xff]   ;;  %v6541_v4 = vld [vmem:[#allocation7 + $0x90] ss:$12 sps:$4 sm:$0xff]  }
  0x83   : > { %585 = vmatpush1.bf16.msra.mxu0 %v6538_v2  ;;  %v6542_v5 = vld [vmem:[#allocation7 + $0x7c] ss:$12 sps:$4 sm:$0xff]   ;;  %v6544_v6 = vld [vmem:[#allocation7 + $0x78] ss:$12 sps:$4 sm:$0xff]   ;;  %v383_v8 = vld [vmem:[%s7305_s20] sm:$0xff]  ;;  %v9508_v49 = vmov 0.0  }
  0x84   : > { %586 = vmatprep.subr.bf16.mxu0 %v6539_v3  ;;  %v6545_v7 = vld [vmem:[#allocation7 + $0x64] ss:$12 sps:$4 sm:$0xff]   ;;  %v6547_v9 = vld [vmem:[#allocation7 + $0x60] ss:$12 sps:$4 sm:$0xff]   ;;  %v384_v10 = vld [vmem:[%s7305_s20 + $0x8] sm:$0xff]  ;;  %vm7078_vm0 = vmmov 0  }
  0x85   : > { %v6548_v11 = vld [vmem:[#allocation7 + $0x4c] ss:$12 sps:$4 sm:$0xff]   ;;  %v399_v12 = vpack.c.bf16 %v384_v10, %v383_v8  ;;  %v6550_v13 = vld [vmem:[#allocation7 + $0x48] ss:$12 sps:$4 sm:$0xff]   ;;  %v6560_v15 = vld [vmem:[#allocation7 + $0xb0] ss:$12 sps:$4 sm:$0xff]  }
  0x86   : > { %v6551_v14 = vld [vmem:[#allocation7 + $0x34] ss:$12 sps:$4 sm:$0xff]   ;;  %v6561_v16 = vld [vmem:[#allocation7 + $0x98] ss:$12 sps:$4 sm:$0xff]   ;;  %v6553_v17 = vld [vmem:[#allocation7 + $0x30] ss:$12 sps:$4 sm:$0xff]   ;;  %5859 = vmatprep.subr.bf16.mxu1 %v6560_v15 }
  0x87   : > { %587 = vmatpush1.bf16.msra.mxu0 %v6541_v4  ;;  %5875 = vmatprep.mubr.bf16.mxu1 %v399_v12  ;;  %v6554_v18 = vld [vmem:[#allocation7 + $0x1c] ss:$12 sps:$4 sm:$0xff]   ;;  %v6562_v19 = vld [vmem:[#allocation7 + $0x80] ss:$12 sps:$4 sm:$0xff]   ;;  %v6556_v20 = vld [vmem:[#allocation7 + $0x18] ss:$12 sps:$4 sm:$0xff]  }
  0x88   : > { %588 = vmatprep.subr.bf16.mxu0 %v6542_v5  ;;  %5860 = vmatpush3.bf16.msra.mxu1 %v6560_v15  ;;  %v6557_v21 = vld [vmem:[#allocation7 + $0x4] ss:$12 sps:$4 sm:$0xff]   ;;  %v6563_v22 = vld [vmem:[#allocation7 + $0x68] ss:$12 sps:$4 sm:$0xff]   ;;  %v6559_v23 = vld [vmem:[#allocation7] ss:$12 sps:$4 sm:$0xff]  }
  0x89   : > { %5861 = vmatprep.subr.bf16.mxu1 %v6561_v16  ;;  %v6564_v24 = vld [vmem:[#allocation7 + $0x50] ss:$12 sps:$4 sm:$0xff]   ;;  %v6565_v25 = vld [vmem:[#allocation7 + $0x38] ss:$12 sps:$4 sm:$0xff]   ;;  %v386_v27 = vld [vmem:[%s7305_s20 + $0x18] sm:$0xff]  ;;  %v442_v51 = vshrl.u32 %v441_v50, 7 }
  0x8a   : > { %v6566_v28 = vld [vmem:[#allocation7 + $0x20] ss:$12 sps:$4 sm:$0xff]   ;;  %v400_v29 = vpack.c.bf16 %v386_v27, %v385_v26  ;;  %v6567_v30 = vld [vmem:[#allocation7 + $0x8] ss:$12 sps:$4 sm:$0xff]   ;;  %v388_v32 = vld [vmem:[%s7305_s20 + $0x28] sm:$0xff]  ;;  %vm898_vm1 = vcmask 261120  }
  0x8b   : > { %589 = vmatpush1.bf16.msra.mxu0 %v6544_v6  ;;  %v387_v31 = vld [vmem:[%s7305_s20 + $0x20] sm:$0xff]  ;;  %v389_v34 = vld [vmem:[%s7305_s20 + $0x30] sm:$0xff]  ;;  %v390_v35 = vld [vmem:[%s7305_s20 + $0x38] sm:$0xff]  ;;  %v447_v52 = vsub.s32 1, %v442_v51  ;;  %v7360_v56 = vsub.s32 0, %v442_v51  ;;  %vm1291_vm5 = vcmask 130048  }
  0x8c   : > { %590 = vmatprep.subr.bf16.mxu0 %v6545_v7  ;;  %5862 = vmatpush3.bf16.msra.mxu1 %v6561_v16  ;;  %v401_v33 = vpack.c.bf16 %v388_v32, %v387_v31  ;;  %v402_v36 = vpack.c.bf16 %v390_v35, %v389_v34  ;;  %v391_v37 = vld [vmem:[%s7305_s20 + $0x40] sm:$0xff]  ;;  %v392_v38 = vld [vmem:[%s7305_s20 + $0x48] sm:$0xff]  ;;  %v393_v40 = vld [vmem:[%s7305_s20 + $0x50] sm:$0xff]  ;;  %s7079_s22 = smov 96   ;;  %s5584_s13 = sshll.u32 %s7299_s17, 9 }
  0x8d   : > { %5863 = vmatprep.subr.bf16.mxu1 %v6562_v19  ;;  %v403_v39 = vpack.c.bf16 %v392_v38, %v391_v37  ;;  %v394_v41 = vld [vmem:[%s7305_s20 + $0x58] sm:$0xff]  ;;  %v395_v42 = vld [vmem:[%s7305_s20 + $0x60] sm:$0xff]  ;;  %v396_v43 = vld [vmem:[%s7305_s20 + $0x68] sm:$0xff]  ;;  %s7803_s18 = scalar_lea.vmem [#allocation11], %s5584_s13  ;;  %s7080_s0 = smov 64  }
  0x8e   : > { %v404_v44 = vpack.c.bf16 %v394_v41, %v393_v40  ;;  %v405_v45 = vpack.c.bf16 %v396_v43, %v395_v42  ;;  %v397_v46 = vld [vmem:[%s7305_s20 + $0x70] sm:$0xff]  ;;  %v398_v47 = vld [vmem:[%s7305_s20 + $0x78] sm:$0xff]  ;;  %v439_v54 = vld [vmem:[%s9499_s3] sm:$0x7]  ;;  %s7081_s4 = smov 32   ;;  %s5698_s19 = sshll.u32 %s7147_s28, 13 }
  0x8f   : > { %591 = vmatpush1.bf16.msra.mxu0 %v6547_v9  ;;  %v406_v48 = vpack.c.bf16 %v398_v47, %v397_v46  ;;  %v7362_v57 = vrot.slane %v439_v54, %v447_v52  ;;  %v7365_v60 = vrot.slane %v439_v54, %v7360_v56  ;;  %s5419_s21 = sshll.u32 %s7803_s18, 4  ;;  %s9358_s12 = scalar_lea.hbm %s9503_s7, %s5698_s19  ;;  %s9360_s21 = int_to_ptr.vmem [resolvable:$true] %s5419_s21 }
  0x90   : > { %592 = vmatprep.subr.bf16.mxu0 %v6548_v11  ;;  %5864 = vmatpush3.bf16.msra.mxu1 %v6562_v19  ;;  %s5388_s2 = scalar_lea.sflag [#allocation12], %s7299_s17  ;;  %s6956_s9 = scalar_lea.vmem %s9360_s21, 8192 }
  0x91   : > { %5865 = vmatprep.subr.bf16.mxu1 %v6563_v22  ;;  %p6957_p12 = scmp.ne.s32.totalorder %s9360_s21, %s6956_s9  ;;  %p9637_p3 = scmp.ne.s32.totalorder %s9537_s16, 0 }
  0x92   : > { %s7082_s15 = smov [#allocation11]  }
  0x93   : > { %593 = vmatpush1.bf16.msra.mxu0 %v6550_v13  ;;  %p6958_p9 = pnand %p6957_p12, %p9637_p3 }
  0x94   : > { %594 = vmatprep.subr.bf16.mxu0 %v6551_v14  ;;  %5866 = vmatpush3.bf16.msra.mxu1 %v6563_v22  ;;  %v451_v22 = vsub.s32 2, %v442_v51 }
  0x95   : > { %5867 = vmatprep.subr.bf16.mxu1 %v6564_v24  ;;  %p6959_p13 = pneg %p6958_p9 }
  0x96   : > { %v7401_v31 = vrot.slane %v439_v54, %v451_v22 }
  0x97   : > { %595 = vmatpush1.bf16.msra.mxu0 %v6553_v17 }
  0x98   : > { %596 = vmatprep.subr.bf16.mxu0 %v6554_v18  ;;  %5868 = vmatpush3.bf16.msra.mxu1 %v6564_v24 }
  0x99   : > { %5869 = vmatprep.subr.bf16.mxu1 %v6565_v25 }
  0x9b   : > { %597 = vmatpush1.bf16.msra.mxu0 %v6556_v20 }
  0x9c   : > { %598 = vmatprep.subr.bf16.mxu0 %v6557_v21  ;;  %5870 = vmatpush3.bf16.msra.mxu1 %v6565_v25 }
  0x9d   : > { %5871 = vmatprep.subr.bf16.mxu1 %v6566_v28 }
  0x9f   : > { %599 = vmatpush1.bf16.msra.mxu0 %v6559_v23 }
  0xa0   : > { %5872 = vmatpush3.bf16.msra.mxu1 %v6566_v28  ;;  %5915 = vmatprep.subr.bf16.mxu0 %v9508_v49 }
  0xa1   : > { %5873 = vmatprep.subr.bf16.mxu1 %v6567_v30 }
  0xa2   : > { %617 = vmatmul.mubr.bf16.vlgmr.msra.gmra.mxu0 %v399_v12 }
  0xa3   : > { %626 = vmatprep.mubr.bf16.mxu0 %v7076_v0 }
  0xa4   : > { %5874 = vmatpush3.bf16.msra.mxu1 %v6567_v30 }
  0xa5   : > { %5891 = vmatprep.subr.bf16.mxu1 %v9508_v49 }
  0xa7   : > { %5876 = vmatmul.mubr.bf16.vlgmr.msra.gmra.mxu1 %v400_v29 }
  0xa8   : > { %5879 = vmatprep.mubr.bf16.mxu1 %v401_v33 }
  0xaa   : > { %627 = vmatmul.mubr.bf16.gmra.mxu0 %v400_v29 }
  0xab   : > { %636 = vmatprep.mubr.bf16.mxu0 %v7076_v0 }
  0xaf   : > { %5880 = vmatmul.mubr.bf16.gmra.mxu1 %v402_v36 }
  0xb0   : > { %5883 = vmatprep.mubr.bf16.mxu1 %v403_v39 }
  0xb2   : > { %637 = vmatmul.mubr.bf16.gmra.mxu0 %v401_v33 }
  0xb3   : > { %646 = vmatprep.mubr.bf16.mxu0 %v7076_v0 }
  0xb7   : > { %5884 = vmatmul.mubr.bf16.gmra.mxu1 %v404_v44 }
  0xb8   : > { %5887 = vmatprep.mubr.bf16.mxu1 %v405_v45 }
  0xba   : > { %647 = vmatmul.mubr.bf16.gmra.mxu0 %v402_v36 }
  0xbb   : > { %656 = vmatprep.mubr.bf16.mxu0 %v7076_v0 }
  0xbf   : > { %5888 = vmatmul.mubr.bf16.gmra.mxu1 %v406_v48 }
  0xc0   : > { %5893 = vmatprep.mubr.msk.bf16.mxu1 %vm7078_vm0, %v9508_v49 }
  0xc2   : > { %657 = vmatmul.mubr.bf16.gmra.mxu0 %v403_v39 }
  0xc3   : > { %666 = vmatprep.mubr.bf16.mxu0 %v7076_v0 }
  0xca   : > { %667 = vmatmul.mubr.bf16.gmra.mxu0 %v404_v44 }
  0xcb   : > { %676 = vmatprep.mubr.bf16.mxu0 %v7076_v0 }
  0xd2   : > { %677 = vmatmul.mubr.bf16.gmra.mxu0 %v405_v45 }
  0xd3   : > { %686 = vmatprep.mubr.bf16.mxu0 %v7076_v0 }
  0xda   : > { %687 = vmatmul.mubr.bf16.gmra.mxu0 %v406_v48 }
  0xdb   : > { %5917 = vmatprep.mubr.msk.bf16.mxu0 %vm7078_vm0, %v9508_v49 }
 0x162   : > { %v618_v53 = vpop.f32.mrf.mxu0 }
 0x163   : > { %v619_v4 = vadd.f32 %v618_v53, %v7365_v60 }
 0x164   : > { %v620_v55 = vpop.f32.mrf.mxu0 }
 0x165   : > { %v621_v61 = vadd.f32 %v620_v55, %v7362_v57  ;;  %v794_v9 = vmul.f32 0.17677669, %v619_v4 }
 0x166   : > { %v622_v58 = vpop.f32.mrf.mxu0 }
 0x167   : > { %v623_v1 = vadd.f32 %v622_v58, %v7365_v60  ;;  %v7378_v13 = vpop.f32.mrf.mxu1 }
 0x168   : > { %v624_v59 = vpop.f32.mrf.mxu0 }
 0x169   : > { %v625_v62 = vadd.f32 %v624_v59, %v7362_v57  ;;  %v795_v7 = vmul.f32 0.17677669, %v623_v1  ;;  %v7385_v18 = vpop.f32.mrf.mxu1 }
 0x16a   : > { %v628_v63 = vpop.f32.mrf.mxu0 }
 0x16b   : > { %v7370_v2 = vpack.c.bf16 %v625_v62, %v621_v61  ;;  %v7380_v14 = vpack.c.bf16 %v795_v7, %v794_v9  ;;  %v629_v19 = vadd.f32 %v628_v63, %v7365_v60  ;;  %v7394_v23 = vpop.f32.mrf.mxu1 }
 0x16c   : > { %v630_v3 = vpop.f32.mrf.mxu0 }
 0x16d   : > { %v903_v5 = vsel %vm898_vm1, %v7370_v2, 0  ;;  %v631_v10 = vadd.f32 %v630_v3, %v7362_v57  ;;  %v7397_v26 = vpop.f32.mrf.mxu1  ;;  %v796_v27 = vmul.f32 0.17677669, %v629_v19 }
 0x16e   : > { %v632_v6 = vpop.f32.mrf.mxu0  ;;  %5892 = vmatpush3.bf16.xpose.msra.mxu1 %v903_v5 }
 0x16f   : > { %5897 = vmatprep.subr.bf16.mxu1 %v9508_v49  ;;  %v633_v15 = vadd.f32 %v632_v6, %v7365_v60  ;;  %v5881_v32 = vpop.f32.mrf.mxu1 }
 0x170   : > { %v634_v8 = vpop.f32.mrf.mxu0  ;;  %v756_v38 = vadd.f32 %v5881_v32, %v7401_v31 }
 0x171   : > { %v635_v11 = vadd.f32 %v634_v8, %v7362_v57  ;;  %v797_v24 = vmul.f32 0.17677669, %v633_v15  ;;  %v747_v39 = vpop.f32.mrf.mxu1 }
 0x172   : > { %v638_v12 = vpop.f32.mrf.mxu0  ;;  %v748_v41 = vadd.f32 %v747_v39, %v7401_v31 }
 0x173   : > { %v7383_v16 = vpack.c.bf16 %v635_v11, %v631_v10  ;;  %v7403_v33 = vpack.c.bf16 %v797_v24, %v796_v27  ;;  %v639_v36 = vadd.f32 %v638_v12, %v7365_v60  ;;  %v5882_v43 = vpop.f32.mrf.mxu1 }
 0x174   : > { %v640_v17 = vpop.f32.mrf.mxu0  ;;  %v759_v45 = vadd.f32 %v5882_v43, %v7401_v31 }
 0x175   : > { %5894 = vmatmul.mubr.msk.bf16.vlgmr.msra.gmra.mxu1 %vm898_vm1, %v7380_v14  ;;  %v950_v20 = vsel %vm898_vm1, %v7383_v16, 0  ;;  %v641_v28 = vadd.f32 %v640_v17, %v7362_v57  ;;  %v798_v46 = vmul.f32 0.17677669, %v639_v36  ;;  %v750_v48 = vpop.f32.mrf.mxu1 }
 0x176   : > { %v642_v21 = vpop.f32.mrf.mxu0  ;;  %5898 = vmatpush3.bf16.xpose.msra.mxu1 %v950_v20  ;;  %5899 = vmatprep.mubr.msk.bf16.mxu1 %vm7078_vm0, %v9508_v49  ;;  %v7421_v52 = vpack.c.bf16 %v759_v45, %v756_v38  ;;  %v751_v53 = vadd.f32 %v750_v48, %v7401_v31 }
 0x177   : > { %5903 = vmatprep.subr.bf16.mxu1 %v9508_v49  ;;  %v643_v34 = vadd.f32 %v642_v21, %v7365_v60  ;;  %v5885_v55 = vpop.f32.mrf.mxu1 }
 0x178   : > { %v644_v25 = vpop.f32.mrf.mxu0  ;;  %v7429_v62 = vpack.c.bf16 %v751_v53, %v748_v41  ;;  %v772_v3 = vadd.f32 %v5885_v55, %v7401_v31 }
 0x179   : > { %v645_v29 = vadd.f32 %v644_v25, %v7362_v57  ;;  %v799_v44 = vmul.f32 0.17677669, %v643_v34  ;;  %v763_v4 = vpop.f32.mrf.mxu1 }
 0x17a   : > { %v648_v30 = vpop.f32.mrf.mxu0  ;;  %v764_v6 = vadd.f32 %v763_v4, %v7401_v31 }
 0x17b   : > { %v7406_v35 = vpack.c.bf16 %v645_v29, %v641_v28  ;;  %v7424_v58 = vpack.c.bf16 %v799_v44, %v798_v46  ;;  %v649_v63 = vadd.f32 %v648_v30, %v7365_v60  ;;  %v5886_v8 = vpop.f32.mrf.mxu1 }
 0x17c   : > { %v650_v37 = vpop.f32.mrf.mxu0  ;;  %v775_v10 = vadd.f32 %v5886_v8, %v7401_v31 }
 0x17d   : > { %5900 = vmatmul.mubr.msk.bf16.vlgmr.msra.gmra.mxu1 %vm898_vm1, %v7403_v33  ;;  %v997_v40 = vsel %vm898_vm1, %v7406_v35, 0  ;;  %v651_v50 = vadd.f32 %v650_v37, %v7362_v57  ;;  %v800_v11 = vmul.f32 0.17677669, %v649_v63  ;;  %v766_v15 = vpop.f32.mrf.mxu1 }
 0x17e   : > { %v652_v42 = vpop.f32.mrf.mxu0  ;;  %5904 = vmatpush3.bf16.xpose.msra.mxu1 %v997_v40  ;;  %5905 = vmatprep.mubr.msk.bf16.mxu1 %vm7078_vm0, %v9508_v49  ;;  %v7444_v20 = vpack.c.bf16 %v775_v10, %v772_v3  ;;  %v767_v21 = vadd.f32 %v766_v15, %v7401_v31 }
 0x17f   : > { %5909 = vmatprep.subr.bf16.mxu1 %v9508_v49  ;;  %v653_v59 = vadd.f32 %v652_v42, %v7365_v60  ;;  %v5889_v24 = vpop.f32.mrf.mxu1 }
 0x180   : > { %v654_v47 = vpop.f32.mrf.mxu0  ;;  %v7452_v29 = vpack.c.bf16 %v767_v21, %v764_v6  ;;  %v788_v34 = vadd.f32 %v5889_v24, %v7401_v31  ;;  %v732_v24 = vadd.f32 %v7385_v18, %v7401_v31 }
 0x181   : > { %v655_v51 = vadd.f32 %v654_v47, %v7362_v57  ;;  %v801_v9 = vmul.f32 0.17677669, %v653_v59  ;;  %v779_v36 = vpop.f32.mrf.mxu1 }
 0x182   : > { %v658_v54 = vpop.f32.mrf.mxu0  ;;  %v780_v38 = vadd.f32 %v779_v36, %v7401_v31 }
 0x183   : > { %v7427_v61 = vpack.c.bf16 %v655_v51, %v651_v50  ;;  %v7447_v25 = vpack.c.bf16 %v801_v9, %v800_v11  ;;  %v659_v30 = vadd.f32 %v658_v54, %v7365_v60  ;;  %v5890_v40 = vpop.f32.mrf.mxu1 }
 0x184   : > { %v660_v1 = vpop.f32.mrf.mxu0  ;;  %v791_v42 = vadd.f32 %v5890_v40, %v7401_v31 }
 0x185   : > { %5906 = vmatmul.mubr.msk.bf16.vlgmr.msra.gmra.mxu1 %vm898_vm1, %v7424_v58  ;;  %v1044_v5 = vsel %vm898_vm1, %v7427_v61, 0  ;;  %v661_v17 = vadd.f32 %v660_v1, %v7362_v57  ;;  %v802_v43 = vmul.f32 0.17677669, %v659_v30  ;;  %v782_v45 = vpop.f32.mrf.mxu1 }
 0x186   : > { %v662_v7 = vpop.f32.mrf.mxu0  ;;  %5910 = vmatpush3.bf16.xpose.msra.mxu1 %v1044_v5  ;;  %5911 = vmatprep.mubr.msk.bf16.mxu1 %vm7078_vm0, %v9508_v49  ;;  %v7467_v48 = vpack.c.bf16 %v791_v42, %v788_v34  ;;  %v783_v50 = vadd.f32 %v782_v45, %v7401_v31 }
 0x187   : > { %5921 = vmatprep.subr.bf16.mxu1 %v9508_v49  ;;  %v663_v27 = vadd.f32 %v662_v7, %v7365_v60 }
 0x188   : > { %v664_v12 = vpop.f32.mrf.mxu0  ;;  %9547 = vst [vmem:[#allocation21_spill] sm:$0xff] %v7467_v48  ;;  %v7475_v59 = vpack.c.bf16 %v783_v50, %v780_v38 }
 0x189   : > { %v665_v19 = vadd.f32 %v664_v12, %v7362_v57  ;;  %v803_v41 = vmul.f32 0.17677669, %v663_v27  ;;  %v735_v27 = vadd.f32 %v7397_v26, %v7401_v31 }
 0x18a   : > { %v668_v22 = vpop.f32.mrf.mxu0 }
 0x18b   : > { %v7450_v28 = vpack.c.bf16 %v665_v19, %v661_v17  ;;  %v7470_v53 = vpack.c.bf16 %v803_v41, %v802_v43  ;;  %v669_v1 = vadd.f32 %v668_v22, %v7365_v60  ;;  %v7508_v40 = vpack.c.bf16 %v735_v27, %v732_v24 }
 0x18c   : > { %v670_v32 = vpop.f32.mrf.mxu0 }
 0x18d   : > { %5912 = vmatmul.mubr.msk.bf16.vlgmr.msra.gmra.mxu1 %vm898_vm1, %v7447_v25  ;;  %v1091_v37 = vsel %vm898_vm1, %v7450_v28, 0  ;;  %v671_v46 = vadd.f32 %v670_v32, %v7362_v57  ;;  %v804_v7 = vmul.f32 0.17677669, %v669_v1 }
 0x18e   : > { %v672_v39 = vpop.f32.mrf.mxu0  ;;  %5916 = vmatpush3.bf16.xpose.msra.mxu0 %v1091_v37  ;;  %5923 = vmatprep.mubr.msk.bf16.mxu1 %vm7078_vm0, %v9508_v49 }
 0x18f   : > { %5927 = vmatprep.subr.bf16.mxu0 %v9508_v49  ;;  %v673_v54 = vadd.f32 %v672_v39, %v7365_v60 }
 0x190   : > { %v674_v44 = vpop.f32.mrf.mxu0 }
 0x191   : > { %v675_v47 = vadd.f32 %v674_v44, %v7362_v57  ;;  %v805_v5 = vmul.f32 0.17677669, %v673_v54 }
 0x192   : > { %v678_v51 = vpop.f32.mrf.mxu0 }
 0x193   : > { %v7473_v55 = vpack.c.bf16 %v675_v47, %v671_v46  ;;  %v7487_v11 = vpack.c.bf16 %v805_v5, %v804_v7  ;;  %v679_v19 = vadd.f32 %v678_v51, %v7365_v60 }
 0x194   : > { %v680_v63 = vpop.f32.mrf.mxu0 }
 0x195   : > { %5918 = vmatmul.mubr.msk.bf16.vlgmr.msra.gmra.mxu0 %vm898_vm1, %v7470_v53  ;;  %v1138_v3 = vsel %vm898_vm1, %v7473_v55, 0  ;;  %v681_v8 = vadd.f32 %v680_v63, %v7362_v57  ;;  %v806_v36 = vmul.f32 0.17677669, %v679_v19  ;;  %v836_v63 = vld [vmem:[%s7313_s23 + $0x2] sm:$0x1] }
 0x196   : > { %v682_v4 = vpop.f32.mrf.mxu0  ;;  %5922 = vmatpush3.bf16.xpose.msra.mxu1 %v1138_v3  ;;  %5929 = vmatprep.mubr.msk.bf16.mxu0 %vm7078_vm0, %v9508_v49  ;;  %vm844_vm6 = vcmp.gt.s32.totalorder %v836_v63, 0  ;;  %v837_v19 = vld [vmem:[%s7313_s23 + $0x3] sm:$0x1] }
 0x197   : > { %5933 = vmatprep.subr.bf16.mxu1 %v9508_v49  ;;  %v683_v12 = vadd.f32 %v682_v4, %v7365_v60  ;;  %vm845_vm8 = vcmp.gt.s32.totalorder %v837_v19, 0 }
 0x198   : > { %v684_v6 = vpop.f32.mrf.mxu0 }
 0x199   : > { %v685_v9 = vadd.f32 %v684_v6, %v7362_v57  ;;  %v807_v30 = vmul.f32 0.17677669, %v683_v12 }
 0x19a   : > { %v688_v10 = vpop.f32.mrf.mxu0 }
 0x19b   : > { %v7490_v15 = vpack.c.bf16 %v685_v9, %v681_v8  ;;  %v689_v37 = vadd.f32 %v688_v10, %v7365_v60  ;;  %v7510_v41 = vpack.c.bf16 %v807_v30, %v806_v36  ;;  %v852_v10 = vsel %vm844_vm6, 1, %v7076_v0 }
 0x19c   : > { %v690_v17 = vpop.f32.mrf.mxu0  ;;  %v869_v24 = vrot.slane %v852_v10, %v7360_v56 }
 0x19d   : > { %5924 = vmatmul.mubr.msk.bf16.vlgmr.msra.gmra.mxu1 %vm898_vm1, %v7487_v11  ;;  %v1185_v21 = vsel %vm898_vm1, %v7490_v15, 0  ;;  %v691_v32 = vadd.f32 %v690_v17, %v7362_v57  ;;  %v808_v26 = vmul.f32 0.17677669, %v689_v37  ;;  %v853_v37 = vsel %vm845_vm8, 1, %v7076_v0 }
 0x19e   : > { %v692_v22 = vpop.f32.mrf.mxu0  ;;  %5928 = vmatpush3.bf16.xpose.msra.mxu0 %v1185_v21  ;;  %5935 = vmatprep.mubr.msk.bf16.mxu1 %vm7078_vm0, %v9508_v49  ;;  %vm7579_vm9 = vcmp.eq.s32.totalorder %v869_v24, 1 }
 0x19f   : > { %5939 = vmatprep.subr.bf16.mxu0 %v9508_v49  ;;  %v693_v38 = vadd.f32 %v692_v22, %v7365_v60  ;;  %v743_v60 = vadd.f32 %v7394_v23, %v7401_v31 }
 0x1a0   : > { %v694_v34 = vpop.f32.mrf.mxu0 }
 0x1a1   : > { %v695_v39 = vadd.f32 %v694_v34, %v7362_v57  ;;  %v809_v42 = vmul.f32 0.17677669, %v693_v38  ;;  %v740_v57 = vadd.f32 %v7378_v13, %v7401_v31  ;;  %v834_v13 = vld [vmem:[%s7313_s23] sm:$0x1]  ;;  %v835_v31 = vld [vmem:[%s7313_s23 + $0x1] sm:$0x1] }
 0x1a2   : > { %vm842_vm2 = vcmp.gt.s32.totalorder %v834_v13, 0  ;;  %vm843_vm3 = vcmp.gt.s32.totalorder %v835_v31, 0 }
 0x1a3   : > { %v7512_v18 = vpack.c.bf16 %v695_v39, %v691_v32  ;;  %v7527_v44 = vpack.c.bf16 %v809_v42, %v808_v26  ;;  %v7529_v45 = vpack.c.bf16 %v743_v60, %v740_v57  ;;  %v850_v23 = vsel %vm842_vm2, 1, %v7076_v0  ;;  %v838_v26 = vld [vmem:[%s7313_s23 + $0x4] sm:$0x1] }
 0x1a4   : > { %v861_v46 = vrot.slane %v850_v23, %v7360_v56  ;;  %v851_v50 = vsel %vm843_vm3, 1, %v7076_v0  ;;  %v873_v57 = vrot.slane %v853_v37, %v7360_v56  ;;  %vm846_vm10 = vcmp.gt.s32.totalorder %v838_v26, 0 }
 0x1a5   : > { %5930 = vmatmul.mubr.msk.bf16.vlgmr.msra.gmra.mxu0 %vm898_vm1, %v7510_v41  ;;  %v1232_v43 = vsel %vm898_vm1, %v7512_v18, 0  ;;  %v865_v4 = vrot.slane %v851_v50, %v7360_v56  ;;  %v854_v50 = vsel %vm846_vm10, 1, %v7076_v0 }
 0x1a6   : > { %5934 = vmatpush3.bf16.xpose.msra.mxu1 %v1232_v43  ;;  %5940 = vmatpush3.bf16.msra.mxu0 %v7508_v40  ;;  %vm7541_vm4 = vcmp.eq.s32.totalorder %v861_v46, 1  ;;  %vm7598_vm11 = vcmp.eq.s32.totalorder %v873_v57, 1 }
 0x1a7   : > { %5945 = vmatprep.subr.bf16.mxu1 %v9508_v49  ;;  %5941 = vmatprep.mubr.msk.bf16.mxu0 %vm7078_vm0, %v9508_v49  ;;  %vm7560_vm7 = vcmp.eq.s32.totalorder %v865_v4, 1 }
 0x1a8   : > { %5951 = vmatprep.subr.bf16.mxu0 %v9508_v49 }
 0x1ad   : > { %5936 = vmatmul.mubr.msk.bf16.vlgmr.msra.gmra.mxu1 %vm898_vm1, %v7527_v44 }
 0x1ae   : > { %5946 = vmatpush3.bf16.msra.mxu1 %v7529_v45  ;;  %5947 = vmatprep.mubr.msk.bf16.mxu1 %vm7078_vm0, %v9508_v49 }
 0x1af   : > { %5957 = vmatprep.subr.bf16.mxu1 %v9508_v49 }
 0x235   : > { %v939_v51 = vpop.f32.mrf.mxu1 }
 0x236   : > { %v7548_v54 = vsel %vm7541_vm4, -1e+18, %v939_v51 }
 0x237   : > { %v5895_v1 = vpop.f32.mrf.mxu1  ;;  %v1292_v3 = vsel %vm1291_vm5, %v7548_v54, -inf }
 0x238   : > { %1293 = vmax.xlane.f32.xlu0 %v1292_v3  ;;  %v839_v1 = vld [vmem:[%s7313_s23 + $0x5] sm:$0x1] }
 0x239   : > { %v942_v5 = vpop.f32.mrf.mxu1  ;;  %vm847_vm12 = vcmp.gt.s32.totalorder %v839_v1, 0 }
 0x23a   : > { %v7556_v6 = vsel %vm7541_vm4, -1e+18, %v942_v5  ;;  %v877_v5 = vrot.slane %v854_v50, %v7360_v56  ;;  %v841_v50 = vld [vmem:[%s7313_s23 + $0x7] sm:$0x1] }
 0x23b   : > { %v5896_v7 = vpop.f32.mrf.mxu1  ;;  %v1295_v8 = vsel %vm1291_vm5, %v7556_v6, -inf  ;;  %vm849_vm2 = vcmp.gt.s32.totalorder %v841_v50, 0 }
 0x23c   : > { %1296 = vmax.xlane.f32.xlu0 %v1295_v8  ;;  %vm7617_vm13 = vcmp.eq.s32.totalorder %v877_v5, 1 }
 0x23d   : > { %v986_v12 = vpop.f32.mrf.mxu1 }
 0x23e   : > { %v7567_v17 = vsel %vm7560_vm7, -1e+18, %v986_v12 }
 0x23f   : > { %v5901_v21 = vpop.f32.mrf.mxu1  ;;  %v1298_v22 = vsel %vm1291_vm5, %v7567_v17, -inf }
 0x240   : > { %1299 = vmax.xlane.f32.xlu1 %v1298_v22  ;;  %v855_v21 = vsel %vm847_vm12, 1, %v7076_v0 }
 0x241   : > { %v989_v27 = vpop.f32.mrf.mxu1  ;;  %v881_v37 = vrot.slane %v855_v21, %v7360_v56  ;;  %v857_v21 = vsel %vm849_vm2, 1, %v7076_v0 }
 0x242   : > { %v7575_v30 = vsel %vm7560_vm7, -1e+18, %v989_v27  ;;  %v840_v27 = vld [vmem:[%s7313_s23 + $0x6] sm:$0x1]  ;;  %s6960_s23 = sshll.u32 %s7082_s15, 4  ;;  %s6961_s23 = int_to_ptr.vmem [resolvable:$false] %s6960_s23 }
 0x243   : > { %v5902_v32 = vpop.f32.mrf.mxu1  ;;  %v1301_v34 = vsel %vm1291_vm5, %v7575_v30, -inf  ;;  %vm848_vm14 = vcmp.gt.s32.totalorder %v840_v27, 0  ;;  %vm7636_vm15 = vcmp.eq.s32.totalorder %v881_v37, 1  ;;  %v889_v37 = vrot.slane %v857_v21, %v7360_v56  ;;  %s6962_s30 = scalar_lea.vmem %s6961_s23, 16384  ;;  %p6963_p5 = scmp.lt.s32.totalorder %s9360_s21, %s6961_s23 }
 0x244   : > { %1302 = vmax.xlane.f32.xlu1 %v1301_v34  ;;  %p6964_p1 = scmp.lt.s32.totalorder %s6962_s30, %s6956_s9 }
 0x245   : > { %v1033_v38 = vpop.f32.mrf.mxu1  ;;  %vm7673_vm6 = vcmp.eq.s32.totalorder %v889_v37, 1 }
 0x246   : > { %v7586_v39 = vsel %vm7579_vm9, -1e+18, %v1033_v38  ;;  %p6965_p4 = por %p6964_p1, %p6963_p5 }
 0x247   : > { %v5907_v42 = vpop.f32.mrf.mxu1  ;;  %v1304_v43 = vsel %vm1291_vm5, %v7586_v39, -inf }
 0x248   : > { %1305 = vmax.xlane.f32.xlu0 %v1304_v43  ;;  %p6966_p7 = pnand %p6965_p4, %p6959_p13 }
 0x249   : > { %v1036_v60 = vpop.f32.mrf.mxu1 }
 0x24a   : > { %v7594_v13 = vsel %vm7579_vm9, -1e+18, %v1036_v60  ;;  %v856_v60 = vsel %vm848_vm14, 1, %v7076_v0 }
 0x24b   : > { %v5908_v23 = vpop.f32.mrf.mxu1  ;;  %v1307_v31 = vsel %vm1291_vm5, %v7594_v13, -inf }
 0x24c   : > { %1308 = vmax.xlane.f32.xlu1 %v1307_v31 }
 0x24d   : > { %v1080_v51 = vpop.f32.mrf.mxu1 }
 0x24e   : > { %v7605_v63 = vsel %vm7598_vm11, -1e+18, %v1080_v51 }
 0x24f   : > { %v5913_v3 = vpop.f32.mrf.mxu1  ;;  %v1310_v4 = vsel %vm1291_vm5, %v7605_v63, -inf }
 0x250   : > { %1311 = vmax.xlane.f32.xlu0 %v1310_v4  ;;  %v885_v3 = vrot.slane %v856_v60, %v7360_v56 }
 0x251   : > { %v1083_v7 = vpop.f32.mrf.mxu1 }
 0x252   : > { %v7613_v8 = vsel %vm7598_vm11, -1e+18, %v1083_v7  ;;  %vm7655_vm3 = vcmp.eq.s32.totalorder %v885_v3, 1 }
 0x253   : > { %v5914_v10 = vpop.f32.mrf.mxu1  ;;  %v1313_v12 = vsel %vm1291_vm5, %v7613_v8, -inf }
 0x254   : > { %1314 = vmax.xlane.f32.xlu1 %v1313_v12 }
 0x255   : > { %v1127_v22 = vpop.f32.mrf.mxu0 }
 0x256   : > { %v7624_v24 = vsel %vm7617_vm13, -1e+18, %v1127_v22 }
 0x257   : > { %v5919_v32 = vpop.f32.mrf.mxu0  ;;  %v1316_v34 = vsel %vm1291_vm5, %v7624_v24, -inf }
 0x258   : > { %1317 = vmax.xlane.f32.xlu0 %v1316_v34 }
 0x259   : > { %v1130_v38 = vpop.f32.mrf.mxu0 }
 0x25a   : > { %v7632_v26 = vsel %vm7617_vm13, -1e+18, %v1130_v38 }
 0x25b   : > { %v5920_v42 = vpop.f32.mrf.mxu0  ;;  %v1319_v43 = vsel %vm1291_vm5, %v7632_v26, -inf }
 0x25c   : > { %1320 = vmax.xlane.f32.xlu1 %v1319_v43  ;;  %v6571_v43 = vld [vmem:[#allocation8 + $0x20] sm:$0xff]  }
 0x25d   : > { %v1174_v23 = vpop.f32.mrf.mxu1 }
 0x25e   : > { %v7643_v31 = vsel %vm7636_vm15, -1e+18, %v1174_v23 }
 0x25f   : > { %v5925_v51 = vpop.f32.mrf.mxu1  ;;  %v1322_v1 = vsel %vm1291_vm5, %v7643_v31, -inf }
 0x260   : > { %1323 = vmax.xlane.f32.xlu0 %v1322_v1 }
 0x261   : > { %v1177_v4 = vpop.f32.mrf.mxu1 }
 0x262   : > { %v7651_v5 = vsel %vm7636_vm15, -1e+18, %v1177_v4 }
 0x263   : > { %v1325_v7 = vsel %vm1291_vm5, %v7651_v5, -inf  ;;  %v5926_v12 = vpop.f32.mrf.mxu1 }
 0x264   : > { %1326 = vmax.xlane.f32.xlu1 %v1325_v7 }
 0x265   : > { %v1221_v22 = vpop.f32.mrf.mxu0 }
 0x266   : > { %v7662_v27 = vsel %vm7655_vm3, -1e+18, %v1221_v22 }
 0x267   : > { %v5931_v32 = vpop.f32.mrf.mxu0  ;;  %v1328_v34 = vsel %vm1291_vm5, %v7662_v27, -inf }
 0x268   : > { %1329 = vmax.xlane.f32.xlu0 %v1328_v34 }
 0x269   : > { %v1224_v38 = vpop.f32.mrf.mxu0 }
 0x26a   : > { %v7669_v42 = vsel %vm7655_vm3, -1e+18, %v1224_v38 }
 0x26b   : > { %v1331_v0 = vsel %vm1291_vm5, %v7669_v42, -inf  ;;  %v5932_v60 = vpop.f32.mrf.mxu0 }
 0x26c   : > { %1332 = vmax.xlane.f32.xlu1 %v1331_v0 }
 0x26d   : > { %v1268_v23 = vpop.f32.mrf.mxu1 }
 0x26e   : > { %v7679_v50 = vsel %vm7673_vm6, -1e+18, %v1268_v23 }
 0x26f   : > { %v5937_v56 = vpop.f32.mrf.mxu1  ;;  %v1334_v51 = vsel %vm1291_vm5, %v7679_v50, -inf }
 0x270   : > { %1335 = vmax.xlane.f32.xlu0 %v1334_v51 }
 0x271   : > { %v1271_v1 = vpop.f32.mrf.mxu1 }
 0x272   : > { %v7685_v3 = vsel %vm7673_vm6, -1e+18, %v1271_v1 }
 0x273   : > { %v1337_v4 = vsel %vm1291_vm5, %v7685_v3, -inf  ;;  %v5938_v7 = vpop.f32.mrf.mxu1 }
 0x274   : > { %1338 = vmax.xlane.f32.xlu1 %v1337_v4 }
 0x2c1   : > { %v1294_v12 = vpop.xlane.xlu0 %1293 }
 0x2c2   : > { %v1340_v21 = vsub.f32 %v7548_v54, %v1294_v12 }
 0x2c4   : > { %v1356_v22 = vmul.f32 1.442695, %v1340_v21 }
 0x2c5   : > { %v1297_v32 = vpop.xlane.xlu0 %1296 }
 0x2c6   : > { %6576 = vpow2.f32 %v1356_v22  ;;  %v1341_v34 = vsub.f32 %v7556_v6, %v1297_v32 }
 0x2c8   : > { %v1358_v37 = vmul.f32 1.442695, %v1341_v34 }
 0x2c9   : > { %v1300_v38 = vpop.xlane.xlu1 %1299 }
 0x2ca   : > { %6578 = vpow2.f32 %v1358_v37  ;;  %v1342_v0 = vsub.f32 %v7567_v17, %v1300_v38 }
 0x2cc   : > { %v1360_v60 = vmul.f32 1.442695, %v1342_v0 }
 0x2cd   : > { %v1303_v23 = vpop.xlane.xlu1 %1302 }
 0x2ce   : > { %6580 = vpow2.f32 %v1360_v60  ;;  %v1343_v56 = vsub.f32 %v7575_v30, %v1303_v23 }
 0x2d0   : > { %v1362_v51 = vmul.f32 1.442695, %v1343_v56 }
 0x2d1   : > { %v1306_v1 = vpop.xlane.xlu0 %1305 }
 0x2d2   : > { %6582 = vpow2.f32 %v1362_v51  ;;  %v1344_v54 = vsub.f32 %v7586_v39, %v1306_v1 }
 0x2d3   : > { %v7694_v4 = vpop.eup %6576 }
 0x2d4   : > { %v1364_v7 = vmul.f32 1.442695, %v1344_v54  ;;  %v1388_v6 = vsel %vm1291_vm5, %v7694_v4, 0.0 }
 0x2d5   : > { %v1309_v12 = vpop.xlane.xlu1 %1308  ;;  %1389 = vadd.xlane.f32.xlu0 %v1388_v6 }
 0x2d6   : > { %6584 = vpow2.f32 %v1364_v7  ;;  %v1345_v17 = vsub.f32 %v7594_v13, %v1309_v12 }
 0x2d7   : > { %v7699_v21 = vpop.eup %6578 }
 0x2d8   : > { %v1366_v22 = vmul.f32 1.442695, %v1345_v17  ;;  %v1391_v30 = vsel %vm1291_vm5, %v7699_v21, 0.0 }
 0x2d9   : > { %v1312_v32 = vpop.xlane.xlu0 %1311  ;;  %1392 = vadd.xlane.f32.xlu1 %v1391_v30 }
 0x2da   : > { %6586 = vpow2.f32 %v1366_v22  ;;  %v1346_v39 = vsub.f32 %v7605_v63, %v1312_v32 }
 0x2db   : > { %v7704_v34 = vpop.eup %6580 }
 0x2dc   : > { %v1368_v37 = vmul.f32 1.442695, %v1346_v39  ;;  %v1394_v38 = vsel %vm1291_vm5, %v7704_v34, 0.0 }
 0x2dd   : > { %v1315_v0 = vpop.xlane.xlu1 %1314  ;;  %1395 = vadd.xlane.f32.xlu0 %v1394_v38 }
 0x2de   : > { %6588 = vpow2.f32 %v1368_v37  ;;  %v1347_v13 = vsub.f32 %v7613_v8, %v1315_v0 }
 0x2df   : > { %v7709_v60 = vpop.eup %6582 }
 0x2e0   : > { %v1370_v23 = vmul.f32 1.442695, %v1347_v13  ;;  %v1397_v56 = vsel %vm1291_vm5, %v7709_v60, 0.0 }
 0x2e1   : > { %v1318_v51 = vpop.xlane.xlu0 %1317  ;;  %1398 = vadd.xlane.f32.xlu1 %v1397_v56 }
 0x2e2   : > { %6590 = vpow2.f32 %v1370_v23  ;;  %v1348_v63 = vsub.f32 %v7624_v24, %v1318_v51 }
 0x2e3   : > { %v7714_v1 = vpop.eup %6584 }
 0x2e4   : > { %v1372_v54 = vmul.f32 1.442695, %v1348_v63  ;;  %v1400_v7 = vsel %vm1291_vm5, %v7714_v1, 0.0 }
 0x2e5   : > { %v1321_v6 = vpop.xlane.xlu1 %1320  ;;  %1401 = vadd.xlane.f32.xlu0 %v1400_v7 }
 0x2e6   : > { %6592 = vpow2.f32 %v1372_v54  ;;  %v1349_v8 = vsub.f32 %v7632_v26, %v1321_v6 }
 0x2e7   : > { %v7719_v12 = vpop.eup %6586 }
 0x2e8   : > { %v1374_v17 = vmul.f32 1.442695, %v1349_v8  ;;  %v1403_v22 = vsel %vm1291_vm5, %v7719_v12, 0.0 }
 0x2e9   : > { %v1324_v30 = vpop.xlane.xlu0 %1323  ;;  %1404 = vadd.xlane.f32.xlu1 %v1403_v22 }
 0x2ea   : > { %6594 = vpow2.f32 %v1374_v17  ;;  %v1350_v24 = vsub.f32 %v7643_v31, %v1324_v30 }
 0x2eb   : > { %v7724_v32 = vpop.eup %6588 }
 0x2ec   : > { %v1376_v39 = vmul.f32 1.442695, %v1350_v24  ;;  %v1406_v37 = vsel %vm1291_vm5, %v7724_v32, 0.0 }
 0x2ed   : > { %v1327_v38 = vpop.xlane.xlu1 %1326  ;;  %1407 = vadd.xlane.f32.xlu0 %v1406_v37 }
 0x2ee   : > { %6596 = vpow2.f32 %v1376_v39  ;;  %v1351_v26 = vsub.f32 %v7651_v5, %v1327_v38 }
 0x2ef   : > { %v7729_v0 = vpop.eup %6590 }
 0x2f0   : > { %v1378_v13 = vmul.f32 1.442695, %v1351_v26  ;;  %v1409_v23 = vsel %vm1291_vm5, %v7729_v0, 0.0 }
 0x2f1   : > { %v1330_v56 = vpop.xlane.xlu0 %1329  ;;  %1410 = vadd.xlane.f32.xlu1 %v1409_v23 }
 0x2f2   : > { %6598 = vpow2.f32 %v1378_v13  ;;  %v1352_v31 = vsub.f32 %v7662_v27, %v1330_v56 }
 0x2f3   : > { %v7734_v51 = vpop.eup %6592 }
 0x2f4   : > { %v1380_v63 = vmul.f32 1.442695, %v1352_v31  ;;  %v1412_v54 = vsel %vm1291_vm5, %v7734_v51, 0.0 }
 0x2f5   : > { %v1333_v7 = vpop.xlane.xlu1 %1332  ;;  %1413 = vadd.xlane.f32.xlu0 %v1412_v54 }
 0x2f6   : > { %6600 = vpow2.f32 %v1380_v63  ;;  %v1353_v5 = vsub.f32 %v7669_v42, %v1333_v7 }
 0x2f7   : > { %v7739_v6 = vpop.eup %6594 }
 0x2f8   : > { %v1382_v8 = vmul.f32 1.442695, %v1353_v5  ;;  %v1415_v17 = vsel %vm1291_vm5, %v7739_v6, 0.0 }
 0x2f9   : > { %v1336_v22 = vpop.xlane.xlu0 %1335  ;;  %1416 = vadd.xlane.f32.xlu1 %v1415_v17 }
 0x2fa   : > { %6602 = vpow2.f32 %v1382_v8  ;;  %v1354_v27 = vsub.f32 %v7679_v50, %v1336_v22 }
 0x2fb   : > { %v7744_v30 = vpop.eup %6596 }
 0x2fc   : > { %v1384_v24 = vmul.f32 1.442695, %v1354_v27  ;;  %v1418_v39 = vsel %vm1291_vm5, %v7744_v30, 0.0 }
 0x2fd   : > { %1419 = vadd.xlane.f32.xlu0 %v1418_v39  ;;  %v1339_v31 = vpop.xlane.xlu1 %1338 }
 0x2fe   : > { %6604 = vpow2.f32 %v1384_v24  ;;  %v1355_v63 = vsub.f32 %v7685_v3, %v1339_v31 }
 0x2ff   : > { %v7748_v42 = vpop.eup %6598 }
 0x300   : > { %v1421_v37 = vsel %vm1291_vm5, %v7748_v42, 0.0  ;;  %v1386_v54 = vmul.f32 1.442695, %v1355_v63 }
 0x301   : > { %1422 = vadd.xlane.f32.xlu1 %v1421_v37 }
 0x302   : > { %6606 = vpow2.f32 %v1386_v54 }
 0x303   : > { %v7752_v38 = vpop.eup %6600 }
 0x304   : > { %v1424_v26 = vsel %vm1291_vm5, %v7752_v38, 0.0 }
 0x305   : > { %1425 = vadd.xlane.f32.xlu0 %v1424_v26 }
 0x307   : > { %v7756_v50 = vpop.eup %6602 }
 0x308   : > { %v1427_v13 = vsel %vm1291_vm5, %v7756_v50, 0.0 }
 0x309   : > { %1428 = vadd.xlane.f32.xlu1 %v1427_v13 }
 0x30b   : > { %v7760_v23 = vpop.eup %6604 }
 0x30c   : > { %v1430_v56 = vsel %vm1291_vm5, %v7760_v23, 0.0 }
 0x30d   : > { %1431 = vadd.xlane.f32.xlu0 %v1430_v56 }
 0x30f   : > { %v7783_v7 = vpop.eup %6606 }
 0x310   : > { %v1433_v3 = vsel %vm1291_vm5, %v7783_v7, 0.0 }
 0x31a   : > { %1901 = vrot.lane.b32.xlu1 %v7383_v16, %s7079_s22 }
 0x31e   : > { %1845 = vrot.lane.b32.xlu1 %v7380_v14, %s7079_s22 }
 0x323   : > { %1848 = vrot.lane.b32.xlu0 %v7370_v2, %s7079_s22 }
 0x327   : > { %1898 = vrot.lane.b32.xlu0 %v7403_v33, %s7079_s22 }
 0x32b   : > { %1951 = vrot.lane.b32.xlu0 %v7424_v58, %s7079_s22 }
 0x32f   : > { %2004 = vrot.lane.b32.xlu0 %v7447_v25, %s7079_s22 }
 0x333   : > { %2057 = vrot.lane.b32.xlu0 %v7470_v53, %s7079_s22 }
 0x337   : > { %2110 = vrot.lane.b32.xlu0 %v7487_v11, %s7079_s22 }
 0x33b   : > { %2163 = vrot.lane.b32.xlu0 %v7510_v41, %s7079_s22 }
 0x342   : > { %1434 = vadd.xlane.f32.xlu1 %v1433_v3 }
 0x353   : > { %1954 = vrot.lane.b32.xlu1 %v7406_v35, %s7079_s22 }
 0x357   : > { %2007 = vrot.lane.b32.xlu1 %v7427_v61, %s7079_s22 }
 0x35b   : > { %2060 = vrot.lane.b32.xlu1 %v7450_v28, %s7079_s22 }
 0x35e   : > { %v1390_v5 = vpop.xlane.xlu0 %1389 }
 0x35f   : > { %6608 = vrcp.f32 %v1390_v5  ;;  %2113 = vrot.lane.b32.xlu1 %v7473_v55, %s7079_s22 }
 0x362   : > { %v1393_v8 = vpop.xlane.xlu1 %1392 }
 0x363   : > { %6610 = vrcp.f32 %v1393_v8  ;;  %2166 = vrot.lane.b32.xlu1 %v7490_v15, %s7079_s22 }
 0x366   : > { %v1396_v17 = vpop.xlane.xlu0 %1395 }
 0x367   : > { %6612 = vrcp.f32 %v1396_v17  ;;  %2219 = vrot.lane.b32.xlu1 %v7512_v18, %s7079_s22 }
 0x36a   : > { %v1399_v22 = vpop.xlane.xlu1 %1398 }
 0x36b   : > { %6614 = vrcp.f32 %v1399_v22  ;;  %2216 = vrot.lane.b32.xlu1 %v7527_v44, %s7079_s22 }
 0x36c   : > { %v6609_v27 = vpop.eup %6608 }
 0x36d   : > { %v1452_v24 = vmul.f32 %v6609_v27, %v7694_v4 }
 0x36e   : > { %v1402_v39 = vpop.xlane.xlu0 %1401 }
 0x36f   : > { %6616 = vrcp.f32 %v1402_v39  ;;  %4868 = vst.msk [vmem:[%s7803_s18] sm:$0xff] %vm1291_vm5, %v1452_v24  ;;  %v1468_v56 = vsel %vm7541_vm4, 0.0, %v1452_v24 }
 0x370   : > { %v6611_v37 = vpop.eup %6610 }
 0x371   : > { %v1453_v26 = vmul.f32 %v6611_v37, %v7699_v21 }
 0x372   : > { %v1405_v13 = vpop.xlane.xlu1 %1404 }
 0x373   : > { %6618 = vrcp.f32 %v1405_v13  ;;  %v1469_v4 = vsel %vm7541_vm4, 0.0, %v1453_v26  ;;  %4869 = vst.msk [vmem:[%s7803_s18 + $0x8] sm:$0xff] %vm1291_vm5, %v1453_v26 }
 0x374   : > { %v6613_v31 = vpop.eup %6612  ;;  %v1484_v63 = vpack.c.bf16 %v1469_v4, %v1468_v56 }
 0x375   : > { %v1454_v54 = vmul.f32 %v6613_v31, %v7704_v34 }
 0x376   : > { %v1408_v3 = vpop.xlane.xlu0 %1407  ;;  %5942 = vmatmul.mubr.msk.bf16.vlgmr.msra.gmra.mxu0 %vm1291_vm5, %v1484_v63 }
 0x377   : > { %6620 = vrcp.f32 %v1408_v3  ;;  %5952 = vmatpush3.bf16.msra.mxu0 %v7429_v62  ;;  %4876 = vst.msk [vmem:[%s7803_s18 + $0x40] sm:$0xff] %vm1291_vm5, %v1454_v54  ;;  %5953 = vmatprep.mubr.msk.bf16.mxu0 %vm7078_vm0, %v9508_v49  ;;  %v1470_v34 = vsel %vm7560_vm7, 0.0, %v1454_v54 }
 0x378   : > { %v6615_v21 = vpop.eup %6614  ;;  %5963 = vmatprep.subr.bf16.mxu0 %v9508_v49 }
 0x379   : > { %v1455_v5 = vmul.f32 %v6615_v21, %v7709_v60 }
 0x37a   : > { %v1411_v8 = vpop.xlane.xlu1 %1410 }
 0x37b   : > { %6622 = vrcp.f32 %v1411_v8  ;;  %v1471_v17 = vsel %vm7560_vm7, 0.0, %v1455_v5  ;;  %4877 = vst.msk [vmem:[%s7803_s18 + $0x48] sm:$0xff] %vm1291_vm5, %v1455_v5 }
 0x37c   : > { %v6617_v22 = vpop.eup %6616  ;;  %v1485_v27 = vpack.c.bf16 %v1471_v17, %v1470_v34 }
 0x37d   : > { %v1456_v24 = vmul.f32 %v6617_v22, %v7714_v1 }
 0x37e   : > { %v1414_v39 = vpop.xlane.xlu0 %1413  ;;  %5948 = vmatmul.mubr.msk.bf16.vlgmr.msra.gmra.mxu1 %vm1291_vm5, %v1485_v27 }
 0x37f   : > { %6624 = vrcp.f32 %v1414_v39  ;;  %5958 = vmatpush3.bf16.msra.mxu1 %v7421_v52  ;;  %4884 = vst.msk [vmem:[%s7803_s18 + $0x80] sm:$0xff] %vm1291_vm5, %v1456_v24  ;;  %5959 = vmatprep.mubr.msk.bf16.mxu1 %vm7078_vm0, %v9508_v49  ;;  %v1472_v1 = vsel %vm7579_vm9, 0.0, %v1456_v24 }
 0x380   : > { %v6619_v60 = vpop.eup %6618  ;;  %5969 = vmatprep.subr.bf16.mxu1 %v9508_v49 }
 0x381   : > { %v1457_v37 = vmul.f32 %v6619_v60, %v7719_v12 }
 0x382   : > { %v1417_v26 = vpop.xlane.xlu1 %1416 }
 0x383   : > { %6626 = vrcp.f32 %v1417_v26  ;;  %v1473_v13 = vsel %vm7579_vm9, 0.0, %v1457_v37  ;;  %4885 = vst.msk [vmem:[%s7803_s18 + $0x88] sm:$0xff] %vm1291_vm5, %v1457_v37 }
 0x384   : > { %v6621_v56 = vpop.eup %6620  ;;  %v1486_v4 = vpack.c.bf16 %v1473_v13, %v1472_v1 }
 0x385   : > { %v1458_v31 = vmul.f32 %v6621_v56, %v7724_v32 }
 0x386   : > { %v1420_v63 = vpop.xlane.xlu0 %1419  ;;  %5954 = vmatmul.mubr.msk.bf16.vlgmr.msra.gmra.mxu0 %vm1291_vm5, %v1486_v4 }
 0x387   : > { %6628 = vrcp.f32 %v1420_v63  ;;  %5964 = vmatpush3.bf16.msra.mxu0 %v7452_v29  ;;  %4892 = vst.msk [vmem:[%s7803_s18 + $0xc0] sm:$0xff] %vm1291_vm5, %v1458_v31  ;;  %5965 = vmatprep.mubr.msk.bf16.mxu0 %vm7078_vm0, %v9508_v49  ;;  %v1474_v32 = vsel %vm7598_vm11, 0.0, %v1458_v31 }
 0x388   : > { %v6623_v12 = vpop.eup %6622  ;;  %5975 = vmatprep.subr.bf16.mxu0 %v9508_v49 }
 0x389   : > { %v1459_v54 = vmul.f32 %v6623_v12, %v7729_v0 }
 0x38a   : > { %v1423_v3 = vpop.xlane.xlu1 %1422 }
 0x38b   : > { %6630 = vrcp.f32 %v1423_v3  ;;  %v1475_v21 = vsel %vm7598_vm11, 0.0, %v1459_v54  ;;  %4893 = vst.msk [vmem:[%s7803_s18 + $0xc8] sm:$0xff] %vm1291_vm5, %v1459_v54 }
 0x38c   : > { %v6625_v5 = vpop.eup %6624  ;;  %v1487_v8 = vpack.c.bf16 %v1475_v21, %v1474_v32 }
 0x38d   : > { %v1460_v34 = vmul.f32 %v6625_v5, %v7734_v51 }
 0x38e   : > { %v1426_v17 = vpop.xlane.xlu0 %1425  ;;  %5960 = vmatmul.mubr.msk.bf16.vlgmr.msra.gmra.mxu1 %vm1291_vm5, %v1487_v8 }
 0x38f   : > { %6632 = vrcp.f32 %v1426_v17  ;;  %5970 = vmatpush3.bf16.msra.mxu1 %v7444_v20  ;;  %4900 = vst.msk [vmem:[%s7803_s18 + $0x100] sm:$0xff] %vm1291_vm5, %v1460_v34  ;;  %5971 = vmatprep.mubr.msk.bf16.mxu1 %vm7078_vm0, %v9508_v49  ;;  %v1476_v51 = vsel %vm7617_vm13, 0.0, %v1460_v34 }
 0x390   : > { %v6627_v0 = vpop.eup %6626  ;;  %5981 = vmatprep.subr.bf16.mxu1 %v9508_v49 }
 0x391   : > { %v1461_v22 = vmul.f32 %v6627_v0, %v7739_v6 }
 0x392   : > { %v1429_v27 = vpop.xlane.xlu1 %1428 }
 0x393   : > { %6634 = vrcp.f32 %v1429_v27  ;;  %v1477_v24 = vsel %vm7617_vm13, 0.0, %v1461_v22  ;;  %4901 = vst.msk [vmem:[%s7803_s18 + $0x108] sm:$0xff] %vm1291_vm5, %v1461_v22 }
 0x394   : > { %v6629_v39 = vpop.eup %6628  ;;  %v1488_v60 = vpack.c.bf16 %v1477_v24, %v1476_v51 }
 0x395   : > { %v1462_v37 = vmul.f32 %v6629_v39, %v7744_v30 }
 0x396   : > { %v1432_v26 = vpop.xlane.xlu0 %1431  ;;  %5966 = vmatmul.mubr.msk.bf16.vlgmr.msra.gmra.mxu0 %vm1291_vm5, %v1488_v60  ;;  %v1902_v8 = vpop.permute.xlu1 %1901 }
 0x397   : > { %6636 = vrcp.f32 %v1432_v26  ;;  %5976 = vmatpush3.bf16.msra.mxu0 %v7475_v59  ;;  %4908 = vst.msk [vmem:[%s7803_s18 + $0x140] sm:$0xff] %vm1291_vm5, %v1462_v37  ;;  %5977 = vmatprep.mubr.msk.bf16.mxu0 %vm7078_vm0, %v9508_v49  ;;  %v1478_v30 = vsel %vm7636_vm15, 0.0, %v1462_v37 }
 0x398   : > { %v6631_v6 = vpop.eup %6630  ;;  %5987 = vmatprep.subr.bf16.mxu0 %v9508_v49 }
 0x399   : > { %v1463_v1 = vmul.f32 %v6631_v6, %v7748_v42 }
 0x39a   : > { %v1849_v12 = vpop.permute.xlu0 %1848 }
 0x39b   : > { %v1479_v13 = vsel %vm7636_vm15, 0.0, %v1463_v1  ;;  %4909 = vst.msk [vmem:[%s7803_s18 + $0x148] sm:$0xff] %vm1291_vm5, %v1463_v1  ;;  %v1854_v5 = vsel %vm898_vm1, %v1849_v12, 0 }
 0x39c   : > { %v6633_v56 = vpop.eup %6632  ;;  %v1489_v4 = vpack.c.bf16 %v1479_v13, %v1478_v30 }
 0x39d   : > { %v1464_v31 = vmul.f32 %v6633_v56, %v7752_v38  ;;  %v1907_v56 = vsel %vm898_vm1, %v1902_v8, 0 }
 0x39e   : > { %5972 = vmatmul.mubr.msk.bf16.vlgmr.msra.gmra.mxu1 %vm1291_vm5, %v1489_v4 }
 0x39f   : > { %5982 = vmatpush3.bf16.msra.mxu1 %v7467_v48  ;;  %4916 = vst.msk [vmem:[%s7803_s18 + $0x180] sm:$0xff] %vm1291_vm5, %v1464_v31  ;;  %5983 = vmatprep.mubr.msk.bf16.mxu1 %vm7078_vm0, %v9508_v49  ;;  %v1480_v54 = vsel %vm7655_vm3, 0.0, %v1464_v31 }
 0x3a0   : > { %v6635_v42 = vpop.eup %6634  ;;  %5993 = vmatprep.subr.bf16.mxu1 %v9508_v49 }
 0x3a1   : > { %v1465_v63 = vmul.f32 %v6635_v42, %v7756_v50  ;;  %v1846_v50 = vpop.permute.xlu1 %1845 }
 0x3a3   : > { %v1481_v38 = vsel %vm7655_vm3, 0.0, %v1465_v63  ;;  %4917 = vst.msk [vmem:[%s7803_s18 + $0x188] sm:$0xff] %vm1291_vm5, %v1465_v63 }
 0x3a4   : > { %v6637_v3 = vpop.eup %6636  ;;  %v1490_v32 = vpack.c.bf16 %v1481_v38, %v1480_v54 }
 0x3a5   : > { %v1466_v21 = vmul.f32 %v6637_v3, %v7760_v23  ;;  %v1899_v23 = vpop.permute.xlu0 %1898 }
 0x3a6   : > { %5978 = vmatmul.mubr.msk.bf16.vlgmr.msra.gmra.mxu0 %vm1291_vm5, %v1490_v32 }
 0x3a7   : > { %5988 = vmatpush3.bf16.xpose.msra.mxu0 %v1854_v5  ;;  %5989 = vmatprep.mubr.msk.bf16.mxu0 %vm7078_vm0, %v9508_v49  ;;  %4924 = vst.msk [vmem:[%s7803_s18 + $0x1c0] sm:$0xff] %vm1291_vm5, %v1466_v21  ;;  %v1482_v1 = vsel %vm7673_vm6, 0.0, %v1466_v21 }
 0x3a8   : > { %5999 = vmatprep.subr.bf16.mxu0 %v9508_v49 }
 0x3a9   : > { %v1952_v17 = vpop.permute.xlu0 %1951 }
 0x3ad   : > { %v2005_v51 = vpop.permute.xlu0 %2004 }
 0x3ae   : > { %5990 = vmatmul.mubr.msk.bf16.vlgmr.msra.gmra.mxu0 %vm898_vm1, %v1846_v50 }
 0x3af   : > { %6001 = vmatprep.mubr.msk.bf16.mxu0 %vm7078_vm0, %v9508_v49 }
 0x3b1   : > { %v2058_v26 = vpop.permute.xlu0 %2057 }
 0x3b5   : > { %v2111_v31 = vpop.permute.xlu0 %2110 }
 0x3b9   : > { %v2164_v42 = vpop.permute.xlu0 %2163 }
 0x3cb   : > { %v1435_v34 = vpop.xlane.xlu1 %1434 }
 0x3cc   : > { %6638 = vrcp.f32 %v1435_v34 }
 0x3cf   : > { %v1955_v0 = vpop.permute.xlu1 %1954 }
 0x3d0   : > { %v1960_v22 = vsel %vm898_vm1, %v1955_v0, 0 }
 0x3d1   : > { %6000 = vmatpush3.bf16.xpose.msra.mxu0 %v1960_v22 }
 0x3d2   : > { %6011 = vmatprep.subr.bf16.mxu0 %v9508_v49 }
 0x3d3   : > { %v2008_v27 = vpop.permute.xlu1 %2007 }
 0x3d4   : > { %v2013_v63 = vsel %vm898_vm1, %v2008_v27, 0 }
 0x3d7   : > { %v2061_v24 = vpop.permute.xlu1 %2060 }
 0x3d8   : > { %v2066_v39 = vsel %vm898_vm1, %v2061_v24, 0  ;;  %6002 = vmatmul.mubr.msk.bf16.vlgmr.msra.gmra.mxu0 %vm898_vm1, %v1952_v17 }
 0x3d9   : > { %v6639_v60 = vpop.eup %6638  ;;  %6012 = vmatpush3.bf16.xpose.msra.mxu0 %v2066_v39  ;;  %6013 = vmatprep.mubr.msk.bf16.mxu0 %vm7078_vm0, %v9508_v49 }
 0x3da   : > { %v1467_v37 = vmul.f32 %v6639_v60, %v7783_v7  ;;  %6023 = vmatprep.subr.bf16.mxu0 %v9508_v49 }
 0x3db   : > { %v2114_v6 = vpop.permute.xlu1 %2113 }
 0x3dc   : > { %v1483_v30 = vsel %vm7673_vm6, 0.0, %v1467_v37  ;;  %4925 = vst.msk [vmem:[%s7803_s18 + $0x1c8] sm:$0xff] %vm1291_vm5, %v1467_v37  ;;  %v2119_v12 = vsel %vm898_vm1, %v2114_v6, 0 }
 0x3dd   : > { %v1491_v13 = vpack.c.bf16 %v1483_v30, %v1482_v1 }
 0x3df   : > { %5984 = vmatmul.mubr.msk.bf16.vlgmr.msra.gmra.mxu1 %vm1291_vm5, %v1491_v13  ;;  %v2167_v4 = vpop.permute.xlu1 %2166 }
 0x3e0   : > { %5994 = vmatpush3.bf16.xpose.msra.mxu1 %v1907_v56  ;;  %v2172_v7 = vsel %vm898_vm1, %v2167_v4, 0  ;;  %6014 = vmatmul.mubr.msk.bf16.vlgmr.msra.gmra.mxu0 %vm898_vm1, %v2058_v26 }
 0x3e1   : > { %6024 = vmatpush3.bf16.xpose.msra.mxu0 %v2172_v7  ;;  %5995 = vmatprep.mubr.msk.bf16.mxu1 %vm7078_vm0, %v9508_v49 }
 0x3e2   : > { %6005 = vmatprep.subr.bf16.mxu1 %v9508_v49  ;;  %6025 = vmatprep.mubr.msk.bf16.mxu0 %vm7078_vm0, %v9508_v49 }
 0x3e3   : > { %6035 = vmatprep.subr.bf16.mxu0 %v9508_v49  ;;  %v2220_v54 = vpop.permute.xlu1 %2219 }
 0x3e4   : > { %v2225_v38 = vsel %vm898_vm1, %v2220_v54, 0 }
 0x3e7   : > { %5996 = vmatmul.mubr.msk.bf16.vlgmr.msra.gmra.mxu1 %vm898_vm1, %v1899_v23  ;;  %v2217_v3 = vpop.permute.xlu1 %2216 }
 0x3e8   : > { %6006 = vmatpush3.bf16.xpose.msra.mxu1 %v2013_v63  ;;  %6026 = vmatmul.mubr.msk.bf16.vlgmr.msra.gmra.mxu0 %vm898_vm1, %v2164_v42 }
 0x3e9   : > { %6007 = vmatprep.mubr.msk.bf16.mxu1 %vm7078_vm0, %v9508_v49  ;;  %6017 = vmatprep.subr.bf16.mxu1 %v9508_v49 }
 0x3ea   : > { %6037 = vmatprep.mubr.msk.bf16.mxu0 %vm7078_vm0, %v9508_v49 }
 0x3ef   : > { %6008 = vmatmul.mubr.msk.bf16.vlgmr.msra.gmra.mxu1 %vm898_vm1, %v2005_v51 }
 0x3f0   : > { %6018 = vmatpush3.bf16.xpose.msra.mxu1 %v2119_v12  ;;  %6019 = vmatprep.mubr.msk.bf16.mxu1 %vm7078_vm0, %v9508_v49 }
 0x3f1   : > { %6029 = vmatprep.subr.bf16.mxu1 %v9508_v49 }
 0x3f7   : > { %6020 = vmatmul.mubr.msk.bf16.vlgmr.msra.gmra.mxu1 %vm898_vm1, %v2111_v31 }
 0x3f8   : > { %6030 = vmatpush3.bf16.xpose.msra.mxu1 %v2225_v38  ;;  %6031 = vmatprep.mubr.msk.bf16.mxu1 %vm7078_vm0, %v9508_v49 }
 0x3f9   : > { %6041 = vmatprep.subr.bf16.mxu1 %v9508_v49 }
 0x3ff   : > { %6032 = vmatmul.mubr.msk.bf16.vlgmr.msra.gmra.mxu1 %vm898_vm1, %v2217_v3 }
 0x400   : > { %6043 = vmatprep.mubr.msk.bf16.mxu1 %vm7078_vm0, %v9508_v49 }
 0x436   : > { %v7960_v32 = vpop.f32.mrf.mxu0 }
 0x437   : > { %9564 = vst [vmem:[#allocation22_spill] sm:$0xff] %v7960_v32 }
 0x438   : > { %v5943_v21 = vpop.f32.mrf.mxu0 }
 0x43a   : > { %v7962_v5 = vpop.f32.mrf.mxu0 }
 0x43b   : > { %9565 = vst [vmem:[#allocation23_spill] sm:$0xff] %v7962_v5 }
 0x43c   : > { %v5944_v8 = vpop.f32.mrf.mxu0 }
 0x43e   : > { %v7964_v50 = vpop.f32.mrf.mxu1 }
 0x43f   : > { %9566 = vst [vmem:[#allocation24_spill] sm:$0xff] %v7964_v50 }
 0x440   : > { %v5949_v23 = vpop.f32.mrf.mxu1 }
 0x442   : > { %v7966_v34 = vpop.f32.mrf.mxu1 }
 0x443   : > { %9567 = vst [vmem:[#allocation25_spill] sm:$0xff] %v7966_v34 }
 0x444   : > { %v5950_v17 = vpop.f32.mrf.mxu1 }
 0x446   : > { %v7968_v0 = vpop.f32.mrf.mxu0 }
 0x447   : > { %9568 = vst [vmem:[#allocation26_spill] sm:$0xff] %v7968_v0 }
 0x448   : > { %v5955_v22 = vpop.f32.mrf.mxu0 }
 0x44a   : > { %v7970_v27 = vpop.f32.mrf.mxu0 }
 0x44b   : > { %9569 = vst [vmem:[#allocation27_spill] sm:$0xff] %v7970_v27 }
 0x44c   : > { %v5956_v51 = vpop.f32.mrf.mxu0 }
 0x44e   : > { %v7972_v24 = vpop.f32.mrf.mxu1 }
 0x44f   : > { %9570 = vst [vmem:[#allocation28_spill] sm:$0xff] %v7972_v24 }
 0x450   : > { %v5961_v39 = vpop.f32.mrf.mxu1 }
 0x452   : > { %v7974_v60 = vpop.f32.mrf.mxu1 }
 0x453   : > { %9571 = vst [vmem:[#allocation29_spill] sm:$0xff] %v7974_v60 }
 0x454   : > { %v5962_v37 = vpop.f32.mrf.mxu1 }
 0x456   : > { %v7976_v26 = vpop.f32.mrf.mxu0 }
 0x457   : > { %9572 = vst [vmem:[#allocation30_spill] sm:$0xff] %v7976_v26 }
 0x458   : > { %v5967_v6 = vpop.f32.mrf.mxu0 }
 0x45a   : > { %v7978_v1 = vpop.f32.mrf.mxu0 }
 0x45b   : > { %9573 = vst [vmem:[#allocation31_spill] sm:$0xff] %v7978_v1 }
 0x45c   : > { %v5968_v30 = vpop.f32.mrf.mxu0 }
 0x45e   : > { %v7980_v13 = vpop.f32.mrf.mxu1 }
 0x45f   : > { %9574 = vst [vmem:[#allocation32_spill] sm:$0xff] %v7980_v13 }
 0x460   : > { %v5973_v56 = vpop.f32.mrf.mxu1 }
 0x462   : > { %v7982_v4 = vpop.f32.mrf.mxu1 }
 0x463   : > { %9575 = vst [vmem:[#allocation33_spill] sm:$0xff] %v7982_v4 }
 0x464   : > { %v5974_v7 = vpop.f32.mrf.mxu1 }
 0x466   : > { %v7984_v31 = vpop.f32.mrf.mxu0 }
 0x467   : > { %9576 = vst [vmem:[#allocation34_spill] sm:$0xff] %v7984_v31 }
 0x468   : > { %v5979_v42 = vpop.f32.mrf.mxu0 }
 0x46a   : > { %v7986_v63 = vpop.f32.mrf.mxu0 }
 0x46b   : > { %9577 = vst [vmem:[#allocation35_spill] sm:$0xff] %v7986_v63 }
 0x46c   : > { %v5980_v12 = vpop.f32.mrf.mxu0 }
 0x46e   : > { %v1890_v54 = vpop.f32.mrf.mxu0 }
 0x46f   : > { %v7990_v38 = vsel %vm7541_vm4, -1e+18, %v1890_v54 }
 0x470   : > { %v5991_v3 = vpop.f32.mrf.mxu0  ;;  %v2284_v21 = vsel %vm1291_vm5, %v7990_v38, -inf }
 0x471   : > { %2285 = vmax.xlane.f32.xlu0 %v2284_v21 }
 0x472   : > { %v1893_v8 = vpop.f32.mrf.mxu0 }
 0x473   : > { %v7996_v23 = vsel %vm7541_vm4, -1e+18, %v1893_v8 }
 0x474   : > { %v5992_v17 = vpop.f32.mrf.mxu0  ;;  %v2287_v22 = vsel %vm1291_vm5, %v7996_v23, -inf }
 0x475   : > { %2288 = vmax.xlane.f32.xlu1 %v2287_v22 }
 0x498   : > { %v1996_v51 = vpop.f32.mrf.mxu0 }
 0x49a   : > { %v6003_v39 = vpop.f32.mrf.mxu0 }
 0x49c   : > { %v1999_v37 = vpop.f32.mrf.mxu0 }
 0x49d   : > { %v8002_v6 = vsel %vm7579_vm9, -1e+18, %v1999_v37 }
 0x49e   : > { %v6004_v30 = vpop.f32.mrf.mxu0  ;;  %v2299_v56 = vsel %vm1291_vm5, %v8002_v6, -inf }
 0x49f   : > { %2300 = vmax.xlane.f32.xlu1 %v2299_v56  ;;  %v8006_v7 = vpop.f32.mrf.mxu1 }
 0x4a0   : > { %9578 = vst [vmem:[#allocation36_spill] sm:$0xff] %v8006_v7  ;;  %v2102_v42 = vpop.f32.mrf.mxu0 }
 0x4a1   : > { %v5985_v12 = vpop.f32.mrf.mxu1 }
 0x4a2   : > { %v6015_v54 = vpop.f32.mrf.mxu0 }
 0x4a3   : > { %v8008_v3 = vpop.f32.mrf.mxu1 }
 0x4a4   : > { %9579 = vst [vmem:[#allocation37_spill] sm:$0xff] %v8008_v3  ;;  %v2105_v21 = vpop.f32.mrf.mxu0 }
 0x4a5   : > { %v5986_v8 = vpop.f32.mrf.mxu1 }
 0x4a6   : > { %v6016_v17 = vpop.f32.mrf.mxu0 }
 0x4a7   : > { %v1943_v22 = vpop.f32.mrf.mxu1 }
 0x4a8   : > { %v8012_v39 = vsel %vm7560_vm7, -1e+18, %v1943_v22  ;;  %v2208_v37 = vpop.f32.mrf.mxu0  ;;  %v8024_v22 = vsel %vm7579_vm9, -1e+18, %v1996_v51 }
 0x4a9   : > { %v5997_v30 = vpop.f32.mrf.mxu1  ;;  %v2290_v56 = vsel %vm1291_vm5, %v8012_v39, -inf  ;;  %v8066_v4 = vsel %vm7655_vm3, -1e+18, %v2208_v37 }
 0x4aa   : > { %v6027_v49 = vpop.f32.mrf.mxu0  ;;  %2291 = vmax.xlane.f32.xlu0 %v2290_v56 }
 0x4ab   : > { %v1946_v7 = vpop.f32.mrf.mxu1  ;;  %v2296_v49 = vsel %vm1291_vm5, %v8024_v22, -inf }
 0x4ac   : > { %v8018_v12 = vsel %vm7560_vm7, -1e+18, %v1946_v7  ;;  %v2211_v54 = vpop.f32.mrf.mxu0 }
 0x4ad   : > { %v5998_v8 = vpop.f32.mrf.mxu1  ;;  %v2293_v17 = vsel %vm1291_vm5, %v8018_v12, -inf }
 0x4ae   : > { %v6028_v30 = vpop.f32.mrf.mxu0  ;;  %2294 = vmax.xlane.f32.xlu0 %v2293_v17  ;;  %v8042_v17 = vsel %vm7617_vm13, -1e+18, %v2102_v42 }
 0x4af   : > { %v2049_v3 = vpop.f32.mrf.mxu1 }
 0x4b0   : > { %v8030_v7 = vsel %vm7598_vm11, -1e+18, %v2049_v3  ;;  %v8046_v3 = vsel %vm7617_vm13, -1e+18, %v2105_v21 }
 0x4b1   : > { %v6009_v31 = vpop.f32.mrf.mxu1  ;;  %v2302_v51 = vsel %vm1291_vm5, %v8030_v7, -inf }
 0x4b2   : > { %2297 = vmax.xlane.f32.xlu0 %v2296_v49 }
 0x4b3   : > { %v2052_v56 = vpop.f32.mrf.mxu1 }
 0x4b4   : > { %v8034_v8 = vsel %vm7598_vm11, -1e+18, %v2052_v56  ;;  %v2311_v56 = vsel %vm1291_vm5, %v8046_v3, -inf }
 0x4b5   : > { %v6010_v63 = vpop.f32.mrf.mxu1  ;;  %v2305_v31 = vsel %vm1291_vm5, %v8034_v8, -inf }
 0x4b6   : > { %2303 = vmax.xlane.f32.xlu0 %v2302_v51  ;;  %2306 = vmax.xlane.f32.xlu1 %v2305_v31  ;;  %v2308_v63 = vsel %vm1291_vm5, %v8042_v17, -inf }
 0x4b7   : > { %v2155_v30 = vpop.f32.mrf.mxu1 }
 0x4b8   : > { %v8054_v13 = vsel %vm7636_vm15, -1e+18, %v2155_v30  ;;  %v8070_v30 = vsel %vm7655_vm3, -1e+18, %v2211_v54 }
 0x4b9   : > { %v6021_v49 = vpop.f32.mrf.mxu1  ;;  %v2314_v31 = vsel %vm1291_vm5, %v8054_v13, -inf }
 0x4ba   : > { %2309 = vmax.xlane.f32.xlu0 %v2308_v63  ;;  %2312 = vmax.xlane.f32.xlu1 %v2311_v56 }
 0x4bb   : > { %v2158_v42 = vpop.f32.mrf.mxu1 }
 0x4bc   : > { %v8058_v21 = vsel %vm7636_vm15, -1e+18, %v2158_v42  ;;  %v2320_v42 = vsel %vm1291_vm5, %v8066_v4, -inf }
 0x4bd   : > { %v6022_v51 = vpop.f32.mrf.mxu1  ;;  %v2317_v49 = vsel %vm1291_vm5, %v8058_v21, -inf }
 0x4be   : > { %2315 = vmax.xlane.f32.xlu0 %v2314_v31  ;;  %2318 = vmax.xlane.f32.xlu1 %v2317_v49  ;;  %v2323_v51 = vsel %vm1291_vm5, %v8070_v30, -inf }
 0x4bf   : > { %v2261_v63 = vpop.f32.mrf.mxu1 }
 0x4c0   : > { %v8078_v26 = vsel %vm7673_vm6, -1e+18, %v2261_v63 }
 0x4c1   : > { %v6033_v56 = vpop.f32.mrf.mxu1  ;;  %v2326_v54 = vsel %vm1291_vm5, %v8078_v26, -inf }
 0x4c2   : > { %2321 = vmax.xlane.f32.xlu0 %v2320_v42  ;;  %2324 = vmax.xlane.f32.xlu1 %v2323_v51 }
 0x4c3   : > { %v2264_v37 = vpop.f32.mrf.mxu1 }
 0x4c4   : > { %v8099_v63 = vsel %vm7673_vm6, -1e+18, %v2264_v37 }
 0x4c5   : > { %v6034_v1 = vpop.f32.mrf.mxu1  ;;  %v2329_v56 = vsel %vm1291_vm5, %v8099_v63, -inf }
 0x4c6   : > { %2327 = vmax.xlane.f32.xlu0 %v2326_v54 }
 0x4d3   : > { %2533 = vrot.lane.b32.xlu1 %v7529_v45, %s7079_s22 }
 0x4d7   : > { %2581 = vrot.lane.b32.xlu1 %v7429_v62, %s7079_s22 }
 0x4db   : > { %2629 = vrot.lane.b32.xlu1 %v7421_v52, %s7079_s22 }
 0x4dc   : > { %2485 = vrot.lane.b32.xlu0 %v7508_v40, %s7079_s22 }
 0x4df   : > { %2725 = vrot.lane.b32.xlu1 %v7444_v20, %s7079_s22 }
 0x4e0   : > { %2677 = vrot.lane.b32.xlu0 %v7452_v29, %s7079_s22 }
 0x4e4   : > { %2773 = vrot.lane.b32.xlu0 %v7475_v59, %s7079_s22 }
 0x4fa   : > { %v2286_v1 = vpop.xlane.xlu0 %2285 }
 0x4fb   : > { %v2332_v31 = vsub.f32 %v7990_v38, %v2286_v1 }
 0x4fd   : > { %v2348_v49 = vmul.f32 1.442695, %v2332_v31 }
 0x4fe   : > { %v2289_v38 = vpop.xlane.xlu1 %2288 }
 0x4ff   : > { %6640 = vpow2.f32 %v2348_v49  ;;  %v2333_v54 = vsub.f32 %v7996_v23, %v2289_v38 }
 0x501   : > { %v2350_v1 = vmul.f32 1.442695, %v2333_v54 }
 0x503   : > { %2330 = vmax.xlane.f32.xlu1 %v2329_v56  ;;  %6642 = vpow2.f32 %v2350_v1 }
 0x50c   : > { %v8103_v42 = vpop.eup %6640 }
 0x50d   : > { %v2380_v51 = vsel %vm1291_vm5, %v8103_v42, 0.0 }
 0x50e   : > { %2381 = vadd.xlane.f32.xlu0 %v2380_v51 }
 0x510   : > { %v8110_v49 = vpop.eup %6642 }
 0x511   : > { %v2383_v51 = vsel %vm1291_vm5, %v8110_v49, 0.0 }
 0x514   : > { %2821 = vrot.lane.b32.xlu1 %v7467_v48, %s7079_s22 }
 0x528   : > { %v2301_v37 = vpop.xlane.xlu1 %2300 }
 0x529   : > { %v2337_v24 = vsub.f32 %v8002_v6, %v2301_v37 }
 0x52b   : > { %v2358_v23 = vmul.f32 1.442695, %v2337_v24 }
 0x533   : > { %v2292_v31 = vpop.xlane.xlu0 %2291 }
 0x534   : > { %v2334_v56 = vsub.f32 %v8012_v39, %v2292_v31 }
 0x536   : > { %v2352_v60 = vmul.f32 1.442695, %v2334_v56 }
 0x537   : > { %v2295_v0 = vpop.xlane.xlu0 %2294 }
 0x538   : > { %6644 = vpow2.f32 %v2352_v60  ;;  %v2335_v27 = vsub.f32 %v8018_v12, %v2295_v0  ;;  %2384 = vadd.xlane.f32.xlu1 %v2383_v51 }
 0x53a   : > { %v2354_v38 = vmul.f32 1.442695, %v2335_v27 }
 0x53b   : > { %v2298_v54 = vpop.xlane.xlu0 %2297 }
 0x53c   : > { %6646 = vpow2.f32 %v2354_v38  ;;  %v2336_v1 = vsub.f32 %v8024_v22, %v2298_v54 }
 0x53d   : > { %6648 = vpow2.f32 %v2358_v23 }
 0x53e   : > { %v2356_v50 = vmul.f32 1.442695, %v2336_v1 }
 0x53f   : > { %v2304_v39 = vpop.xlane.xlu0 %2303  ;;  %v2307_v31 = vpop.xlane.xlu1 %2306 }
 0x540   : > { %6650 = vpow2.f32 %v2356_v50  ;;  %v2338_v6 = vsub.f32 %v8030_v7, %v2304_v39  ;;  %v2339_v37 = vsub.f32 %v8034_v8, %v2307_v31 }
 0x542   : > { %v2360_v56 = vmul.f32 1.442695, %v2338_v6  ;;  %v2362_v60 = vmul.f32 1.442695, %v2339_v37 }
 0x543   : > { %v2310_v34 = vpop.xlane.xlu0 %2309  ;;  %v2313_v0 = vpop.xlane.xlu1 %2312 }
 0x544   : > { %6652 = vpow2.f32 %v2360_v56  ;;  %v2340_v27 = vsub.f32 %v8042_v17, %v2310_v34  ;;  %v2341_v24 = vsub.f32 %v8046_v3, %v2313_v0 }
 0x545   : > { %v8122_v12 = vpop.eup %6644  ;;  %6654 = vpow2.f32 %v2362_v60 }
 0x546   : > { %v2364_v22 = vmul.f32 1.442695, %v2340_v27  ;;  %v2366_v51 = vmul.f32 1.442695, %v2341_v24  ;;  %v2386_v50 = vsel %vm1291_vm5, %v8122_v12, 0.0 }
 0x547   : > { %v2316_v7 = vpop.xlane.xlu0 %2315  ;;  %v2319_v23 = vpop.xlane.xlu1 %2318  ;;  %2387 = vadd.xlane.f32.xlu0 %v2386_v50 }
 0x548   : > { %6656 = vpow2.f32 %v2364_v22  ;;  %v2342_v8 = vsub.f32 %v8054_v13, %v2316_v7  ;;  %v2343_v38 = vsub.f32 %v8058_v21, %v2319_v23  ;;  %v9580_v22 = vmov 0.0  }
 0x549   : > { %v8128_v54 = vpop.eup %6646  ;;  %6658 = vpow2.f32 %v2366_v51 }
 0x54a   : > { %v2368_v34 = vmul.f32 1.442695, %v2342_v8  ;;  %v2370_v17 = vmul.f32 1.442695, %v2343_v38  ;;  %v2389_v3 = vsel %vm1291_vm5, %v8128_v54, 0.0  ;;  %v8132_v1 = vpop.eup %6648 }
 0x54b   : > { %v2322_v39 = vpop.xlane.xlu0 %2321  ;;  %v2325_v31 = vpop.xlane.xlu1 %2324  ;;  %2390 = vadd.xlane.f32.xlu1 %v2389_v3  ;;  %v2395_v0 = vsel %vm1291_vm5, %v8132_v1, 0.0 }
 0x54c   : > { %6660 = vpow2.f32 %v2368_v34  ;;  %v2344_v6 = vsub.f32 %v8066_v4, %v2322_v39  ;;  %v2345_v13 = vsub.f32 %v8070_v30, %v2325_v31 }
 0x54d   : > { %v8136_v37 = vpop.eup %6650  ;;  %6662 = vpow2.f32 %v2370_v17 }
 0x54e   : > { %v2372_v21 = vmul.f32 1.442695, %v2344_v6  ;;  %v2374_v56 = vmul.f32 1.442695, %v2345_v13  ;;  %v2392_v60 = vsel %vm1291_vm5, %v8136_v37, 0.0 }
 0x54f   : > { %v2534_v27 = vpop.permute.xlu1 %2533  ;;  %2393 = vadd.xlane.f32.xlu0 %v2392_v60  ;;  %v2328_v24 = vpop.xlane.xlu0 %2327  ;;  %2396 = vadd.xlane.f32.xlu1 %v2395_v0 }
 0x550   : > { %6664 = vpow2.f32 %v2372_v21  ;;  %v2346_v4 = vsub.f32 %v8078_v26, %v2328_v24  ;;  %6042 = vmatpush3.bf16.msra.mxu1 %v2534_v27 }
 0x551   : > { %v8143_v30 = vpop.eup %6652  ;;  %6666 = vpow2.f32 %v2374_v56  ;;  %6053 = vmatprep.subr.bf16.mxu1 %v9580_v22 }
 0x552   : > { %v8146_v51 = vpop.eup %6654  ;;  %v2376_v50 = vmul.f32 1.442695, %v2346_v4  ;;  %v2398_v7 = vsel %vm1291_vm5, %v8143_v30, 0.0 }
 0x553   : > { %2399 = vadd.xlane.f32.xlu0 %v2398_v7  ;;  %v2486_v23 = vpop.permute.xlu0 %2485  ;;  %v2401_v8 = vsel %vm1291_vm5, %v8146_v51, 0.0  ;;  %v2582_v24 = vpop.permute.xlu1 %2581 }
 0x554   : > { %6668 = vpow2.f32 %v2376_v50  ;;  %2402 = vadd.xlane.f32.xlu1 %v2401_v8  ;;  %6036 = vmatpush3.bf16.msra.mxu0 %v2486_v23 }
 0x555   : > { %v8152_v26 = vpop.eup %6656  ;;  %6047 = vmatprep.subr.bf16.mxu0 %v9580_v22 }
 0x556   : > { %v8155_v38 = vpop.eup %6658  ;;  %v2404_v34 = vsel %vm1291_vm5, %v8152_v26, 0.0 }
 0x557   : > { %2405 = vadd.xlane.f32.xlu0 %v2404_v34  ;;  %v2407_v17 = vsel %vm1291_vm5, %v8155_v38, 0.0  ;;  %v8189_v4 = vpop.permute.xlu1 %2629  ;;  %v8197_v23 = vpop.permute.xlu0 %2677 }
 0x558   : > { %2408 = vadd.xlane.f32.xlu1 %v2407_v17 }
 0x559   : > { %v8161_v3 = vpop.eup %6660 }
 0x55a   : > { %v8163_v39 = vpop.eup %6662  ;;  %v2410_v31 = vsel %vm1291_vm5, %v8161_v3, 0.0 }
 0x55b   : > { %2411 = vadd.xlane.f32.xlu0 %v2410_v31  ;;  %v2413_v6 = vsel %vm1291_vm5, %v8163_v39, 0.0  ;;  %v8193_v50 = vpop.permute.xlu1 %2725  ;;  %v8204_v17 = vpop.permute.xlu0 %2773 }
 0x55c   : > { %2414 = vadd.xlane.f32.xlu1 %v2413_v6 }
 0x55d   : > { %v8169_v13 = vpop.eup %6664 }
 0x55e   : > { %v8171_v21 = vpop.eup %6666  ;;  %v2416_v56 = vsel %vm1291_vm5, %v8169_v13, 0.0 }
 0x55f   : > { %2417 = vadd.xlane.f32.xlu0 %v2416_v56  ;;  %v2419_v60 = vsel %vm1291_vm5, %v8171_v21, 0.0 }
 0x560   : > { %2420 = vadd.xlane.f32.xlu1 %v2419_v60 }
 0x561   : > { %v8177_v0 = vpop.eup %6668 }
 0x562   : > { %v2422_v27 = vsel %vm1291_vm5, %v8177_v0, 0.0 }
 0x563   : > { %2423 = vadd.xlane.f32.xlu0 %v2422_v27 }
 0x571   : > { %2921 = vrot.lane.b32.xlu1 %v7383_v16, %s7080_s0 }
 0x579   : > { %2870 = vrot.lane.b32.xlu0 %v7370_v2, %s7080_s0 }
 0x57d   : > { %2868 = vrot.lane.b32.xlu0 %v7380_v14, %s7080_s0 }
 0x581   : > { %2919 = vrot.lane.b32.xlu0 %v7403_v33, %s7080_s0 }
 0x585   : > { %2970 = vrot.lane.b32.xlu0 %v7424_v58, %s7080_s0 }
 0x589   : > { %3021 = vrot.lane.b32.xlu0 %v7447_v25, %s7080_s0 }
 0x58c   : > { %v2331_v7 = vpop.xlane.xlu1 %2330 }
 0x58d   : > { %v2347_v8 = vsub.f32 %v8099_v63, %v2331_v7  ;;  %3072 = vrot.lane.b32.xlu0 %v7470_v53, %s7080_s0 }
 0x58f   : > { %v2378_v34 = vmul.f32 1.442695, %v2347_v8 }
 0x590   : > { %v8221_v27 = vpop.permute.xlu1 %2821 }
 0x591   : > { %6670 = vpow2.f32 %v2378_v34  ;;  %3123 = vrot.lane.b32.xlu0 %v7487_v11, %s7080_s0 }
 0x595   : > { %3174 = vrot.lane.b32.xlu0 %v7510_v41, %s7080_s0 }
 0x597   : > { %v2382_v31 = vpop.xlane.xlu0 %2381 }
 0x598   : > { %6672 = vrcp.f32 %v2382_v31 }
 0x59e   : > { %v8208_v6 = vpop.eup %6670 }
 0x59f   : > { %v2425_v63 = vsel %vm1291_vm5, %v8208_v6, 0.0 }
 0x5a0   : > { %2426 = vadd.xlane.f32.xlu1 %v2425_v63 }
 0x5a5   : > { %v6673_v56 = vpop.eup %6672 }
 0x5a6   : > { %v2444_v60 = vmul.f32 %v6673_v56, %v8103_v42 }
 0x5a8   : > { %4870 = vst.msk [vmem:[%s7803_s18 + $0x10] sm:$0xff] %vm1291_vm5, %v2444_v60  ;;  %v2460_v31 = vsel %vm7541_vm4, 0.0, %v2444_v60 }
 0x5b1   : > { %2972 = vrot.lane.b32.xlu1 %v7406_v35, %s7080_s0 }
 0x5b5   : > { %3023 = vrot.lane.b32.xlu1 %v7427_v61, %s7080_s0 }
 0x5b9   : > { %3074 = vrot.lane.b32.xlu1 %v7450_v28, %s7080_s0 }
 0x5bd   : > { %3125 = vrot.lane.b32.xlu1 %v7473_v55, %s7080_s0 }
 0x5c1   : > { %3176 = vrot.lane.b32.xlu1 %v7490_v15, %s7080_s0  ;;  %v2385_v42 = vpop.xlane.xlu1 %2384 }
 0x5c2   : > { %6674 = vrcp.f32 %v2385_v42 }
 0x5c5   : > { %3227 = vrot.lane.b32.xlu1 %v7512_v18, %s7080_s0 }
 0x5c9   : > { %3225 = vrot.lane.b32.xlu1 %v7527_v44, %s7080_s0 }
 0x5cf   : > { %v6675_v7 = vpop.eup %6674 }
 0x5d0   : > { %v2388_v8 = vpop.xlane.xlu0 %2387  ;;  %v2445_v34 = vmul.f32 %v6675_v7, %v8110_v49 }
 0x5d1   : > { %6676 = vrcp.f32 %v2388_v8 }
 0x5d2   : > { %v2461_v63 = vsel %vm7541_vm4, 0.0, %v2445_v34  ;;  %4871 = vst.msk [vmem:[%s7803_s18 + $0x18] sm:$0xff] %vm1291_vm5, %v2445_v34 }
 0x5d3   : > { %v2476_v56 = vpack.c.bf16 %v2461_v63, %v2460_v31 }
 0x5d4   : > { %v2391_v42 = vpop.xlane.xlu1 %2390 }
 0x5d5   : > { %6678 = vrcp.f32 %v2391_v42  ;;  %6038 = vmatmul.mubr.msk.bf16.vlgmr.msra.gmra.mxu0 %vm1291_vm5, %v2476_v56 }
 0x5d6   : > { %6048 = vmatpush3.bf16.msra.mxu0 %v2582_v24  ;;  %6049 = vmatprep.mubr.msk.bf16.mxu0 %vm7078_vm0, %v9580_v22 }
 0x5d7   : > { %6059 = vmatprep.subr.bf16.mxu0 %v9580_v22 }
 0x5d8   : > { %v2394_v49 = vpop.xlane.xlu0 %2393  ;;  %v2397_v7 = vpop.xlane.xlu1 %2396 }
 0x5d9   : > { %6680 = vrcp.f32 %v2394_v49 }
 0x5da   : > { %6682 = vrcp.f32 %v2397_v7 }
 0x5dc   : > { %v2400_v60 = vpop.xlane.xlu0 %2399 }
 0x5dd   : > { %6684 = vrcp.f32 %v2400_v60  ;;  %v2403_v8 = vpop.xlane.xlu1 %2402 }
 0x5de   : > { %v6677_v34 = vpop.eup %6676  ;;  %6686 = vrcp.f32 %v2403_v8 }
 0x5df   : > { %v2446_v31 = vmul.f32 %v6677_v34, %v8122_v12 }
 0x5e0   : > { %v2406_v63 = vpop.xlane.xlu0 %2405 }
 0x5e1   : > { %6688 = vrcp.f32 %v2406_v63  ;;  %v2409_v24 = vpop.xlane.xlu1 %2408  ;;  %4878 = vst.msk [vmem:[%s7803_s18 + $0x50] sm:$0xff] %vm1291_vm5, %v2446_v31  ;;  %v2462_v7 = vsel %vm7560_vm7, 0.0, %v2446_v31 }
 0x5e2   : > { %v6679_v56 = vpop.eup %6678  ;;  %6690 = vrcp.f32 %v2409_v24 }
 0x5e3   : > { %v2447_v42 = vmul.f32 %v6679_v56, %v8128_v54 }
 0x5e4   : > { %v2412_v32 = vpop.xlane.xlu0 %2411 }
 0x5e5   : > { %6692 = vrcp.f32 %v2412_v32  ;;  %v2415_v49 = vpop.xlane.xlu1 %2414  ;;  %v2463_v60 = vsel %vm7560_vm7, 0.0, %v2447_v42  ;;  %4879 = vst.msk [vmem:[%s7803_s18 + $0x58] sm:$0xff] %vm1291_vm5, %v2447_v42 }
 0x5e6   : > { %v6681_v12 = vpop.eup %6680  ;;  %6694 = vrcp.f32 %v2415_v49  ;;  %v2477_v8 = vpack.c.bf16 %v2463_v60, %v2462_v7 }
 0x5e7   : > { %v6683_v34 = vpop.eup %6682  ;;  %v2448_v63 = vmul.f32 %v6681_v12, %v8136_v37 }
 0x5e8   : > { %v2418_v54 = vpop.xlane.xlu0 %2417  ;;  %6044 = vmatmul.mubr.msk.bf16.vlgmr.msra.gmra.mxu1 %vm1291_vm5, %v2477_v8  ;;  %v2449_v32 = vmul.f32 %v6683_v34, %v8132_v1 }
 0x5e9   : > { %6696 = vrcp.f32 %v2418_v54  ;;  %6054 = vmatpush3.bf16.msra.mxu1 %v8189_v4  ;;  %v2421_v31 = vpop.xlane.xlu1 %2420  ;;  %v2464_v24 = vsel %vm7579_vm9, 0.0, %v2448_v63  ;;  %4886 = vst.msk [vmem:[%s7803_s18 + $0x90] sm:$0xff] %vm1291_vm5, %v2448_v63  ;;  %6055 = vmatprep.mubr.msk.bf16.mxu1 %vm7078_vm0, %v9580_v22 }
 0x5ea   : > { %v6685_v56 = vpop.eup %6684  ;;  %6698 = vrcp.f32 %v2421_v31  ;;  %v2465_v37 = vsel %vm7579_vm9, 0.0, %v2449_v32  ;;  %4887 = vst.msk [vmem:[%s7803_s18 + $0x98] sm:$0xff] %vm1291_vm5, %v2449_v32  ;;  %6065 = vmatprep.subr.bf16.mxu1 %v9580_v22 }
 0x5eb   : > { %v6687_v1 = vpop.eup %6686  ;;  %v2478_v4 = vpack.c.bf16 %v2465_v37, %v2464_v24  ;;  %v2450_v42 = vmul.f32 %v6685_v56, %v8143_v30 }
 0x5ec   : > { %v2424_v49 = vpop.xlane.xlu0 %2423  ;;  %v2451_v7 = vmul.f32 %v6687_v1, %v8146_v51 }
 0x5ed   : > { %6700 = vrcp.f32 %v2424_v49  ;;  %6050 = vmatmul.mubr.msk.bf16.vlgmr.msra.gmra.mxu0 %vm1291_vm5, %v2478_v4  ;;  %v2466_v60 = vsel %vm7598_vm11, 0.0, %v2450_v42  ;;  %4894 = vst.msk [vmem:[%s7803_s18 + $0xd0] sm:$0xff] %vm1291_vm5, %v2450_v42 }
 0x5ee   : > { %v6689_v12 = vpop.eup %6688  ;;  %6060 = vmatpush3.bf16.msra.mxu0 %v8197_v23  ;;  %v2467_v8 = vsel %vm7598_vm11, 0.0, %v2451_v7  ;;  %4895 = vst.msk [vmem:[%s7803_s18 + $0xd8] sm:$0xff] %vm1291_vm5, %v2451_v7  ;;  %6061 = vmatprep.mubr.msk.bf16.mxu0 %vm7078_vm0, %v9580_v22 }
 0x5ef   : > { %v6691_v30 = vpop.eup %6690  ;;  %v2479_v51 = vpack.c.bf16 %v2467_v8, %v2466_v60  ;;  %6071 = vmatprep.subr.bf16.mxu0 %v9580_v22  ;;  %v2452_v34 = vmul.f32 %v6689_v12, %v8152_v26  ;;  %v2922_v12 = vpop.permute.xlu1 %2921 }
 0x5f0   : > { %v2453_v63 = vmul.f32 %v6691_v30, %v8155_v38  ;;  %v2871_v49 = vpop.permute.xlu0 %2870 }
 0x5f1   : > { %6056 = vmatmul.mubr.msk.bf16.vlgmr.msra.gmra.mxu1 %vm1291_vm5, %v2479_v51  ;;  %v2468_v23 = vsel %vm7617_vm13, 0.0, %v2452_v34  ;;  %4902 = vst.msk [vmem:[%s7803_s18 + $0x110] sm:$0xff] %vm1291_vm5, %v2452_v34  ;;  %v2876_v60 = vsel %vm898_vm1, %v2871_v49, 0 }
 0x5f2   : > { %v6693_v54 = vpop.eup %6692  ;;  %6066 = vmatpush3.bf16.msra.mxu1 %v8193_v50  ;;  %v2469_v32 = vsel %vm7617_vm13, 0.0, %v2453_v63  ;;  %4903 = vst.msk [vmem:[%s7803_s18 + $0x118] sm:$0xff] %vm1291_vm5, %v2453_v63  ;;  %6067 = vmatprep.mubr.msk.bf16.mxu1 %vm7078_vm0, %v9580_v22 }
 0x5f3   : > { %v6695_v26 = vpop.eup %6694  ;;  %v2480_v38 = vpack.c.bf16 %v2469_v32, %v2468_v23  ;;  %6077 = vmatprep.subr.bf16.mxu1 %v9580_v22  ;;  %v2454_v31 = vmul.f32 %v6693_v54, %v8161_v3 }
 0x5f4   : > { %v2455_v24 = vmul.f32 %v6695_v26, %v8163_v39 }
 0x5f5   : > { %6062 = vmatmul.mubr.msk.bf16.vlgmr.msra.gmra.mxu0 %vm1291_vm5, %v2480_v38  ;;  %v2470_v50 = vsel %vm7636_vm15, 0.0, %v2454_v31  ;;  %4910 = vst.msk [vmem:[%s7803_s18 + $0x150] sm:$0xff] %vm1291_vm5, %v2454_v31 }
 0x5f6   : > { %v6697_v56 = vpop.eup %6696  ;;  %6072 = vmatpush3.bf16.msra.mxu0 %v8204_v17  ;;  %v2471_v37 = vsel %vm7636_vm15, 0.0, %v2455_v24  ;;  %4911 = vst.msk [vmem:[%s7803_s18 + $0x158] sm:$0xff] %vm1291_vm5, %v2455_v24  ;;  %6073 = vmatprep.mubr.msk.bf16.mxu0 %vm7078_vm0, %v9580_v22 }
 0x5f7   : > { %v6699_v3 = vpop.eup %6698  ;;  %v2481_v39 = vpack.c.bf16 %v2471_v37, %v2470_v50  ;;  %6083 = vmatprep.subr.bf16.mxu0 %v9580_v22  ;;  %v2456_v1 = vmul.f32 %v6697_v56, %v8169_v13 }
 0x5f8   : > { %v2457_v4 = vmul.f32 %v6699_v3, %v8171_v21  ;;  %v2927_v3 = vsel %vm898_vm1, %v2922_v12, 0 }
 0x5f9   : > { %6068 = vmatmul.mubr.msk.bf16.vlgmr.msra.gmra.mxu1 %vm1291_vm5, %v2481_v39  ;;  %v2472_v17 = vsel %vm7655_vm3, 0.0, %v2456_v1  ;;  %4918 = vst.msk [vmem:[%s7803_s18 + $0x190] sm:$0xff] %vm1291_vm5, %v2456_v1 }
 0x5fa   : > { %v6701_v42 = vpop.eup %6700  ;;  %6078 = vmatpush3.bf16.msra.mxu1 %v8221_v27  ;;  %v2473_v7 = vsel %vm7655_vm3, 0.0, %v2457_v4  ;;  %4919 = vst.msk [vmem:[%s7803_s18 + $0x198] sm:$0xff] %vm1291_vm5, %v2457_v4  ;;  %6079 = vmatprep.mubr.msk.bf16.mxu1 %vm7078_vm0, %v9580_v22  ;;  %v2869_v27 = vpop.permute.xlu0 %2868 }
 0x5fb   : > { %v2482_v13 = vpack.c.bf16 %v2473_v7, %v2472_v17  ;;  %6089 = vmatprep.subr.bf16.mxu1 %v9580_v22  ;;  %v2458_v21 = vmul.f32 %v6701_v42, %v8177_v0 }
 0x5fd   : > { %6074 = vmatmul.mubr.msk.bf16.vlgmr.msra.gmra.mxu0 %vm1291_vm5, %v2482_v13  ;;  %4926 = vst.msk [vmem:[%s7803_s18 + $0x1d0] sm:$0xff] %vm1291_vm5, %v2458_v21  ;;  %v2474_v50 = vsel %vm7673_vm6, 0.0, %v2458_v21 }
 0x5fe   : > { %6084 = vmatpush3.bf16.xpose.msra.mxu0 %v2876_v60  ;;  %6085 = vmatprep.mubr.msk.bf16.mxu0 %vm7078_vm0, %v9580_v22  ;;  %v2920_v0 = vpop.permute.xlu0 %2919 }
 0x5ff   : > { %6095 = vmatprep.subr.bf16.mxu0 %v9580_v22 }
 0x602   : > { %v2971_v30 = vpop.permute.xlu0 %2970 }
 0x605   : > { %6086 = vmatmul.mubr.msk.bf16.vlgmr.msra.gmra.mxu0 %vm898_vm1, %v2869_v27 }
 0x606   : > { %6097 = vmatprep.mubr.msk.bf16.mxu0 %vm7078_vm0, %v9580_v22  ;;  %v3022_v23 = vpop.permute.xlu0 %3021 }
 0x60a   : > { %v3073_v31 = vpop.permute.xlu0 %3072 }
 0x60e   : > { %v3124_v1 = vpop.permute.xlu0 %3123 }
 0x612   : > { %v3175_v4 = vpop.permute.xlu0 %3174 }
 0x629   : > { %v2427_v8 = vpop.xlane.xlu1 %2426 }
 0x62a   : > { %6702 = vrcp.f32 %v2427_v8 }
 0x62d   : > { %v2973_v51 = vpop.permute.xlu1 %2972 }
 0x62e   : > { %v2978_v34 = vsel %vm898_vm1, %v2973_v51, 0 }
 0x62f   : > { %6096 = vmatpush3.bf16.xpose.msra.mxu0 %v2978_v34 }
 0x630   : > { %6107 = vmatprep.subr.bf16.mxu0 %v9580_v22 }
 0x631   : > { %v3024_v63 = vpop.permute.xlu1 %3023 }
 0x632   : > { %v3029_v17 = vsel %vm898_vm1, %v3024_v63, 0 }
 0x635   : > { %v3075_v54 = vpop.permute.xlu1 %3074 }
 0x636   : > { %v3080_v32 = vsel %vm898_vm1, %v3075_v54, 0  ;;  %6098 = vmatmul.mubr.msk.bf16.vlgmr.msra.gmra.mxu0 %vm898_vm1, %v2971_v30 }
 0x637   : > { %v6703_v26 = vpop.eup %6702  ;;  %6108 = vmatpush3.bf16.xpose.msra.mxu0 %v3080_v32  ;;  %6109 = vmatprep.mubr.msk.bf16.mxu0 %vm7078_vm0, %v9580_v22 }
 0x638   : > { %v2459_v38 = vmul.f32 %v6703_v26, %v8208_v6  ;;  %6119 = vmatprep.subr.bf16.mxu0 %v9580_v22 }
 0x639   : > { %v3126_v24 = vpop.permute.xlu1 %3125 }
 0x63a   : > { %v2475_v56 = vsel %vm7673_vm6, 0.0, %v2459_v38  ;;  %4927 = vst.msk [vmem:[%s7803_s18 + $0x1d8] sm:$0xff] %vm1291_vm5, %v2459_v38  ;;  %v3131_v42 = vsel %vm898_vm1, %v3126_v24, 0 }
 0x63b   : > { %v2483_v37 = vpack.c.bf16 %v2475_v56, %v2474_v50 }
 0x63d   : > { %6080 = vmatmul.mubr.msk.bf16.vlgmr.msra.gmra.mxu1 %vm1291_vm5, %v2483_v37  ;;  %v3177_v39 = vpop.permute.xlu1 %3176 }
 0x63e   : > { %6090 = vmatpush3.bf16.xpose.msra.mxu1 %v2927_v3  ;;  %v3182_v6 = vsel %vm898_vm1, %v3177_v39, 0  ;;  %6110 = vmatmul.mubr.msk.bf16.vlgmr.msra.gmra.mxu0 %vm898_vm1, %v3073_v31 }
 0x63f   : > { %6120 = vmatpush3.bf16.xpose.msra.mxu0 %v3182_v6  ;;  %6091 = vmatprep.mubr.msk.bf16.mxu1 %vm7078_vm0, %v9580_v22 }
 0x640   : > { %6101 = vmatprep.subr.bf16.mxu1 %v9580_v22  ;;  %6121 = vmatprep.mubr.msk.bf16.mxu0 %vm7078_vm0, %v9580_v22 }
 0x641   : > { %6131 = vmatprep.subr.bf16.mxu0 %v9580_v22  ;;  %v3228_v49 = vpop.permute.xlu1 %3227 }
 0x642   : > { %v3233_v7 = vsel %vm898_vm1, %v3228_v49, 0 }
 0x645   : > { %6092 = vmatmul.mubr.msk.bf16.vlgmr.msra.gmra.mxu1 %vm898_vm1, %v2920_v0  ;;  %v3226_v13 = vpop.permute.xlu1 %3225 }
 0x646   : > { %6102 = vmatpush3.bf16.xpose.msra.mxu1 %v3029_v17  ;;  %6122 = vmatmul.mubr.msk.bf16.vlgmr.msra.gmra.mxu0 %vm898_vm1, %v3175_v4 }
 0x647   : > { %6103 = vmatprep.mubr.msk.bf16.mxu1 %vm7078_vm0, %v9580_v22  ;;  %6113 = vmatprep.subr.bf16.mxu1 %v9580_v22 }
 0x648   : > { %6133 = vmatprep.mubr.msk.bf16.mxu0 %vm7078_vm0, %v9580_v22 }
 0x64d   : > { %6104 = vmatmul.mubr.msk.bf16.vlgmr.msra.gmra.mxu1 %vm898_vm1, %v3022_v23 }
 0x64e   : > { %6114 = vmatpush3.bf16.xpose.msra.mxu1 %v3131_v42  ;;  %6115 = vmatprep.mubr.msk.bf16.mxu1 %vm7078_vm0, %v9580_v22 }
 0x64f   : > { %6125 = vmatprep.subr.bf16.mxu1 %v9580_v22 }
 0x655   : > { %6116 = vmatmul.mubr.msk.bf16.vlgmr.msra.gmra.mxu1 %vm898_vm1, %v3124_v1 }
 0x656   : > { %6126 = vmatpush3.bf16.xpose.msra.mxu1 %v3233_v7  ;;  %6127 = vmatprep.mubr.msk.bf16.mxu1 %vm7078_vm0, %v9580_v22 }
 0x657   : > { %6137 = vmatprep.subr.bf16.mxu1 %v9580_v22 }
 0x65d   : > { %6128 = vmatmul.mubr.msk.bf16.vlgmr.msra.gmra.mxu1 %vm898_vm1, %v3226_v13 }
 0x65e   : > { %6139 = vmatprep.mubr.msk.bf16.mxu1 %vm7078_vm0, %v9580_v22 }
 0x695   : > { %v8383_v21 = vpop.f32.mrf.mxu0 }
 0x697   : > { %v6039_v60 = vpop.f32.mrf.mxu0 }
 0x699   : > { %v8385_v27 = vpop.f32.mrf.mxu0 }
 0x69b   : > { %v6040_v0 = vpop.f32.mrf.mxu0 }
 0x6a8   : > { %v8389_v8 = vpop.f32.mrf.mxu1 }
 0x6a9   : > { %9581 = vst [vmem:[#allocation38_spill] sm:$0xff] %v8389_v8 }
 0x6aa   : > { %v6045_v30 = vpop.f32.mrf.mxu1 }
 0x6ac   : > { %v8391_v51 = vpop.f32.mrf.mxu1 }
 0x6ad   : > { %9582 = vst [vmem:[#allocation39_spill] sm:$0xff] %v8391_v51  ;;  %v8395_v63 = vpop.f32.mrf.mxu0 }
 0x6ae   : > { %9583 = vst [vmem:[#allocation40_spill] sm:$0xff] %v8395_v63  ;;  %v6046_v23 = vpop.f32.mrf.mxu1 }
 0x6af   : > { %v6051_v54 = vpop.f32.mrf.mxu0 }
 0x6b1   : > { %v8397_v32 = vpop.f32.mrf.mxu0  ;;  %v8399_v26 = vpop.f32.mrf.mxu1 }
 0x6b2   : > { %9584 = vst [vmem:[#allocation41_spill] sm:$0xff] %v8397_v32  ;;  %9585 = vst [vmem:[#allocation42_spill] sm:$0xff] %v8399_v26 }
 0x6b3   : > { %v6052_v31 = vpop.f32.mrf.mxu0  ;;  %v6057_v24 = vpop.f32.mrf.mxu1 }
 0x6b5   : > { %v8403_v50 = vpop.f32.mrf.mxu1  ;;  %v8405_v56 = vpop.f32.mrf.mxu0 }
 0x6b6   : > { %9586 = vst [vmem:[#allocation43_spill] sm:$0xff] %v8403_v50  ;;  %9587 = vst [vmem:[#allocation44_spill] sm:$0xff] %v8405_v56 }
 0x6b7   : > { %v6058_v3 = vpop.f32.mrf.mxu1  ;;  %v6063_v39 = vpop.f32.mrf.mxu0 }
 0x6b9   : > { %v8409_v6 = vpop.f32.mrf.mxu0  ;;  %v8411_v1 = vpop.f32.mrf.mxu1 }
 0x6ba   : > { %9588 = vst [vmem:[#allocation45_spill] sm:$0xff] %v8409_v6  ;;  %9589 = vst [vmem:[#allocation46_spill] sm:$0xff] %v8411_v1 }
 0x6bb   : > { %v6064_v17 = vpop.f32.mrf.mxu0  ;;  %v6069_v42 = vpop.f32.mrf.mxu1 }
 0x6bd   : > { %v8415_v49 = vpop.f32.mrf.mxu1  ;;  %v8417_v7 = vpop.f32.mrf.mxu0 }
 0x6be   : > { %9590 = vst [vmem:[#allocation47_spill] sm:$0xff] %v8415_v49  ;;  %9591 = vst [vmem:[#allocation48_spill] sm:$0xff] %v8417_v7 }
 0x6bf   : > { %v6070_v60 = vpop.f32.mrf.mxu1  ;;  %v6075_v0 = vpop.f32.mrf.mxu0 }
 0x6c1   : > { %v8421_v30 = vpop.f32.mrf.mxu0 }
 0x6c2   : > { %9592 = vst [vmem:[#allocation49_spill] sm:$0xff] %v8421_v30 }
 0x6c3   : > { %v6076_v54 = vpop.f32.mrf.mxu0 }
 0x6c5   : > { %v2912_v31 = vpop.f32.mrf.mxu0 }
 0x6c6   : > { %v8427_v24 = vsel %vm7541_vm4, -1e+18, %v2912_v31 }
 0x6c7   : > { %v3292_v3 = vsel %vm1291_vm5, %v8427_v24, -inf  ;;  %v6087_v39 = vpop.f32.mrf.mxu0 }
 0x6c8   : > { %3293 = vmax.xlane.f32.xlu0 %v3292_v3 }
 0x6c9   : > { %v2915_v17 = vpop.f32.mrf.mxu0 }
 0x6ca   : > { %v8433_v42 = vsel %vm7541_vm4, -1e+18, %v2915_v17 }
 0x6cb   : > { %v3295_v60 = vsel %vm1291_vm5, %v8433_v42, -inf  ;;  %v6088_v0 = vpop.f32.mrf.mxu0 }
 0x6cc   : > { %3296 = vmax.xlane.f32.xlu1 %v3295_v60 }
 0x6f6   : > { %v3014_v54 = vpop.f32.mrf.mxu0 }
 0x6f8   : > { %v6099_v23 = vpop.f32.mrf.mxu0 }
 0x6fa   : > { %v3017_v13 = vpop.f32.mrf.mxu0 }
 0x6fb   : > { %v8439_v31 = vsel %vm7579_vm9, -1e+18, %v3017_v13 }
 0x6fc   : > { %v3307_v3 = vsel %vm1291_vm5, %v8439_v31, -inf  ;;  %v6100_v39 = vpop.f32.mrf.mxu0 }
 0x6fd   : > { %3308 = vmax.xlane.f32.xlu1 %v3307_v3  ;;  %v8443_v4 = vpop.f32.mrf.mxu1 }
 0x6fe   : > { %9593 = vst [vmem:[#allocation50_spill] sm:$0xff] %v8443_v4  ;;  %v3116_v17 = vpop.f32.mrf.mxu0 }
 0x6ff   : > { %v6081_v37 = vpop.f32.mrf.mxu1 }
 0x700   : > { %v6111_v38 = vpop.f32.mrf.mxu0 }
 0x701   : > { %v8445_v34 = vpop.f32.mrf.mxu1 }
 0x702   : > { %9594 = vst [vmem:[#allocation51_spill] sm:$0xff] %v8445_v34  ;;  %v3119_v60 = vpop.f32.mrf.mxu0 }
 0x703   : > { %v6082_v0 = vpop.f32.mrf.mxu1 }
 0x704   : > { %v6112_v12 = vpop.f32.mrf.mxu0 }
 0x705   : > { %v2963_v13 = vpop.f32.mrf.mxu1 }
 0x706   : > { %v8451_v5 = vsel %vm7560_vm7, -1e+18, %v2963_v13  ;;  %v3218_v39 = vpop.f32.mrf.mxu0  ;;  %v8463_v13 = vsel %vm7579_vm9, -1e+18, %v3014_v54 }
 0x707   : > { %v3298_v3 = vsel %vm1291_vm5, %v8451_v5, -inf  ;;  %v6093_v7 = vpop.f32.mrf.mxu1 }
 0x708   : > { %v6123_v37 = vpop.f32.mrf.mxu0  ;;  %3299 = vmax.xlane.f32.xlu0 %v3298_v3  ;;  %v3304_v7 = vsel %vm1291_vm5, %v8463_v13, -inf }
 0x709   : > { %v2966_v38 = vpop.f32.mrf.mxu1 }
 0x70a   : > { %v8457_v30 = vsel %vm7560_vm7, -1e+18, %v2966_v38  ;;  %v3221_v23 = vpop.f32.mrf.mxu0 }
 0x70b   : > { %v3301_v12 = vsel %vm1291_vm5, %v8457_v30, -inf  ;;  %v6094_v0 = vpop.f32.mrf.mxu1 }
 0x70c   : > { %v6124_v4 = vpop.f32.mrf.mxu0  ;;  %3302 = vmax.xlane.f32.xlu0 %v3301_v12 }
 0x70d   : > { %v3065_v34 = vpop.f32.mrf.mxu1 }
 0x70e   : > { %v8469_v37 = vsel %vm7598_vm11, -1e+18, %v3065_v34  ;;  %v8485_v34 = vsel %vm7617_vm13, -1e+18, %v3119_v60 }
 0x70f   : > { %v6105_v3 = vpop.f32.mrf.mxu1  ;;  %v3310_v54 = vsel %vm1291_vm5, %v8469_v37, -inf  ;;  %v3319_v1 = vsel %vm1291_vm5, %v8485_v34, -inf }
 0x710   : > { %3305 = vmax.xlane.f32.xlu0 %v3304_v7  ;;  %v8481_v3 = vsel %vm7617_vm13, -1e+18, %v3116_v17 }
 0x711   : > { %v3068_v38 = vpop.f32.mrf.mxu1 }
 0x712   : > { %v8473_v0 = vsel %vm7598_vm11, -1e+18, %v3068_v38  ;;  %v3316_v38 = vsel %vm1291_vm5, %v8481_v3, -inf }
 0x713   : > { %v3313_v4 = vsel %vm1291_vm5, %v8473_v0, -inf  ;;  %v6106_v12 = vpop.f32.mrf.mxu1 }
 0x714   : > { %3311 = vmax.xlane.f32.xlu0 %v3310_v54  ;;  %3314 = vmax.xlane.f32.xlu1 %v3313_v4 }
 0x715   : > { %v3167_v7 = vpop.f32.mrf.mxu1 }
 0x716   : > { %v8493_v12 = vsel %vm7636_vm15, -1e+18, %v3167_v7  ;;  %v8509_v7 = vsel %vm7655_vm3, -1e+18, %v3221_v23 }
 0x717   : > { %v6117_v49 = vpop.f32.mrf.mxu1  ;;  %v3322_v54 = vsel %vm1291_vm5, %v8493_v12, -inf }
 0x718   : > { %3317 = vmax.xlane.f32.xlu0 %v3316_v38  ;;  %3320 = vmax.xlane.f32.xlu1 %v3319_v1  ;;  %v8505_v49 = vsel %vm7655_vm3, -1e+18, %v3218_v39 }
 0x719   : > { %v3170_v17 = vpop.f32.mrf.mxu1  ;;  %v3328_v38 = vsel %vm1291_vm5, %v8505_v49, -inf }
 0x71a   : > { %v8497_v60 = vsel %vm7636_vm15, -1e+18, %v3170_v17  ;;  %v3331_v17 = vsel %vm1291_vm5, %v8509_v7, -inf }
 0x71b   : > { %v3325_v4 = vsel %vm1291_vm5, %v8497_v60, -inf  ;;  %v6118_v56 = vpop.f32.mrf.mxu1 }
 0x71c   : > { %3323 = vmax.xlane.f32.xlu0 %v3322_v54  ;;  %3326 = vmax.xlane.f32.xlu1 %v3325_v4 }
 0x71d   : > { %v3269_v1 = vpop.f32.mrf.mxu1 }
 0x71e   : > { %v8517_v56 = vsel %vm7673_vm6, -1e+18, %v3269_v1 }
 0x71f   : > { %v6129_v6 = vpop.f32.mrf.mxu1  ;;  %v3334_v23 = vsel %vm1291_vm5, %v8517_v56, -inf }
 0x720   : > { %3329 = vmax.xlane.f32.xlu0 %v3328_v38  ;;  %3332 = vmax.xlane.f32.xlu1 %v3331_v17 }
 0x721   : > { %v3272_v39 = vpop.f32.mrf.mxu1 }
 0x722   : > { %v8538_v38 = vsel %vm7673_vm6, -1e+18, %v3272_v39 }
 0x723   : > { %v6130_v54 = vpop.f32.mrf.mxu1  ;;  %v3337_v17 = vsel %vm1291_vm5, %v8538_v38, -inf }
 0x724   : > { %3335 = vmax.xlane.f32.xlu0 %v3334_v23 }
 0x731   : > { %3539 = vrot.lane.b32.xlu1 %v7529_v45, %s7080_s0 }
 0x735   : > { %3586 = vrot.lane.b32.xlu1 %v7429_v62, %s7080_s0 }
 0x739   : > { %3633 = vrot.lane.b32.xlu1 %v7421_v52, %s7080_s0 }
 0x73a   : > { %3492 = vrot.lane.b32.xlu0 %v7508_v40, %s7080_s0 }
 0x73d   : > { %3727 = vrot.lane.b32.xlu1 %v7444_v20, %s7080_s0 }
 0x73e   : > { %3680 = vrot.lane.b32.xlu0 %v7452_v29, %s7080_s0 }
 0x742   : > { %3774 = vrot.lane.b32.xlu0 %v7475_v59, %s7080_s0 }
 0x751   : > { %v3294_v6 = vpop.xlane.xlu0 %3293 }
 0x752   : > { %v3340_v4 = vsub.f32 %v8427_v24, %v3294_v6 }
 0x754   : > { %v3356_v1 = vmul.f32 1.442695, %v3340_v4 }
 0x755   : > { %v3297_v24 = vpop.xlane.xlu1 %3296 }
 0x756   : > { %6704 = vpow2.f32 %v3356_v1  ;;  %v3341_v6 = vsub.f32 %v8433_v42, %v3297_v24 }
 0x758   : > { %v3358_v4 = vmul.f32 1.442695, %v3341_v6 }
 0x75a   : > { %6706 = vpow2.f32 %v3358_v4 }
 0x761   : > { %3338 = vmax.xlane.f32.xlu1 %v3337_v17 }
 0x763   : > { %v8542_v23 = vpop.eup %6704 }
 0x764   : > { %v3388_v54 = vsel %vm1291_vm5, %v8542_v23, 0.0 }
 0x765   : > { %3389 = vadd.xlane.f32.xlu0 %v3388_v54 }
 0x767   : > { %v8549_v26 = vpop.eup %6706 }
 0x768   : > { %v3391_v54 = vsel %vm1291_vm5, %v8549_v26, 0.0 }
 0x772   : > { %3821 = vrot.lane.b32.xlu1 %v7467_v48, %s7080_s0 }
 0x786   : > { %v3309_v39 = vpop.xlane.xlu1 %3308 }
 0x787   : > { %v3345_v50 = vsub.f32 %v8439_v31, %v3309_v39 }
 0x789   : > { %v3366_v42 = vmul.f32 1.442695, %v3345_v50 }
 0x791   : > { %v3300_v1 = vpop.xlane.xlu0 %3299 }
 0x792   : > { %v3342_v17 = vsub.f32 %v8451_v5, %v3300_v1 }
 0x794   : > { %v3360_v63 = vmul.f32 1.442695, %v3342_v17 }
 0x795   : > { %v3303_v32 = vpop.xlane.xlu0 %3302 }
 0x796   : > { %6708 = vpow2.f32 %v3360_v63  ;;  %v3343_v48 = vsub.f32 %v8457_v30, %v3303_v32  ;;  %3392 = vadd.xlane.f32.xlu1 %v3391_v54 }
 0x798   : > { %v3362_v24 = vmul.f32 1.442695, %v3343_v48 }
 0x799   : > { %v3306_v6 = vpop.xlane.xlu0 %3305 }
 0x79a   : > { %6710 = vpow2.f32 %v3362_v24  ;;  %v3344_v4 = vsub.f32 %v8463_v13, %v3306_v6 }
 0x79b   : > { %6712 = vpow2.f32 %v3366_v42 }
 0x79c   : > { %v3364_v8 = vmul.f32 1.442695, %v3344_v4 }
 0x79d   : > { %v3312_v5 = vpop.xlane.xlu0 %3311  ;;  %v3315_v1 = vpop.xlane.xlu1 %3314 }
 0x79e   : > { %6714 = vpow2.f32 %v3364_v8  ;;  %v3346_v31 = vsub.f32 %v8469_v37, %v3312_v5  ;;  %v3347_v39 = vsub.f32 %v8473_v0, %v3315_v1 }
 0x7a0   : > { %v3368_v17 = vmul.f32 1.442695, %v3346_v31  ;;  %v3370_v63 = vmul.f32 1.442695, %v3347_v39 }
 0x7a1   : > { %v3318_v51 = vpop.xlane.xlu0 %3317  ;;  %v3321_v32 = vpop.xlane.xlu1 %3320 }
 0x7a2   : > { %6716 = vpow2.f32 %v3368_v17  ;;  %v3348_v48 = vsub.f32 %v8481_v3, %v3318_v51  ;;  %v3349_v50 = vsub.f32 %v8485_v34, %v3321_v32 }
 0x7a3   : > { %v8561_v30 = vpop.eup %6708  ;;  %6718 = vpow2.f32 %v3370_v63 }
 0x7a4   : > { %v3372_v13 = vmul.f32 1.442695, %v3348_v48  ;;  %v3374_v54 = vmul.f32 1.442695, %v3349_v50  ;;  %v3394_v8 = vsel %vm1291_vm5, %v8561_v30, 0.0 }
 0x7a5   : > { %v3324_v37 = vpop.xlane.xlu0 %3323  ;;  %v3327_v42 = vpop.xlane.xlu1 %3326  ;;  %3395 = vadd.xlane.f32.xlu0 %v3394_v8 }
 0x7a6   : > { %6720 = vpow2.f32 %v3372_v13  ;;  %v3350_v0 = vsub.f32 %v8493_v12, %v3324_v37  ;;  %v3351_v24 = vsub.f32 %v8497_v60, %v3327_v42 }
 0x7a7   : > { %v8567_v6 = vpop.eup %6710  ;;  %6722 = vpow2.f32 %v3374_v54 }
 0x7a8   : > { %v3376_v51 = vmul.f32 1.442695, %v3350_v0  ;;  %v3378_v3 = vmul.f32 1.442695, %v3351_v24  ;;  %v3397_v34 = vsel %vm1291_vm5, %v8567_v6, 0.0  ;;  %v8571_v4 = vpop.eup %6712 }
 0x7a9   : > { %v3330_v5 = vpop.xlane.xlu0 %3329  ;;  %v3333_v1 = vpop.xlane.xlu1 %3332  ;;  %3398 = vadd.xlane.f32.xlu1 %v3397_v34  ;;  %v3403_v32 = vsel %vm1291_vm5, %v8571_v4, 0.0 }
 0x7aa   : > { %6724 = vpow2.f32 %v3376_v51  ;;  %v3352_v31 = vsub.f32 %v8505_v49, %v3330_v5  ;;  %v3353_v12 = vsub.f32 %v8509_v7, %v3333_v1 }
 0x7ab   : > { %v8575_v39 = vpop.eup %6714  ;;  %6726 = vpow2.f32 %v3378_v3 }
 0x7ac   : > { %v3380_v60 = vmul.f32 1.442695, %v3352_v31  ;;  %v3382_v17 = vmul.f32 1.442695, %v3353_v12  ;;  %v3400_v63 = vsel %vm1291_vm5, %v8575_v39, 0.0 }
 0x7ad   : > { %v3540_v48 = vpop.permute.xlu1 %3539  ;;  %3401 = vadd.xlane.f32.xlu0 %v3400_v63  ;;  %v3336_v50 = vpop.xlane.xlu0 %3335  ;;  %3404 = vadd.xlane.f32.xlu1 %v3403_v32 }
 0x7ae   : > { %6728 = vpow2.f32 %v3380_v60  ;;  %v3354_v49 = vsub.f32 %v8517_v56, %v3336_v50  ;;  %6138 = vmatpush3.bf16.msra.mxu1 %v3540_v48 }
 0x7af   : > { %v8582_v7 = vpop.eup %6716  ;;  %6730 = vpow2.f32 %v3382_v17  ;;  %6149 = vmatprep.subr.bf16.mxu1 %v9580_v22 }
 0x7b0   : > { %v8585_v13 = vpop.eup %6718  ;;  %v3384_v54 = vmul.f32 1.442695, %v3354_v49  ;;  %v3406_v8 = vsel %vm1291_vm5, %v8582_v7, 0.0 }
 0x7b1   : > { %3407 = vadd.xlane.f32.xlu0 %v3406_v8  ;;  %v3493_v37 = vpop.permute.xlu0 %3492  ;;  %v3409_v42 = vsel %vm1291_vm5, %v8585_v13, 0.0  ;;  %v3587_v48 = vpop.permute.xlu1 %3586 }
 0x7b2   : > { %6732 = vpow2.f32 %v3384_v54  ;;  %3410 = vadd.xlane.f32.xlu1 %v3409_v42  ;;  %6132 = vmatpush3.bf16.msra.mxu0 %v3493_v37 }
 0x7b3   : > { %v8591_v56 = vpop.eup %6720  ;;  %6143 = vmatprep.subr.bf16.mxu0 %v9580_v22 }
 0x7b4   : > { %v8594_v0 = vpop.eup %6722  ;;  %v3412_v24 = vsel %vm1291_vm5, %v8591_v56, 0.0 }
 0x7b5   : > { %3413 = vadd.xlane.f32.xlu0 %v3412_v24  ;;  %v3415_v51 = vsel %vm1291_vm5, %v8594_v0, 0.0  ;;  %v8628_v50 = vpop.permute.xlu1 %3633  ;;  %v8632_v49 = vpop.permute.xlu0 %3680 }
 0x7b6   : > { %3416 = vadd.xlane.f32.xlu1 %v3415_v51 }
 0x7b7   : > { %v8600_v3 = vpop.eup %6724 }
 0x7b8   : > { %v8602_v34 = vpop.eup %6726  ;;  %v3418_v5 = vsel %vm1291_vm5, %v8600_v3, 0.0 }
 0x7b9   : > { %3419 = vadd.xlane.f32.xlu0 %v3418_v5  ;;  %v3421_v1 = vsel %vm1291_vm5, %v8602_v34, 0.0  ;;  %v8634_v54 = vpop.permute.xlu1 %3727 }
 0x7ba   : > { %3422 = vadd.xlane.f32.xlu1 %v3421_v1 }
 0x7bb   : > { %v8608_v31 = vpop.eup %6728 }
 0x7bc   : > { %v8610_v12 = vpop.eup %6730  ;;  %v3424_v60 = vsel %vm1291_vm5, %v8608_v31, 0.0 }
 0x7bd   : > { %3425 = vadd.xlane.f32.xlu0 %v3424_v60  ;;  %v3427_v17 = vsel %vm1291_vm5, %v8610_v12, 0.0 }
 0x7be   : > { %3428 = vadd.xlane.f32.xlu1 %v3427_v17 }
 0x7bf   : > { %v8616_v63 = vpop.eup %6732 }
 0x7c0   : > { %v3430_v32 = vsel %vm1291_vm5, %v8616_v63, 0.0 }
 0x7c1   : > { %3431 = vadd.xlane.f32.xlu0 %v3430_v32 }
 0x7cf   : > { %3921 = vrot.lane.b32.xlu1 %v7383_v16, %s7081_s4 }
 0x7d7   : > { %3870 = vrot.lane.b32.xlu0 %v7370_v2, %s7081_s4  ;;  %v8638_v2 = vpop.permute.xlu0 %3774 }
 0x7db   : > { %3868 = vrot.lane.b32.xlu0 %v7380_v14, %s7081_s4 }
 0x7df   : > { %3919 = vrot.lane.b32.xlu0 %v7403_v33, %s7081_s4 }
 0x7e3   : > { %3970 = vrot.lane.b32.xlu0 %v7424_v58, %s7081_s4 }
 0x7e7   : > { %4021 = vrot.lane.b32.xlu0 %v7447_v25, %s7081_s4 }
 0x7ea   : > { %v3339_v16 = vpop.xlane.xlu1 %3338 }
 0x7eb   : > { %v3355_v14 = vsub.f32 %v8538_v38, %v3339_v16  ;;  %4072 = vrot.lane.b32.xlu0 %v7470_v53, %s7081_s4 }
 0x7ed   : > { %v3386_v33 = vmul.f32 1.442695, %v3355_v14 }
 0x7ee   : > { %v3390_v8 = vpop.xlane.xlu0 %3389  ;;  %v8660_v53 = vpop.permute.xlu1 %3821 }
 0x7ef   : > { %6734 = vpow2.f32 %v3386_v33  ;;  %4123 = vrot.lane.b32.xlu0 %v7487_v11, %s7081_s4 }
 0x7f0   : > { %6736 = vrcp.f32 %v3390_v8 }
 0x7f3   : > { %4174 = vrot.lane.b32.xlu0 %v7510_v41, %s7081_s4 }
 0x7fc   : > { %v8647_v58 = vpop.eup %6734 }
 0x7fd   : > { %v6737_v25 = vpop.eup %6736  ;;  %v3433_v37 = vsel %vm1291_vm5, %v8647_v58, 0.0 }
 0x7fe   : > { %v3452_v38 = vmul.f32 %v6737_v25, %v8542_v23  ;;  %3434 = vadd.xlane.f32.xlu1 %v3433_v37 }
 0x800   : > { %4872 = vst.msk [vmem:[%s7803_s18 + $0x20] sm:$0xff] %vm1291_vm5, %v3452_v38 }
 0x80f   : > { %3972 = vrot.lane.b32.xlu1 %v7406_v35, %s7081_s4 }
 0x813   : > { %4023 = vrot.lane.b32.xlu1 %v7427_v61, %s7081_s4 }
 0x817   : > { %4074 = vrot.lane.b32.xlu1 %v7450_v28, %s7081_s4 }
 0x81b   : > { %4125 = vrot.lane.b32.xlu1 %v7473_v55, %s7081_s4  ;;  %v3468_v55 = vsel %vm7541_vm4, 0.0, %v3452_v38 }
 0x81f   : > { %4176 = vrot.lane.b32.xlu1 %v7490_v15, %s7081_s4  ;;  %v3393_v11 = vpop.xlane.xlu1 %3392 }
 0x820   : > { %6738 = vrcp.f32 %v3393_v11 }
 0x823   : > { %4227 = vrot.lane.b32.xlu1 %v7512_v18, %s7081_s4 }
 0x827   : > { %4225 = vrot.lane.b32.xlu1 %v7527_v44, %s7081_s4 }
 0x82d   : > { %v6739_v35 = vpop.eup %6738 }
 0x82e   : > { %v3453_v61 = vmul.f32 %v6739_v35, %v8549_v26  ;;  %v3396_v28 = vpop.xlane.xlu0 %3395 }
 0x82f   : > { %6740 = vrcp.f32 %v3396_v28 }
 0x830   : > { %4873 = vst.msk [vmem:[%s7803_s18 + $0x28] sm:$0xff] %vm1291_vm5, %v3453_v61  ;;  %v3469_v15 = vsel %vm7541_vm4, 0.0, %v3453_v61 }
 0x831   : > { %v3484_v41 = vpack.c.bf16 %v3469_v15, %v3468_v55 }
 0x832   : > { %v3399_v23 = vpop.xlane.xlu1 %3398 }
 0x833   : > { %6742 = vrcp.f32 %v3399_v23  ;;  %6134 = vmatmul.mubr.msk.bf16.vlgmr.msra.gmra.mxu0 %vm1291_vm5, %v3484_v41 }
 0x834   : > { %6144 = vmatpush3.bf16.msra.mxu0 %v3587_v48  ;;  %6145 = vmatprep.mubr.msk.bf16.mxu0 %vm7078_vm0, %v9580_v22 }
 0x835   : > { %6155 = vmatprep.subr.bf16.mxu0 %v9580_v22 }
 0x836   : > { %v3402_v18 = vpop.xlane.xlu0 %3401  ;;  %v3405_v44 = vpop.xlane.xlu1 %3404 }
 0x837   : > { %6744 = vrcp.f32 %v3402_v18 }
 0x838   : > { %6746 = vrcp.f32 %v3405_v44 }
 0x83a   : > { %v3408_v26 = vpop.xlane.xlu0 %3407 }
 0x83b   : > { %6748 = vrcp.f32 %v3408_v26  ;;  %v3411_v42 = vpop.xlane.xlu1 %3410 }
 0x83c   : > { %v6741_v24 = vpop.eup %6740  ;;  %6750 = vrcp.f32 %v3411_v42 }
 0x83d   : > { %v3454_v51 = vmul.f32 %v6741_v24, %v8561_v30 }
 0x83e   : > { %v3414_v5 = vpop.xlane.xlu0 %3413 }
 0x83f   : > { %4880 = vst.msk [vmem:[%s7803_s18 + $0x60] sm:$0xff] %vm1291_vm5, %v3454_v51  ;;  %6752 = vrcp.f32 %v3414_v5  ;;  %v3417_v1 = vpop.xlane.xlu1 %3416  ;;  %v3470_v16 = vsel %vm7560_vm7, 0.0, %v3454_v51 }
 0x840   : > { %v6743_v60 = vpop.eup %6742  ;;  %6754 = vrcp.f32 %v3417_v1 }
 0x841   : > { %v3455_v17 = vmul.f32 %v6743_v60, %v8567_v6 }
 0x842   : > { %v3420_v32 = vpop.xlane.xlu0 %3419 }
 0x843   : > { %4881 = vst.msk [vmem:[%s7803_s18 + $0x68] sm:$0xff] %vm1291_vm5, %v3455_v17  ;;  %6756 = vrcp.f32 %v3420_v32  ;;  %v3423_v48 = vpop.xlane.xlu1 %3422  ;;  %v3471_v30 = vsel %vm7560_vm7, 0.0, %v3455_v17 }
 0x844   : > { %v6745_v14 = vpop.eup %6744  ;;  %6758 = vrcp.f32 %v3423_v48  ;;  %v3485_v33 = vpack.c.bf16 %v3471_v30, %v3470_v16 }
 0x845   : > { %v6747_v8 = vpop.eup %6746  ;;  %v3456_v25 = vmul.f32 %v6745_v14, %v8575_v39 }
 0x846   : > { %v3457_v6 = vmul.f32 %v6747_v8, %v8571_v4  ;;  %v3426_v37 = vpop.xlane.xlu0 %3425  ;;  %6140 = vmatmul.mubr.msk.bf16.vlgmr.msra.gmra.mxu1 %vm1291_vm5, %v3485_v33 }
 0x847   : > { %4888 = vst.msk [vmem:[%s7803_s18 + $0xa0] sm:$0xff] %vm1291_vm5, %v3456_v25  ;;  %6760 = vrcp.f32 %v3426_v37  ;;  %6150 = vmatpush3.bf16.msra.mxu1 %v8628_v50  ;;  %v3429_v38 = vpop.xlane.xlu1 %3428  ;;  %v3472_v11 = vsel %vm7579_vm9, 0.0, %v3456_v25  ;;  %6151 = vmatprep.mubr.msk.bf16.mxu1 %vm7078_vm0, %v9580_v22 }
 0x848   : > { %v6749_v39 = vpop.eup %6748  ;;  %4889 = vst.msk [vmem:[%s7803_s18 + $0xa8] sm:$0xff] %vm1291_vm5, %v3457_v6  ;;  %6762 = vrcp.f32 %v3429_v38  ;;  %v3473_v4 = vsel %vm7579_vm9, 0.0, %v3457_v6  ;;  %6161 = vmatprep.subr.bf16.mxu1 %v9580_v22 }
 0x849   : > { %v6751_v35 = vpop.eup %6750  ;;  %v3458_v50 = vmul.f32 %v6749_v39, %v8582_v7  ;;  %v3486_v61 = vpack.c.bf16 %v3473_v4, %v3472_v11 }
 0x84a   : > { %v3459_v28 = vmul.f32 %v6751_v35, %v8585_v13  ;;  %v3432_v55 = vpop.xlane.xlu0 %3431 }
 0x84b   : > { %4896 = vst.msk [vmem:[%s7803_s18 + $0xe0] sm:$0xff] %vm1291_vm5, %v3458_v50  ;;  %6764 = vrcp.f32 %v3432_v55  ;;  %6146 = vmatmul.mubr.msk.bf16.vlgmr.msra.gmra.mxu0 %vm1291_vm5, %v3486_v61  ;;  %v3474_v15 = vsel %vm7598_vm11, 0.0, %v3458_v50 }
 0x84c   : > { %v6753_v41 = vpop.eup %6752  ;;  %4897 = vst.msk [vmem:[%s7803_s18 + $0xe8] sm:$0xff] %vm1291_vm5, %v3459_v28  ;;  %6156 = vmatpush3.bf16.msra.mxu0 %v8632_v49  ;;  %v3475_v7 = vsel %vm7598_vm11, 0.0, %v3459_v28  ;;  %6157 = vmatprep.mubr.msk.bf16.mxu0 %vm7078_vm0, %v9580_v22 }
 0x84d   : > { %v6755_v13 = vpop.eup %6754  ;;  %v3460_v23 = vmul.f32 %v6753_v41, %v8591_v56  ;;  %v3487_v18 = vpack.c.bf16 %v3475_v7, %v3474_v15  ;;  %6167 = vmatprep.subr.bf16.mxu0 %v9580_v22 }
 0x84e   : > { %v3461_v44 = vmul.f32 %v6755_v13, %v8594_v0 }
 0x84f   : > { %v3476_v26 = vsel %vm7617_vm13, 0.0, %v3460_v23  ;;  %4904 = vst.msk [vmem:[%s7803_s18 + $0x120] sm:$0xff] %vm1291_vm5, %v3460_v23  ;;  %6152 = vmatmul.mubr.msk.bf16.vlgmr.msra.gmra.mxu1 %vm1291_vm5, %v3487_v18 }
 0x850   : > { %v6757_v49 = vpop.eup %6756  ;;  %v3477_v42 = vsel %vm7617_vm13, 0.0, %v3461_v44  ;;  %4905 = vst.msk [vmem:[%s7803_s18 + $0x128] sm:$0xff] %vm1291_vm5, %v3461_v44  ;;  %6162 = vmatpush3.bf16.msra.mxu1 %v8634_v54  ;;  %6163 = vmatprep.mubr.msk.bf16.mxu1 %vm7078_vm0, %v9580_v22 }
 0x851   : > { %v6759_v56 = vpop.eup %6758  ;;  %v3462_v0 = vmul.f32 %v6757_v49, %v8600_v3  ;;  %v3488_v24 = vpack.c.bf16 %v3477_v42, %v3476_v26  ;;  %6173 = vmatprep.subr.bf16.mxu1 %v9580_v22 }
 0x852   : > { %v3463_v51 = vmul.f32 %v6759_v56, %v8602_v34 }
 0x853   : > { %v3478_v5 = vsel %vm7636_vm15, 0.0, %v3462_v0  ;;  %4912 = vst.msk [vmem:[%s7803_s18 + $0x160] sm:$0xff] %vm1291_vm5, %v3462_v0  ;;  %6158 = vmatmul.mubr.msk.bf16.vlgmr.msra.gmra.mxu0 %vm1291_vm5, %v3488_v24 }
 0x854   : > { %v6761_v54 = vpop.eup %6760  ;;  %v3479_v1 = vsel %vm7636_vm15, 0.0, %v3463_v51  ;;  %4913 = vst.msk [vmem:[%s7803_s18 + $0x168] sm:$0xff] %vm1291_vm5, %v3463_v51  ;;  %6168 = vmatpush3.bf16.msra.mxu0 %v8638_v2  ;;  %6169 = vmatprep.mubr.msk.bf16.mxu0 %vm7078_vm0, %v9580_v22 }
 0x855   : > { %v6763_v3 = vpop.eup %6762  ;;  %v3464_v34 = vmul.f32 %v6761_v54, %v8608_v31  ;;  %v3489_v60 = vpack.c.bf16 %v3479_v1, %v3478_v5  ;;  %6179 = vmatprep.subr.bf16.mxu0 %v9580_v22  ;;  %v3871_v31 = vpop.permute.xlu0 %3870 }
 0x856   : > { %v3465_v17 = vmul.f32 %v6763_v3, %v8610_v12  ;;  %v3876_v30 = vsel %vm898_vm1, %v3871_v31, 0 }
 0x857   : > { %v3480_v32 = vsel %vm7655_vm3, 0.0, %v3464_v34  ;;  %4920 = vst.msk [vmem:[%s7803_s18 + $0x1a0] sm:$0xff] %vm1291_vm5, %v3464_v34  ;;  %6164 = vmatmul.mubr.msk.bf16.vlgmr.msra.gmra.mxu1 %vm1291_vm5, %v3489_v60 }
 0x858   : > { %v6765_v2 = vpop.eup %6764  ;;  %v3481_v48 = vsel %vm7655_vm3, 0.0, %v3465_v17  ;;  %4921 = vst.msk [vmem:[%s7803_s18 + $0x1a8] sm:$0xff] %vm1291_vm5, %v3465_v17  ;;  %6174 = vmatpush3.bf16.msra.mxu1 %v8660_v53  ;;  %6175 = vmatprep.mubr.msk.bf16.mxu1 %vm7078_vm0, %v9580_v22 }
 0x859   : > { %v3466_v12 = vmul.f32 %v6765_v2, %v8616_v63  ;;  %v3490_v16 = vpack.c.bf16 %v3481_v48, %v3480_v32  ;;  %6185 = vmatprep.subr.bf16.mxu1 %v9580_v22  ;;  %v3869_v53 = vpop.permute.xlu0 %3868  ;;  %v3922_v63 = vpop.permute.xlu1 %3921 }
 0x85a   : > { %v3927_v41 = vsel %vm898_vm1, %v3922_v63, 0 }
 0x85b   : > { %4928 = vst.msk [vmem:[%s7803_s18 + $0x1e0] sm:$0xff] %vm1291_vm5, %v3466_v12  ;;  %6170 = vmatmul.mubr.msk.bf16.vlgmr.msra.gmra.mxu0 %vm1291_vm5, %v3490_v16  ;;  %v3482_v28 = vsel %vm7673_vm6, 0.0, %v3466_v12 }
 0x85c   : > { %6180 = vmatpush3.bf16.xpose.msra.mxu0 %v3876_v30  ;;  %6181 = vmatprep.mubr.msk.bf16.mxu0 %vm7078_vm0, %v9580_v22 }
 0x85d   : > { %6191 = vmatprep.subr.bf16.mxu0 %v9580_v22  ;;  %v3920_v14 = vpop.permute.xlu0 %3919 }
 0x861   : > { %v3971_v8 = vpop.permute.xlu0 %3970 }
 0x863   : > { %6182 = vmatmul.mubr.msk.bf16.vlgmr.msra.gmra.mxu0 %vm898_vm1, %v3869_v53 }
 0x864   : > { %6193 = vmatprep.mubr.msk.bf16.mxu0 %vm7078_vm0, %v9580_v22 }
 0x865   : > { %v4022_v38 = vpop.permute.xlu0 %4021 }
 0x869   : > { %v4073_v50 = vpop.permute.xlu0 %4072 }
 0x86d   : > { %v4124_v13 = vpop.permute.xlu0 %4123 }
 0x871   : > { %v4175_v23 = vpop.permute.xlu0 %4174 }
 0x887   : > { %v3435_v33 = vpop.xlane.xlu1 %3434 }
 0x888   : > { %6766 = vrcp.f32 %v3435_v33 }
 0x88b   : > { %v3973_v25 = vpop.permute.xlu1 %3972 }
 0x88c   : > { %v3978_v6 = vsel %vm898_vm1, %v3973_v25, 0 }
 0x88d   : > { %6192 = vmatpush3.bf16.xpose.msra.mxu0 %v3978_v6 }
 0x88e   : > { %6203 = vmatprep.subr.bf16.mxu0 %v9580_v22 }
 0x88f   : > { %v4024_v37 = vpop.permute.xlu1 %4023 }
 0x890   : > { %v4029_v18 = vsel %vm898_vm1, %v4024_v37, 0 }
 0x893   : > { %v4075_v11 = vpop.permute.xlu1 %4074 }
 0x894   : > { %v4080_v39 = vsel %vm898_vm1, %v4075_v11, 0  ;;  %6194 = vmatmul.mubr.msk.bf16.vlgmr.msra.gmra.mxu0 %vm898_vm1, %v3971_v8 }
 0x895   : > { %v6767_v4 = vpop.eup %6766  ;;  %6204 = vmatpush3.bf16.xpose.msra.mxu0 %v4080_v39  ;;  %6205 = vmatprep.mubr.msk.bf16.mxu0 %vm7078_vm0, %v9580_v22 }
 0x896   : > { %v3467_v35 = vmul.f32 %v6767_v4, %v8647_v58  ;;  %6215 = vmatprep.subr.bf16.mxu0 %v9580_v22 }
 0x897   : > { %v4126_v61 = vpop.permute.xlu1 %4125 }
 0x898   : > { %v3483_v55 = vsel %vm7673_vm6, 0.0, %v3467_v35  ;;  %4929 = vst.msk [vmem:[%s7803_s18 + $0x1e8] sm:$0xff] %vm1291_vm5, %v3467_v35  ;;  %v4131_v44 = vsel %vm898_vm1, %v4126_v61, 0 }
 0x899   : > { %v3491_v15 = vpack.c.bf16 %v3483_v55, %v3482_v28 }
 0x89b   : > { %6176 = vmatmul.mubr.msk.bf16.vlgmr.msra.gmra.mxu1 %vm1291_vm5, %v3491_v15  ;;  %v4177_v7 = vpop.permute.xlu1 %4176 }
 0x89c   : > { %6186 = vmatpush3.bf16.xpose.msra.mxu1 %v3927_v41  ;;  %v4182_v58 = vsel %vm898_vm1, %v4177_v7, 0  ;;  %6206 = vmatmul.mubr.msk.bf16.vlgmr.msra.gmra.mxu0 %vm898_vm1, %v4073_v50 }
 0x89d   : > { %6216 = vmatpush3.bf16.xpose.msra.mxu0 %v4182_v58  ;;  %6187 = vmatprep.mubr.msk.bf16.mxu1 %vm7078_vm0, %v9580_v22 }
 0x89e   : > { %6197 = vmatprep.subr.bf16.mxu1 %v9580_v22  ;;  %6217 = vmatprep.mubr.msk.bf16.mxu0 %vm7078_vm0, %v9580_v22 }
 0x89f   : > { %6227 = vmatprep.subr.bf16.mxu0 %v9580_v22  ;;  %v4228_v26 = vpop.permute.xlu1 %4227 }
 0x8a0   : > { %v4233_v49 = vsel %vm898_vm1, %v4228_v26, 0 }
 0x8a3   : > { %6188 = vmatmul.mubr.msk.bf16.vlgmr.msra.gmra.mxu1 %vm898_vm1, %v3920_v14  ;;  %v4226_v42 = vpop.permute.xlu1 %4225 }
 0x8a4   : > { %6198 = vmatpush3.bf16.xpose.msra.mxu1 %v4029_v18  ;;  %6218 = vmatmul.mubr.msk.bf16.vlgmr.msra.gmra.mxu0 %vm898_vm1, %v4175_v23 }
 0x8a5   : > { %6199 = vmatprep.mubr.msk.bf16.mxu1 %vm7078_vm0, %v9580_v22  ;;  %6209 = vmatprep.subr.bf16.mxu1 %v9580_v22 }
 0x8a6   : > { %6229 = vmatprep.mubr.msk.bf16.mxu0 %vm7078_vm0, %v9580_v22 }
 0x8ab   : > { %6200 = vmatmul.mubr.msk.bf16.vlgmr.msra.gmra.mxu1 %vm898_vm1, %v4022_v38 }
 0x8ac   : > { %6210 = vmatpush3.bf16.xpose.msra.mxu1 %v4131_v44  ;;  %6211 = vmatprep.mubr.msk.bf16.mxu1 %vm7078_vm0, %v9580_v22 }
 0x8ad   : > { %6221 = vmatprep.subr.bf16.mxu1 %v9580_v22 }
 0x8b3   : > { %6212 = vmatmul.mubr.msk.bf16.vlgmr.msra.gmra.mxu1 %vm898_vm1, %v4124_v13 }
 0x8b4   : > { %6222 = vmatpush3.bf16.xpose.msra.mxu1 %v4233_v49  ;;  %6223 = vmatprep.mubr.msk.bf16.mxu1 %vm7078_vm0, %v9580_v22 }
 0x8b5   : > { %6233 = vmatprep.subr.bf16.mxu1 %v9580_v22 }
 0x8bb   : > { %6224 = vmatmul.mubr.msk.bf16.vlgmr.msra.gmra.mxu1 %vm898_vm1, %v4226_v42 }
 0x8bc   : > { %6235 = vmatprep.mubr.msk.bf16.mxu1 %vm7078_vm0, %v9580_v22 }
 0x8f3   : > { %v8822_v56 = vpop.f32.mrf.mxu0 }
 0x8f5   : > { %v6135_v0 = vpop.f32.mrf.mxu0 }
 0x8f7   : > { %v8824_v24 = vpop.f32.mrf.mxu0 }
 0x8f8   : > { %v6436_v51 = vpack.i.bf16 %v8824_v24, %v8822_v56  ;;  %v9602_v24 = vld [vmem:[#allocation43_spill] sm:$0xff] }
 0x8f9   : > { %v6136_v5 = vpop.f32.mrf.mxu0 }
 0x906   : > { %v8828_v54 = vpop.f32.mrf.mxu1 }
 0x908   : > { %v6141_v1 = vpop.f32.mrf.mxu1 }
 0x90a   : > { %v8830_v3 = vpop.f32.mrf.mxu1 }
 0x90b   : > { %v6446_v34 = vpack.i.bf16 %v8830_v3, %v8828_v54  ;;  %v8834_v60 = vpop.f32.mrf.mxu0 }
 0x90c   : > { %v6142_v17 = vpop.f32.mrf.mxu1 }
 0x90d   : > { %v6147_v32 = vpop.f32.mrf.mxu0 }
 0x90f   : > { %v8836_v2 = vpop.f32.mrf.mxu0  ;;  %v8838_v48 = vpop.f32.mrf.mxu1 }
 0x910   : > { %v6476_v31 = vpack.i.bf16 %v8836_v2, %v8834_v60  ;;  %v9606_v60 = vld [vmem:[#allocation45_spill] sm:$0xff]  ;;  %v9607_v2 = vld [vmem:[#allocation44_spill] sm:$0xff] }
 0x911   : > { %v6148_v12 = vpop.f32.mrf.mxu0  ;;  %v6153_v16 = vpop.f32.mrf.mxu1 }
 0x913   : > { %v8842_v30 = vpop.f32.mrf.mxu1  ;;  %v8844_v53 = vpop.f32.mrf.mxu0 }
 0x914   : > { %v6486_v63 = vpack.i.bf16 %v8842_v30, %v8838_v48  ;;  %v9609_v48 = vld [vmem:[#allocation47_spill] sm:$0xff]  ;;  %v9610_v30 = vld [vmem:[#allocation46_spill] sm:$0xff] }
 0x915   : > { %v6154_v14 = vpop.f32.mrf.mxu1  ;;  %v6159_v33 = vpop.f32.mrf.mxu0 }
 0x917   : > { %v8848_v8 = vpop.f32.mrf.mxu0  ;;  %v8850_v25 = vpop.f32.mrf.mxu1 }
 0x918   : > { %v6441_v6 = vpack.i.bf16 %v8848_v8, %v8844_v53 }
 0x919   : > { %v6160_v37 = vpop.f32.mrf.mxu0  ;;  %v6165_v38 = vpop.f32.mrf.mxu1 }
 0x91b   : > { %v8854_v11 = vpop.f32.mrf.mxu1  ;;  %v8856_v39 = vpop.f32.mrf.mxu0 }
 0x91d   : > { %v6166_v35 = vpop.f32.mrf.mxu1  ;;  %v6171_v50 = vpop.f32.mrf.mxu0 }
 0x91f   : > { %v8860_v61 = vpop.f32.mrf.mxu0 }
 0x920   : > { %v9619_v53 = vpack.i.bf16 %v8860_v61, %v8856_v39 }
 0x921   : > { %v6172_v55 = vpop.f32.mrf.mxu0 }
 0x923   : > { %v3912_v15 = vpop.f32.mrf.mxu0 }
 0x924   : > { %v8866_v41 = vsel %vm7541_vm4, -1e+18, %v3912_v15 }
 0x925   : > { %v4292_v7 = vsel %vm1291_vm5, %v8866_v41, -inf  ;;  %v6183_v58 = vpop.f32.mrf.mxu0 }
 0x926   : > { %4293 = vmax.xlane.f32.xlu0 %v4292_v7 }
 0x927   : > { %v3915_v13 = vpop.f32.mrf.mxu0 }
 0x928   : > { %v8872_v23 = vsel %vm7541_vm4, -1e+18, %v3915_v13 }
 0x929   : > { %v4295_v18 = vsel %vm1291_vm5, %v8872_v23, -inf  ;;  %v6184_v44 = vpop.f32.mrf.mxu0 }
 0x92a   : > { %4296 = vmax.xlane.f32.xlu1 %v4295_v18 }
 0x954   : > { %v4014_v26 = vpop.f32.mrf.mxu0 }
 0x956   : > { %v6195_v49 = vpop.f32.mrf.mxu0 }
 0x958   : > { %v4017_v42 = vpop.f32.mrf.mxu0 }
 0x959   : > { %v8878_v0 = vsel %vm7579_vm9, -1e+18, %v4017_v42 }
 0x95a   : > { %v4307_v5 = vsel %vm1291_vm5, %v8878_v0, -inf  ;;  %v6196_v1 = vpop.f32.mrf.mxu0 }
 0x95b   : > { %4308 = vmax.xlane.f32.xlu1 %v4307_v5  ;;  %v8882_v17 = vpop.f32.mrf.mxu1  ;;  %v8902_v1 = vsel %vm7579_vm9, -1e+18, %v4014_v26 }
 0x95c   : > { %v4116_v32 = vpop.f32.mrf.mxu0 }
 0x95d   : > { %v6177_v12 = vpop.f32.mrf.mxu1 }
 0x95e   : > { %v6207_v16 = vpop.f32.mrf.mxu0 }
 0x95f   : > { %v8884_v14 = vpop.f32.mrf.mxu1 }
 0x960   : > { %v4119_v37 = vpop.f32.mrf.mxu0 }
 0x961   : > { %v6178_v38 = vpop.f32.mrf.mxu1 }
 0x962   : > { %v6208_v35 = vpop.f32.mrf.mxu0  ;;  %v4304_v38 = vsel %vm1291_vm5, %v8902_v1, -inf }
 0x963   : > { %v3963_v50 = vpop.f32.mrf.mxu1 }
 0x964   : > { %v8890_v55 = vsel %vm7560_vm7, -1e+18, %v3963_v50  ;;  %v4218_v15 = vpop.f32.mrf.mxu0 }
 0x965   : > { %v4298_v7 = vsel %vm1291_vm5, %v8890_v55, -inf  ;;  %v6189_v58 = vpop.f32.mrf.mxu1 }
 0x966   : > { %v6219_v13 = vpop.f32.mrf.mxu0  ;;  %4299 = vmax.xlane.f32.xlu0 %v4298_v7 }
 0x967   : > { %v3966_v18 = vpop.f32.mrf.mxu1 }
 0x968   : > { %v8896_v44 = vsel %vm7560_vm7, -1e+18, %v3966_v18  ;;  %v4221_v49 = vpop.f32.mrf.mxu0 }
 0x969   : > { %v4301_v42 = vsel %vm1291_vm5, %v8896_v44, -inf  ;;  %v6190_v5 = vpop.f32.mrf.mxu1 }
 0x96a   : > { %v6220_v12 = vpop.f32.mrf.mxu0  ;;  %4302 = vmax.xlane.f32.xlu0 %v4301_v42  ;;  %v8920_v42 = vsel %vm7617_vm13, -1e+18, %v4116_v32  ;;  %v8924_v5 = vsel %vm7617_vm13, -1e+18, %v4119_v37 }
 0x96b   : > { %v4065_v16 = vpop.f32.mrf.mxu1 }
 0x96c   : > { %v8908_v50 = vsel %vm7598_vm11, -1e+18, %v4065_v16  ;;  %v4316_v16 = vsel %vm1291_vm5, %v8920_v42, -inf }
 0x96d   : > { %v6201_v35 = vpop.f32.mrf.mxu1  ;;  %v4310_v26 = vsel %vm1291_vm5, %v8908_v50, -inf }
 0x96e   : > { %4305 = vmax.xlane.f32.xlu0 %v4304_v38  ;;  %v4319_v38 = vsel %vm1291_vm5, %v8924_v5, -inf }
 0x96f   : > { %v4068_v7 = vpop.f32.mrf.mxu1 }
 0x970   : > { %v8912_v58 = vsel %vm7598_vm11, -1e+18, %v4068_v7 }
 0x971   : > { %v4313_v13 = vsel %vm1291_vm5, %v8912_v58, -inf  ;;  %v6202_v18 = vpop.f32.mrf.mxu1 }
 0x972   : > { %4311 = vmax.xlane.f32.xlu0 %v4310_v26  ;;  %4314 = vmax.xlane.f32.xlu1 %v4313_v13 }
 0x973   : > { %v4167_v12 = vpop.f32.mrf.mxu1 }
 0x974   : > { %v8932_v7 = vsel %vm7636_vm15, -1e+18, %v4167_v12  ;;  %v8948_v12 = vsel %vm7655_vm3, -1e+18, %v4221_v49 }
 0x975   : > { %v6213_v35 = vpop.f32.mrf.mxu1  ;;  %v4322_v26 = vsel %vm1291_vm5, %v8932_v7, -inf }
 0x976   : > { %4317 = vmax.xlane.f32.xlu0 %v4316_v16  ;;  %4320 = vmax.xlane.f32.xlu1 %v4319_v38  ;;  %v8944_v35 = vsel %vm7655_vm3, -1e+18, %v4218_v15 }
 0x977   : > { %v4170_v32 = vpop.f32.mrf.mxu1  ;;  %v4328_v38 = vsel %vm1291_vm5, %v8944_v35, -inf }
 0x978   : > { %v8936_v37 = vsel %vm7636_vm15, -1e+18, %v4170_v32  ;;  %v4331_v32 = vsel %vm1291_vm5, %v8948_v12, -inf }
 0x979   : > { %v4325_v13 = vsel %vm1291_vm5, %v8936_v37, -inf  ;;  %v6214_v18 = vpop.f32.mrf.mxu1 }
 0x97a   : > { %4323 = vmax.xlane.f32.xlu0 %v4322_v26  ;;  %4326 = vmax.xlane.f32.xlu1 %v4325_v13 }
 0x97b   : > { %v4269_v16 = vpop.f32.mrf.mxu1 }
 0x97c   : > { %v8956_v18 = vsel %vm7673_vm6, -1e+18, %v4269_v16 }
 0x97d   : > { %v6225_v33 = vpop.f32.mrf.mxu1  ;;  %v4334_v49 = vsel %vm1291_vm5, %v8956_v18, -inf }
 0x97e   : > { %4329 = vmax.xlane.f32.xlu0 %v4328_v38  ;;  %4332 = vmax.xlane.f32.xlu1 %v4331_v32 }
 0x97f   : > { %v4272_v15 = vpop.f32.mrf.mxu1 }
 0x981   : > { %v6226_v26 = vpop.f32.mrf.mxu1 }
 0x982   : > { %4335 = vmax.xlane.f32.xlu0 %v4334_v49 }
 0x98f   : > { %4539 = vrot.lane.b32.xlu1 %v7529_v45, %s7081_s4  ;;  %v8973_v45 = vsel %vm7673_vm6, -1e+18, %v4272_v15 }
 0x993   : > { %4586 = vrot.lane.b32.xlu1 %v7429_v62, %s7081_s4  ;;  %v4337_v62 = vsel %vm1291_vm5, %v8973_v45, -inf }
 0x997   : > { %4633 = vrot.lane.b32.xlu1 %v7421_v52, %s7081_s4 }
 0x998   : > { %4492 = vrot.lane.b32.xlu0 %v7508_v40, %s7081_s4 }
 0x99c   : > { %4680 = vrot.lane.b32.xlu0 %v7452_v29, %s7081_s4 }
 0x9af   : > { %v4294_v33 = vpop.xlane.xlu0 %4293 }
 0x9b0   : > { %v4340_v13 = vsub.f32 %v8866_v41, %v4294_v33 }
 0x9b2   : > { %v4356_v16 = vmul.f32 1.442695, %v4340_v13 }
 0x9b3   : > { %v4297_v29 = vpop.xlane.xlu1 %4296 }
 0x9b4   : > { %6768 = vpow2.f32 %v4356_v16  ;;  %v4341_v41 = vsub.f32 %v8872_v23, %v4297_v29 }
 0x9b6   : > { %v4358_v38 = vmul.f32 1.442695, %v4341_v41 }
 0x9b8   : > { %6770 = vpow2.f32 %v4358_v38 }
 0x9bb   : > { %4338 = vmax.xlane.f32.xlu1 %v4337_v62 }
 0x9c1   : > { %v8977_v52 = vpop.eup %6768 }
 0x9c2   : > { %v4388_v40 = vsel %vm1291_vm5, %v8977_v52, 0.0 }
 0x9c3   : > { %4389 = vadd.xlane.f32.xlu0 %v4388_v40 }
 0x9c5   : > { %v8984_v32 = vpop.eup %6770 }
 0x9c6   : > { %v4391_v26 = vsel %vm1291_vm5, %v8984_v32, 0.0 }
 0x9cc   : > { %4727 = vrot.lane.b32.xlu1 %v7444_v20, %s7081_s4 }
 0x9e4   : > { %v4309_v15 = vpop.xlane.xlu1 %4308 }
 0x9e5   : > { %v4345_v13 = vsub.f32 %v8878_v0, %v4309_v15 }
 0x9e7   : > { %v4366_v23 = vmul.f32 1.442695, %v4345_v13 }
 0x9ef   : > { %v4300_v49 = vpop.xlane.xlu0 %4299 }
 0x9f0   : > { %v4342_v33 = vsub.f32 %v8890_v55, %v4300_v49  ;;  %4392 = vadd.xlane.f32.xlu1 %v4391_v26 }
 0x9f2   : > { %v4360_v16 = vmul.f32 1.442695, %v4342_v33 }
 0x9f3   : > { %v4303_v62 = vpop.xlane.xlu0 %4302 }
 0x9f4   : > { %6772 = vpow2.f32 %v4360_v16  ;;  %v4343_v20 = vsub.f32 %v8896_v44, %v4303_v62 }
 0x9f6   : > { %v4362_v40 = vmul.f32 1.442695, %v4343_v20 }
 0x9f7   : > { %v4306_v29 = vpop.xlane.xlu0 %4305 }
 0x9f8   : > { %6774 = vpow2.f32 %v4362_v40  ;;  %v4344_v41 = vsub.f32 %v8902_v1, %v4306_v29 }
 0x9f9   : > { %6776 = vpow2.f32 %v4366_v23 }
 0x9fa   : > { %v4364_v38 = vmul.f32 1.442695, %v4344_v41 }
 0x9fb   : > { %v4312_v28 = vpop.xlane.xlu0 %4311  ;;  %v4315_v4 = vpop.xlane.xlu1 %4314 }
 0x9fc   : > { %6778 = vpow2.f32 %v4364_v38  ;;  %v4346_v55 = vsub.f32 %v8908_v50, %v4312_v28  ;;  %v4347_v0 = vsub.f32 %v8912_v58, %v4315_v4 }
 0x9fe   : > { %v4368_v15 = vmul.f32 1.442695, %v4346_v55  ;;  %v4370_v49 = vmul.f32 1.442695, %v4347_v0 }
 0x9ff   : > { %v4318_v26 = vpop.xlane.xlu0 %4317  ;;  %v4321_v33 = vpop.xlane.xlu1 %4320 }
 0xa00   : > { %6780 = vpow2.f32 %v4368_v15  ;;  %v4348_v44 = vsub.f32 %v8920_v42, %v4318_v26  ;;  %v4349_v13 = vsub.f32 %v8924_v5, %v4321_v33 }
 0xa01   : > { %v8996_v16 = vpop.eup %6772  ;;  %6782 = vpow2.f32 %v4370_v49 }
 0xa02   : > { %v4372_v1 = vmul.f32 1.442695, %v4348_v44  ;;  %v4374_v62 = vmul.f32 1.442695, %v4349_v13  ;;  %v4394_v20 = vsel %vm1291_vm5, %v8996_v16, 0.0 }
 0xa03   : > { %v4324_v28 = vpop.xlane.xlu0 %4323  ;;  %v4327_v50 = vpop.xlane.xlu1 %4326  ;;  %4395 = vadd.xlane.f32.xlu0 %v4394_v20 }
 0xa04   : > { %6784 = vpow2.f32 %v4372_v1  ;;  %v4350_v4 = vsub.f32 %v8932_v7, %v4324_v28  ;;  %v4351_v58 = vsub.f32 %v8936_v37, %v4327_v50 }
 0xa05   : > { %v9002_v23 = vpop.eup %6774  ;;  %6786 = vpow2.f32 %v4374_v62 }
 0xa06   : > { %v4376_v42 = vmul.f32 1.442695, %v4350_v4  ;;  %v4378_v5 = vmul.f32 1.442695, %v4351_v58  ;;  %v4397_v40 = vsel %vm1291_vm5, %v9002_v23, 0.0  ;;  %v9006_v29 = vpop.eup %6776 }
 0xa07   : > { %v4330_v41 = vpop.xlane.xlu0 %4329  ;;  %v4333_v38 = vpop.xlane.xlu1 %4332  ;;  %4398 = vadd.xlane.f32.xlu1 %v4397_v40  ;;  %v4403_v26 = vsel %vm1291_vm5, %v9006_v29, 0.0 }
 0xa08   : > { %6788 = vpow2.f32 %v4376_v42  ;;  %v4352_v55 = vsub.f32 %v8944_v35, %v4330_v41  ;;  %v4353_v7 = vsub.f32 %v8948_v12, %v4333_v38 }
 0xa09   : > { %v9010_v0 = vpop.eup %6778  ;;  %6790 = vpow2.f32 %v4378_v5 }
 0xa0a   : > { %v4380_v37 = vmul.f32 1.442695, %v4352_v55  ;;  %v4382_v15 = vmul.f32 1.442695, %v4353_v7  ;;  %v4400_v49 = vsel %vm1291_vm5, %v9010_v0, 0.0 }
 0xa0b   : > { %v4540_v33 = vpop.permute.xlu1 %4539  ;;  %4401 = vadd.xlane.f32.xlu0 %v4400_v49  ;;  %v4336_v44 = vpop.xlane.xlu0 %4335  ;;  %4404 = vadd.xlane.f32.xlu1 %v4403_v26  ;;  %v9595_v26 = vpack.i.bf16 %v8385_v27, %v8383_v21 }
 0xa0c   : > { %6792 = vpow2.f32 %v4380_v37  ;;  %v4354_v35 = vsub.f32 %v8956_v18, %v4336_v44  ;;  %6234 = vmatpush3.bf16.msra.mxu1 %v4540_v33  ;;  %v9596_v44 = vld [vmem:[#allocation39_spill] sm:$0xff] }
 0xa0d   : > { %v9017_v12 = vpop.eup %6780  ;;  %6794 = vpow2.f32 %v4382_v15  ;;  %6245 = vmatprep.subr.bf16.mxu1 %v9580_v22 }
 0xa0e   : > { %v9020_v13 = vpop.eup %6782  ;;  %v4384_v1 = vmul.f32 1.442695, %v4354_v35  ;;  %v4406_v62 = vsel %vm1291_vm5, %v9017_v12, 0.0  ;;  %v9597_v35 = vld [vmem:[#allocation38_spill] sm:$0xff] }
 0xa0f   : > { %4407 = vadd.xlane.f32.xlu0 %v4406_v62  ;;  %v4493_v20 = vpop.permute.xlu0 %4492  ;;  %v4409_v28 = vsel %vm1291_vm5, %v9020_v13, 0.0  ;;  %v4587_v33 = vpop.permute.xlu1 %4586 }
 0xa10   : > { %6796 = vpow2.f32 %v4384_v1  ;;  %4410 = vadd.xlane.f32.xlu1 %v4409_v28  ;;  %6228 = vmatpush3.bf16.msra.mxu0 %v4493_v20  ;;  %v9598_v1 = vpack.i.bf16 %v9596_v44, %v9597_v35  ;;  %v9599_v28 = vld [vmem:[#allocation41_spill] sm:$0xff]  ;;  %v9616_v35 = vld [vmem:[#allocation51_spill] sm:$0xff] }
 0xa11   : > { %v9026_v18 = vpop.eup %6784  ;;  %6239 = vmatprep.subr.bf16.mxu0 %v9580_v22 }
 0xa12   : > { %v9029_v50 = vpop.eup %6786  ;;  %v4412_v4 = vsel %vm1291_vm5, %v9026_v18, 0.0 }
 0xa13   : > { %4413 = vadd.xlane.f32.xlu0 %v4412_v4  ;;  %v4415_v58 = vsel %vm1291_vm5, %v9029_v50, 0.0  ;;  %v9065_v62 = vpop.permute.xlu1 %4633  ;;  %v9076_v27 = vpop.permute.xlu0 %4680  ;;  %v9600_v4 = vld [vmem:[#allocation40_spill] sm:$0xff] }
 0xa14   : > { %4416 = vadd.xlane.f32.xlu1 %v4415_v58  ;;  %v9601_v58 = vpack.i.bf16 %v9599_v28, %v9600_v4 }
 0xa15   : > { %v9035_v42 = vpop.eup %6788 }
 0xa16   : > { %v9037_v5 = vpop.eup %6790  ;;  %v4418_v40 = vsel %vm1291_vm5, %v9035_v42, 0.0 }
 0xa17   : > { %4419 = vadd.xlane.f32.xlu0 %v4418_v40  ;;  %v4421_v41 = vsel %vm1291_vm5, %v9037_v5, 0.0 }
 0xa18   : > { %4422 = vadd.xlane.f32.xlu1 %v4421_v41  ;;  %v9605_v41 = vld [vmem:[#allocation21_spill] sm:$0xff] }
 0xa19   : > { %v9043_v38 = vpop.eup %6792 }
 0xa1a   : > { %v9045_v55 = vpop.eup %6794  ;;  %v4424_v7 = vsel %vm1291_vm5, %v9043_v38, 0.0 }
 0xa1b   : > { %4425 = vadd.xlane.f32.xlu0 %v4424_v7  ;;  %v4427_v37 = vsel %vm1291_vm5, %v9045_v55, 0.0 }
 0xa1c   : > { %4428 = vadd.xlane.f32.xlu1 %v4427_v37 }
 0xa1d   : > { %v9051_v15 = vpop.eup %6796 }
 0xa1e   : > { %v4430_v49 = vsel %vm1291_vm5, %v9051_v15, 0.0 }
 0xa1f   : > { %4431 = vadd.xlane.f32.xlu0 %v4430_v49  ;;  %v9613_v49 = vld [vmem:[#allocation49_spill] sm:$0xff] }
 0xa35   : > { %4774 = vrot.lane.b32.xlu0 %v7475_v59, %s7081_s4 }
 0xa39   : > { %6417 = vrot.lane.b32.xlu0 %v9595_v26, %s7081_s4  ;;  %v9614_v26 = vld [vmem:[#allocation48_spill] sm:$0xff] }
 0xa3a   : > { %v9615_v44 = vpack.i.bf16 %v9613_v49, %v9614_v26 }
 0xa3d   : > { %6427 = vrot.lane.b32.xlu0 %v9598_v1, %s7081_s4  ;;  %v9617_v1 = vld [vmem:[#allocation50_spill] sm:$0xff] }
 0xa41   : > { %6437 = vrot.lane.b32.xlu0 %v6436_v51, %s7080_s0  ;;  %v9603_v51 = vld [vmem:[#allocation42_spill] sm:$0xff] }
 0xa44   : > { %v4339_v20 = vpop.xlane.xlu1 %4338 }
 0xa45   : > { %v4355_v59 = vsub.f32 %v8973_v45, %v4339_v20  ;;  %6447 = vrot.lane.b32.xlu0 %v6446_v34, %s7080_s0  ;;  %v9604_v45 = vpack.i.bf16 %v9602_v24, %v9603_v51  ;;  %v9618_v20 = vpack.i.bf16 %v9616_v35, %v9617_v1 }
 0xa47   : > { %v4386_v21 = vmul.f32 1.442695, %v4355_v59 }
 0xa48   : > { %v9111_v7 = vpop.permute.xlu1 %4727 }
 0xa49   : > { %6798 = vpow2.f32 %v4386_v21  ;;  %6457 = vrot.lane.b32.xlu0 %v9601_v58, %s7081_s4 }
 0xa4c   : > { %v4390_v56 = vpop.xlane.xlu0 %4389 }
 0xa4d   : > { %6800 = vrcp.f32 %v4390_v56  ;;  %6467 = vrot.lane.b32.xlu0 %v9604_v45, %s7081_s4 }
 0xa51   : > { %6477 = vrot.lane.b32.xlu0 %v6476_v31, %s7080_s0  ;;  %v9608_v31 = vpack.i.bf16 %v9606_v60, %v9607_v2 }
 0xa55   : > { %6487 = vrot.lane.b32.xlu0 %v6486_v63, %s7080_s0  ;;  %v9611_v63 = vpack.i.bf16 %v9609_v48, %v9610_v30 }
 0xa56   : > { %v9094_v54 = vpop.eup %6798 }
 0xa57   : > { %v4433_v3 = vsel %vm1291_vm5, %v9094_v54, 0.0 }
 0xa58   : > { %4434 = vadd.xlane.f32.xlu1 %v4433_v3 }
 0xa5a   : > { %v6801_v34 = vpop.eup %6800 }
 0xa5b   : > { %v4452_v40 = vmul.f32 %v6801_v34, %v8977_v52  ;;  %v9612_v52 = vpack.i.bf16 %v8854_v11, %v8850_v25 }
 0xa5d   : > { %4874 = vst.msk [vmem:[%s7803_s18 + $0x30] sm:$0xff] %vm1291_vm5, %v4452_v40  ;;  %v4468_v11 = vsel %vm7541_vm4, 0.0, %v4452_v40 }
 0xa69   : > { %4821 = vrot.lane.b32.xlu1 %v9605_v41, %s7081_s4 }
 0xa6d   : > { %6422 = vrot.lane.b32.xlu1 %v9608_v31, %s7081_s4 }
 0xa71   : > { %6432 = vrot.lane.b32.xlu1 %v9611_v63, %s7081_s4 }
 0xa75   : > { %6442 = vrot.lane.b32.xlu1 %v6441_v6, %s7080_s0  ;;  %v9620_v6 = vpack.i.bf16 %v8884_v14, %v8882_v17 }
 0xa79   : > { %6452 = vrot.lane.b32.xlu1 %v9612_v52, %s7080_s0  ;;  %v4393_v37 = vpop.xlane.xlu1 %4392 }
 0xa7a   : > { %6802 = vrcp.f32 %v4393_v37 }
 0xa7d   : > { %6462 = vrot.lane.b32.xlu1 %v9615_v44, %s7081_s4 }
 0xa81   : > { %6472 = vrot.lane.b32.xlu1 %v9618_v20, %s7081_s4 }
 0xa85   : > { %6482 = vrot.lane.b32.xlu1 %v9619_v53, %s7080_s0 }
 0xa87   : > { %v6803_v8 = vpop.eup %6802 }
 0xa88   : > { %v4453_v25 = vmul.f32 %v6803_v8, %v8984_v32 }
 0xa89   : > { %6492 = vrot.lane.b32.xlu1 %v9620_v6, %s7080_s0 }
 0xa8a   : > { %v4469_v59 = vsel %vm7541_vm4, 0.0, %v4453_v25  ;;  %4875 = vst.msk [vmem:[%s7803_s18 + $0x38] sm:$0xff] %vm1291_vm5, %v4453_v25  ;;  %vm5157_vm4 = vcmask 785408  }
 0xa8b   : > { %v4484_v21 = vpack.c.bf16 %v4469_v59, %v4468_v11 }
 0xa8c   : > { %v4396_v28 = vpop.xlane.xlu0 %4395 }
 0xa8d   : > { %6804 = vrcp.f32 %v4396_v28  ;;  %6230 = vmatmul.mubr.msk.bf16.vlgmr.msra.gmra.mxu0 %vm1291_vm5, %v4484_v21 }
 0xa8e   : > { %6240 = vmatpush3.bf16.msra.mxu0 %v4587_v33  ;;  %6241 = vmatprep.mubr.msk.bf16.mxu0 %vm7078_vm0, %v9580_v22 }
 0xa8f   : > { %6251 = vmatprep.subr.bf16.mxu0 %v9580_v22 }
 0xa90   : > { %v4399_v39 = vpop.xlane.xlu1 %4398 }
 0xa91   : > { %6806 = vrcp.f32 %v4399_v39 }
 0xa94   : > { %v4402_v61 = vpop.xlane.xlu0 %4401  ;;  %v4405_v17 = vpop.xlane.xlu1 %4404 }
 0xa95   : > { %6808 = vrcp.f32 %v4402_v61 }
 0xa96   : > { %6810 = vrcp.f32 %v4405_v17  ;;  %v6568_v17 = vld [vmem:[#allocation8 + $0x38] sm:$0xff]  }
 0xa98   : > { %v4408_v47 = vpop.xlane.xlu0 %4407 }
 0xa99   : > { %6812 = vrcp.f32 %v4408_v47  ;;  %v4411_v14 = vpop.xlane.xlu1 %4410  ;;  %v6569_v47 = vld [vmem:[#allocation8 + $0x30] sm:$0xff]  }
 0xa9a   : > { %v6805_v32 = vpop.eup %6804  ;;  %6814 = vrcp.f32 %v4411_v14  ;;  %v6570_v14 = vld [vmem:[#allocation8 + $0x28] sm:$0xff]  }
 0xa9b   : > { %v4454_v33 = vmul.f32 %v6805_v32, %v8996_v16 }
 0xa9c   : > { %v4414_v4 = vpop.xlane.xlu0 %4413 }
 0xa9d   : > { %4882 = vst.msk [vmem:[%s7803_s18 + $0x70] sm:$0xff] %vm1291_vm5, %v4454_v33  ;;  %6816 = vrcp.f32 %v4414_v4  ;;  %v4417_v58 = vpop.xlane.xlu1 %4416  ;;  %v4470_v45 = vsel %vm7560_vm7, 0.0, %v4454_v33  ;;  %v6572_v33 = vld [vmem:[#allocation8 + $0x18] sm:$0xff]  }
 0xa9e   : > { %v6807_v56 = vpop.eup %6806  ;;  %6818 = vrcp.f32 %v4417_v58 }
 0xa9f   : > { %v4455_v24 = vmul.f32 %v6807_v56, %v9002_v23 }
 0xaa0   : > { %v4420_v51 = vpop.xlane.xlu0 %4419 }
 0xaa1   : > { %v4471_v3 = vsel %vm7560_vm7, 0.0, %v4455_v24  ;;  %4883 = vst.msk [vmem:[%s7803_s18 + $0x78] sm:$0xff] %vm1291_vm5, %v4455_v24  ;;  %6820 = vrcp.f32 %v4420_v51  ;;  %v4423_v16 = vpop.xlane.xlu1 %4422  ;;  %v6573_v24 = vld [vmem:[#allocation8 + $0x10] sm:$0xff]   ;;  %v6574_v51 = vld [vmem:[#allocation8 + $0x8] sm:$0xff]  }
 0xaa2   : > { %v6809_v34 = vpop.eup %6808  ;;  %6822 = vrcp.f32 %v4423_v16  ;;  %v4485_v40 = vpack.c.bf16 %v4471_v3, %v4470_v45  ;;  %v6575_v45 = vld [vmem:[#allocation8] sm:$0xff]  }
 0xaa3   : > { %v6811_v41 = vpop.eup %6810  ;;  %v4456_v60 = vmul.f32 %v6809_v34, %v9010_v0 }
 0xaa4   : > { %v4457_v23 = vmul.f32 %v6811_v41, %v9006_v29  ;;  %v4426_v2 = vpop.xlane.xlu0 %4425  ;;  %6236 = vmatmul.mubr.msk.bf16.vlgmr.msra.gmra.mxu1 %vm1291_vm5, %v4485_v40 }
 0xaa5   : > { %v4472_v9 = vsel %vm7579_vm9, 0.0, %v4456_v60  ;;  %4890 = vst.msk [vmem:[%s7803_s18 + $0xb0] sm:$0xff] %vm1291_vm5, %v4456_v60  ;;  %6824 = vrcp.f32 %v4426_v2  ;;  %6246 = vmatpush3.bf16.msra.mxu1 %v9065_v62  ;;  %v4429_v31 = vpop.xlane.xlu1 %4428  ;;  %6247 = vmatprep.mubr.msk.bf16.mxu1 %vm7078_vm0, %v9580_v22 }
 0xaa6   : > { %v6813_v48 = vpop.eup %6812  ;;  %v4473_v29 = vsel %vm7579_vm9, 0.0, %v4457_v23  ;;  %4891 = vst.msk [vmem:[%s7803_s18 + $0xb8] sm:$0xff] %vm1291_vm5, %v4457_v23  ;;  %6826 = vrcp.f32 %v4429_v31  ;;  %6257 = vmatprep.subr.bf16.mxu1 %v9580_v22 }
 0xaa7   : > { %v6815_v0 = vpop.eup %6814  ;;  %v4458_v30 = vmul.f32 %v6813_v48, %v9017_v12  ;;  %v4486_v63 = vpack.c.bf16 %v4473_v29, %v4472_v9 }
 0xaa8   : > { %v4459_v62 = vmul.f32 %v6815_v0, %v9020_v13  ;;  %v4432_v52 = vpop.xlane.xlu0 %4431 }
 0xaa9   : > { %v4474_v37 = vsel %vm7598_vm11, 0.0, %v4458_v30  ;;  %4898 = vst.msk [vmem:[%s7803_s18 + $0xf0] sm:$0xff] %vm1291_vm5, %v4458_v30  ;;  %6828 = vrcp.f32 %v4432_v52  ;;  %6242 = vmatmul.mubr.msk.bf16.vlgmr.msra.gmra.mxu0 %vm1291_vm5, %v4486_v63 }
 0xaaa   : > { %v6817_v36 = vpop.eup %6816  ;;  %v4475_v49 = vsel %vm7598_vm11, 0.0, %v4459_v62  ;;  %4899 = vst.msk [vmem:[%s7803_s18 + $0xf8] sm:$0xff] %vm1291_vm5, %v4459_v62  ;;  %6252 = vmatpush3.bf16.msra.mxu0 %v9076_v27  ;;  %6253 = vmatprep.mubr.msk.bf16.mxu0 %vm7078_vm0, %v9580_v22 }
 0xaab   : > { %v6819_v12 = vpop.eup %6818  ;;  %v4460_v13 = vmul.f32 %v6817_v36, %v9026_v18  ;;  %v4487_v26 = vpack.c.bf16 %v4475_v49, %v4474_v37  ;;  %6263 = vmatprep.subr.bf16.mxu0 %v9580_v22 }
 0xaac   : > { %v4461_v44 = vmul.f32 %v6819_v12, %v9029_v50  ;;  %v4775_v53 = vpop.permute.xlu0 %4774 }
 0xaad   : > { %v4476_v46 = vsel %vm7617_vm13, 0.0, %v4460_v13  ;;  %4906 = vst.msk [vmem:[%s7803_s18 + $0x130] sm:$0xff] %vm1291_vm5, %v4460_v13  ;;  %6248 = vmatmul.mubr.msk.bf16.vlgmr.msra.gmra.mxu1 %vm1291_vm5, %v4487_v26 }
 0xaae   : > { %v6821_v27 = vpop.eup %6820  ;;  %v4477_v35 = vsel %vm7617_vm13, 0.0, %v4461_v44  ;;  %4907 = vst.msk [vmem:[%s7803_s18 + $0x138] sm:$0xff] %vm1291_vm5, %v4461_v44  ;;  %6258 = vmatpush3.bf16.msra.mxu1 %v9111_v7  ;;  %6259 = vmatprep.mubr.msk.bf16.mxu1 %vm7078_vm0, %v9580_v22 }
 0xaaf   : > { %v6823_v18 = vpop.eup %6822  ;;  %v4462_v50 = vmul.f32 %v6821_v27, %v9035_v42  ;;  %v4488_v1 = vpack.c.bf16 %v4477_v35, %v4476_v46  ;;  %6269 = vmatprep.subr.bf16.mxu1 %v9580_v22 }
 0xab0   : > { %v4463_v20 = vmul.f32 %v6823_v18, %v9037_v5 }
 0xab1   : > { %v4478_v19 = vsel %vm7636_vm15, 0.0, %v4462_v50  ;;  %4914 = vst.msk [vmem:[%s7803_s18 + $0x170] sm:$0xff] %vm1291_vm5, %v4462_v50  ;;  %6254 = vmatmul.mubr.msk.bf16.vlgmr.msra.gmra.mxu0 %vm1291_vm5, %v4488_v1 }
 0xab2   : > { %v6825_v7 = vpop.eup %6824  ;;  %v4479_v8 = vsel %vm7636_vm15, 0.0, %v4463_v20  ;;  %4915 = vst.msk [vmem:[%s7803_s18 + $0x178] sm:$0xff] %vm1291_vm5, %v4463_v20  ;;  %6264 = vmatpush3.bf16.msra.mxu0 %v4775_v53  ;;  %6265 = vmatprep.mubr.msk.bf16.mxu0 %vm7078_vm0, %v9580_v22  ;;  %v6418_v20 = vpop.permute.xlu0 %6417 }
 0xab3   : > { %v6827_v42 = vpop.eup %6826  ;;  %v4464_v5 = vmul.f32 %v6825_v7, %v9043_v38  ;;  %v4489_v25 = vpack.c.bf16 %v4479_v8, %v4478_v19  ;;  %6275 = vmatprep.subr.bf16.mxu0 %v6568_v17 }
 0xab4   : > { %v4465_v6 = vmul.f32 %v6827_v42, %v9045_v55 }
 0xab5   : > { %v4480_v11 = vsel %vm7655_vm3, 0.0, %v4464_v5  ;;  %4922 = vst.msk [vmem:[%s7803_s18 + $0x1b0] sm:$0xff] %vm1291_vm5, %v4464_v5  ;;  %6260 = vmatmul.mubr.msk.bf16.vlgmr.msra.gmra.mxu1 %vm1291_vm5, %v4489_v25 }
 0xab6   : > { %v6829_v57 = vpop.eup %6828  ;;  %v4481_v59 = vsel %vm7655_vm3, 0.0, %v4465_v6  ;;  %4923 = vst.msk [vmem:[%s7803_s18 + $0x1b8] sm:$0xff] %vm1291_vm5, %v4465_v6  ;;  %6271 = vmatprep.mubr.msk.bf16.mxu1 %vm7078_vm0, %v9580_v22  ;;  %v6428_v19 = vpop.permute.xlu0 %6427  ;;  %vm5140_vm0 = vcmask 523264  }
 0xab7   : > { %v4466_v38 = vmul.f32 %v6829_v57, %v9051_v15  ;;  %v4490_v55 = vpack.c.bf16 %v4481_v59, %v4480_v11 }
 0xab9   : > { %4930 = vst.msk [vmem:[%s7803_s18 + $0x1f0] sm:$0xff] %vm1291_vm5, %v4466_v38  ;;  %6266 = vmatmul.mubr.msk.bf16.vlgmr.msra.gmra.mxu0 %vm1291_vm5, %v4490_v55  ;;  %v4482_v61 = vsel %vm7673_vm6, 0.0, %v4466_v38 }
 0xaba   : > { %6276 = vmatpush3.bf16.msra.mxu0 %v6568_v17  ;;  %v6438_v53 = vpop.permute.xlu0 %6437 }
 0xabb   : > { %6277 = vmatprep.subr.bf16.mxu0 %v6569_v47 }
 0xabe   : > { %6278 = vmatpush3.bf16.msra.mxu0 %v6569_v47  ;;  %v6448_v7 = vpop.permute.xlu0 %6447 }
 0xabf   : > { %6279 = vmatprep.subr.bf16.mxu0 %v6570_v14 }
 0xac2   : > { %6280 = vmatpush3.bf16.msra.mxu0 %v6570_v14  ;;  %v6458_v8 = vpop.permute.xlu0 %6457 }
 0xac3   : > { %6281 = vmatprep.subr.bf16.mxu0 %v6571_v43 }
 0xac6   : > { %6282 = vmatpush3.bf16.msra.mxu0 %v6571_v43  ;;  %v9248_v5 = vpop.permute.xlu0 %6467 }
 0xac7   : > { %6283 = vmatprep.subr.bf16.mxu0 %v6572_v33 }
 0xaca   : > { %6284 = vmatpush3.bf16.msra.mxu0 %v6572_v33  ;;  %v6478_v59 = vpop.permute.xlu0 %6477 }
 0xacb   : > { %6285 = vmatprep.subr.bf16.mxu0 %v6573_v24 }
 0xace   : > { %6286 = vmatpush3.bf16.msra.mxu0 %v6573_v24  ;;  %v9253_v55 = vpop.permute.xlu0 %6487 }
 0xacf   : > { %6287 = vmatprep.subr.bf16.mxu0 %v6574_v51 }
 0xad2   : > { %6288 = vmatpush3.bf16.msra.mxu0 %v6574_v51 }
 0xad3   : > { %6289 = vmatprep.subr.bf16.mxu0 %v6575_v45 }
 0xad6   : > { %6290 = vmatpush3.bf16.msra.mxu0 %v6575_v45 }
 0xae1   : > { %v4435_v21 = vpop.xlane.xlu1 %4434 }
 0xae2   : > { %6830 = vrcp.f32 %v4435_v21 }
 0xae5   : > { %v4822_v28 = vpop.permute.xlu1 %4821 }
 0xae6   : > { %6270 = vmatpush3.bf16.msra.mxu1 %v4822_v28  ;;  %v6420_v28 = vunpack.i.h.bf16 %v6418_v20 }
 0xae7   : > { %6307 = vmatprep.subr.bf16.mxu1 %v6568_v17 }
 0xae9   : > { %v9250_v38 = vpop.permute.xlu1 %6422 }
 0xaed   : > { %v9255_v21 = vpop.permute.xlu1 %6432 }
 0xaef   : > { %v6831_v39 = vpop.eup %6830 }
 0xaf0   : > { %v4467_v10 = vmul.f32 %v6831_v39, %v9094_v54  ;;  %v6419_v39 = vunpack.i.l.bf16 %v6418_v20 }
 0xaf2   : > { %v4483_v22 = vsel %vm7673_vm6, 0.0, %v4467_v10  ;;  %4931 = vst.msk [vmem:[%s7803_s18 + $0x1f8] sm:$0xff] %vm1291_vm5, %v4467_v10  ;;  %v6440_v10 = vunpack.i.h.bf16 %v6438_v53 }
 0xaf3   : > { %v4491_v15 = vpack.c.bf16 %v4483_v22, %v4482_v61  ;;  %v6439_v61 = vunpack.i.l.bf16 %v6438_v53 }
 0xaf5   : > { %6272 = vmatmul.mubr.msk.bf16.vlgmr.msra.gmra.mxu1 %vm1291_vm5, %v4491_v15  ;;  %v9621_v15 = vld [vmem:[#allocation23_spill] sm:$0xff] }
 0xaf6   : > { %6315 = vmatpush3.bf16.msra.mxu1 %v6568_v17  ;;  %v5125_v17 = vsel %vm898_vm1, %v9621_v15, %v6420_v28 }
 0xaf7   : > { %6308 = vmatprep.subr.bf16.mxu1 %v6569_v47 }
 0xafa   : > { %6316 = vmatpush3.bf16.msra.mxu1 %v6569_v47  ;;  %v9622_v47 = vld [vmem:[#allocation22_spill] sm:$0xff] }
 0xafb   : > { %6309 = vmatprep.subr.bf16.mxu1 %v6570_v14 }
 0xafe   : > { %6317 = vmatpush3.bf16.msra.mxu1 %v6570_v14  ;;  %v5124_v14 = vsel %vm898_vm1, %v9622_v47, %v6419_v39 }
 0xaff   : > { %6310 = vmatprep.subr.bf16.mxu1 %v6571_v43 }
 0xb02   : > { %6318 = vmatpush3.bf16.msra.mxu1 %v6571_v43 }
 0xb03   : > { %6311 = vmatprep.subr.bf16.mxu1 %v6572_v33 }
 0xb06   : > { %6319 = vmatpush3.bf16.msra.mxu1 %v6572_v33  ;;  %v5142_v33 = vsel %vm5140_vm0, %v5125_v17, %v6440_v10  ;;  %v6425_v10 = vunpack.i.h.bf16 %v9250_v38 }
 0xb07   : > { %6312 = vmatprep.subr.bf16.mxu1 %v6573_v24 }
 0xb0a   : > { %6320 = vmatpush3.bf16.msra.mxu1 %v6573_v24 }
 0xb0b   : > { %6313 = vmatprep.subr.bf16.mxu1 %v6574_v51 }
 0xb0e   : > { %6321 = vmatpush3.bf16.msra.mxu1 %v6574_v51 }
 0xb0f   : > { %6314 = vmatprep.subr.bf16.mxu1 %v6575_v45 }
 0xb12   : > { %6322 = vmatpush3.bf16.msra.mxu1 %v6575_v45 }
 0xb4d   : > { %v4532_v54 = vpop.f32.mrf.mxu0 }
 0xb4f   : > { %v6231_v32 = vpop.f32.mrf.mxu0 }
 0xb50   : > { %v5141_v32 = vsel %vm5140_vm0, %v5124_v14, %v6439_v61  ;;  %v6424_v61 = vunpack.i.l.bf16 %v9250_v38 }
 0xb51   : > { %v4535_v4 = vpop.f32.mrf.mxu0 }
 0xb52   : > { %v6496_v58 = vpack.i.bf16 %v4535_v4, %v4532_v54  ;;  %v9263_v4 = vpop.permute.xlu1 %6442 }
 0xb53   : > { %v6232_v56 = vpop.f32.mrf.mxu0  ;;  %v6445_v47 = vunpack.i.h.bf16 %v9263_v4  ;;  %v6444_v14 = vunpack.i.l.bf16 %v9263_v4 }
 0xb54   : > { %6497 = vrot.lane.b32.xlu0 %v6496_v58, %s7079_s22 }
 0xb56   : > { %v9267_v51 = vpop.permute.xlu1 %6452 }
 0xb5a   : > { %v9269_v45 = vpop.permute.xlu1 %6462 }
 0xb64   : > { %v4579_v3 = vpop.f32.mrf.mxu1 }
 0xb66   : > { %v6237_v16 = vpop.f32.mrf.mxu1 }
 0xb67   : > { %v6429_v16 = vunpack.i.l.bf16 %v6428_v19 }
 0xb68   : > { %v4582_v34 = vpop.f32.mrf.mxu1 }
 0xb69   : > { %v6501_v40 = vpack.i.bf16 %v4582_v34, %v4579_v3  ;;  %v4626_v41 = vpop.f32.mrf.mxu0  ;;  %v6430_v3 = vunpack.i.h.bf16 %v6428_v19  ;;  %v9271_v34 = vpop.permute.xlu1 %6472 }
 0xb6a   : > { %v6238_v60 = vpop.f32.mrf.mxu1 }
 0xb6b   : > { %v6243_v23 = vpop.f32.mrf.mxu0  ;;  %6502 = vrot.lane.b32.xlu0 %v6501_v40, %s7079_s22  ;;  %v6450_v40 = vunpack.i.h.bf16 %v6448_v7 }
 0xb6c   : > { %v9623_v23 = vld [vmem:[#allocation25_spill] sm:$0xff] }
 0xb6d   : > { %v4629_v2 = vpop.f32.mrf.mxu0  ;;  %v4673_v9 = vpop.f32.mrf.mxu1 }
 0xb6e   : > { %v6506_v31 = vpack.i.bf16 %v4629_v2, %v4626_v41  ;;  %v6449_v41 = vunpack.i.l.bf16 %v6448_v7  ;;  %v5127_v2 = vsel %vm898_vm1, %v9623_v23, %v6430_v3  ;;  %v6490_v7 = vunpack.i.h.bf16 %v9253_v55  ;;  %v9630_v3 = vld [vmem:[#allocation30_spill] sm:$0xff] }
 0xb6f   : > { %v6244_v48 = vpop.f32.mrf.mxu0  ;;  %v6249_v29 = vpop.f32.mrf.mxu1  ;;  %v6455_v23 = vunpack.i.h.bf16 %v9267_v51 }
 0xb70   : > { %6507 = vrot.lane.b32.xlu0 %v6506_v31, %s7079_s22 }
 0xb71   : > { %v4676_v0 = vpop.f32.mrf.mxu1  ;;  %v4720_v30 = vpop.f32.mrf.mxu0 }
 0xb72   : > { %v6526_v63 = vpack.i.bf16 %v4676_v0, %v4673_v9  ;;  %v9624_v9 = vld [vmem:[#allocation24_spill] sm:$0xff] }
 0xb73   : > { %v6250_v62 = vpop.f32.mrf.mxu1  ;;  %v6255_v52 = vpop.f32.mrf.mxu0  ;;  %v5126_v31 = vsel %vm898_vm1, %v9624_v9, %v6429_v16  ;;  %v5132_v16 = vsel %vm898_vm1, %v9630_v3, %v6424_v61 }
 0xb74   : > { %6527 = vrot.lane.b32.xlu0 %v6526_v63, %s7079_s22  ;;  %v5143_v0 = vsel %vm5140_vm0, %v5126_v31, %v6449_v41  ;;  %v6460_v63 = vunpack.i.h.bf16 %v6458_v8  ;;  %v6459_v62 = vunpack.i.l.bf16 %v6458_v8  ;;  %v6480_v52 = vunpack.i.h.bf16 %v6478_v59  ;;  %v9631_v31 = vld [vmem:[#allocation33_spill] sm:$0xff] }
 0xb75   : > { %v4723_v37 = vpop.f32.mrf.mxu0  ;;  %v4767_v36 = vpop.f32.mrf.mxu1  ;;  %v6489_v8 = vunpack.i.l.bf16 %v9253_v55  ;;  %v5149_v4 = vsel %vm5140_vm0, %v5132_v16, %v6444_v14 }
 0xb76   : > { %v6511_v49 = vpack.i.bf16 %v4723_v37, %v4720_v30  ;;  %v5144_v30 = vsel %vm5140_vm0, %v5127_v2, %v6450_v40  ;;  %v6479_v37 = vunpack.i.l.bf16 %v6478_v59  ;;  %v6454_v2 = vunpack.i.l.bf16 %v9267_v51 }
 0xb77   : > { %v6256_v12 = vpop.f32.mrf.mxu0  ;;  %v6261_v13 = vpop.f32.mrf.mxu1 }
 0xb78   : > { %6512 = vrot.lane.b32.xlu1 %v6511_v49, %s7079_s22 }
 0xb79   : > { %v4770_v26 = vpop.f32.mrf.mxu1  ;;  %v4814_v44 = vpop.f32.mrf.mxu0 }
 0xb7a   : > { %v6516_v46 = vpack.i.bf16 %v4770_v26, %v4767_v36  ;;  %v9279_v36 = vpop.permute.xlu1 %6482  ;;  %v6470_v26 = vunpack.i.h.bf16 %v9248_v5 }
 0xb7b   : > { %v6262_v27 = vpop.f32.mrf.mxu1  ;;  %v6267_v35 = vpop.f32.mrf.mxu0 }
 0xb7c   : > { %6517 = vrot.lane.b32.xlu1 %v6516_v46, %s7079_s22  ;;  %v9625_v27 = vld [vmem:[#allocation27_spill] sm:$0xff] }
 0xb7d   : > { %v4817_v18 = vpop.f32.mrf.mxu0  ;;  %v5129_v35 = vsel %vm898_vm1, %v9625_v27, %v6460_v63 }
 0xb7e   : > { %v6521_v50 = vpack.i.bf16 %v4817_v18, %v4814_v44  ;;  %v6469_v44 = vunpack.i.l.bf16 %v9248_v5  ;;  %v9626_v18 = vld [vmem:[#allocation26_spill] sm:$0xff]  ;;  %v5146_v53 = vsel %vm5140_vm0, %v5129_v35, %v6480_v52  ;;  %v9299_v59 = vpop.permute.xlu1 %6492  ;;  %v6464_v52 = vunpack.i.l.bf16 %v9269_v45 }
 0xb7f   : > { %v6268_v1 = vpop.f32.mrf.mxu0 }
 0xb80   : > { %6522 = vrot.lane.b32.xlu1 %v6521_v50, %s7079_s22  ;;  %v5128_v50 = vsel %vm898_vm1, %v9626_v18, %v6459_v62  ;;  %v6465_v62 = vunpack.i.h.bf16 %v9269_v45  ;;  %v9633_v18 = vld [vmem:[#allocation35_spill] sm:$0xff] }
 0xb81   : > { %v5145_v19 = vsel %vm5140_vm0, %v5128_v50, %v6479_v37  ;;  %v9634_v50 = vld [vmem:[#allocation34_spill] sm:$0xff] }
 0xb82   : > { %v5137_v45 = vsel %vm898_vm1, %v9633_v18, %v6465_v62 }
 0xbb5   : > { %v4861_v42 = vpop.f32.mrf.mxu1 }
 0xbb7   : > { %v6273_v25 = vpop.f32.mrf.mxu1 }
 0xbb8   : > { %v9627_v25 = vld [vmem:[#allocation29_spill] sm:$0xff] }
 0xbb9   : > { %v4864_v6 = vpop.f32.mrf.mxu1 }
 0xbba   : > { %v6531_v11 = vpack.i.bf16 %v4864_v6, %v4861_v42  ;;  %v5131_v6 = vsel %vm898_vm1, %v9627_v25, %v6470_v26  ;;  %v6484_v26 = vunpack.i.l.bf16 %v9279_v36  ;;  %v6474_v25 = vunpack.i.l.bf16 %v9271_v34 }
 0xbbb   : > { %v6274_v57 = vpop.f32.mrf.mxu1  ;;  %v5148_v17 = vsel %vm5140_vm0, %v5131_v6, %v6490_v7  ;;  %v6495_v6 = vunpack.i.h.bf16 %v9299_v59 }
 0xbbc   : > { %6532 = vrot.lane.b32.xlu1 %v6531_v11, %s7079_s22  ;;  %v9628_v11 = vld [vmem:[#allocation28_spill] sm:$0xff] }
 0xbbd   : > { %v5130_v57 = vsel %vm898_vm1, %v9628_v11, %v6469_v44  ;;  %v6494_v11 = vunpack.i.l.bf16 %v9299_v59 }
 0xbbe   : > { %v5147_v15 = vsel %vm5140_vm0, %v5130_v57, %v6489_v8 }
 0xbc6   : > { %v6498_v22 = vpop.permute.xlu0 %6497 }
 0xbc7   : > { %v6500_v43 = vunpack.i.h.bf16 %v6498_v22  ;;  %v6499_v54 = vunpack.i.l.bf16 %v6498_v22 }
 0xbc9   : > { %v5158_v58 = vsel %vm5157_vm4, %v5141_v32, %v6499_v54  ;;  %v5159_v56 = vsel %vm5157_vm4, %v5142_v33, %v6500_v43  ;;  %v6435_v32 = vunpack.i.h.bf16 %v9255_v21  ;;  %v6434_v33 = vunpack.i.l.bf16 %v9255_v21 }
 0xbca   : > { %v5174_v24 = vpack.c.bf16 %v5159_v56, %v5158_v58  ;;  %v9629_v56 = vld [vmem:[#allocation31_spill] sm:$0xff] }
 0xbcc   : > { %6291 = vmatprep.mubr.bf16.mxu0 %v5174_v24  ;;  %v5133_v24 = vsel %vm898_vm1, %v9629_v56, %v6425_v10  ;;  %v9636_v10 = vld [vmem:[#allocation36_spill] sm:$0xff] }
 0xbcd   : > { %v5138_v61 = vsel %vm898_vm1, %v9636_v10, %v6474_v25 }
 0xbdd   : > { %v6503_v60 = vpop.permute.xlu0 %6502 }
 0xbde   : > { %v6505_v48 = vunpack.i.h.bf16 %v6503_v60  ;;  %v6504_v29 = vunpack.i.l.bf16 %v6503_v60  ;;  %v5150_v60 = vsel %vm5140_vm0, %v5133_v24, %v6445_v47 }
 0xbe0   : > { %v5161_v49 = vsel %vm5157_vm4, %v5144_v30, %v6505_v48  ;;  %v5160_v12 = vsel %vm5157_vm4, %v5143_v0, %v6504_v29  ;;  %v5135_v48 = vsel %vm898_vm1, %v9631_v31, %v6435_v32  ;;  %v9632_v29 = vld [vmem:[#allocation32_spill] sm:$0xff] }
 0xbe1   : > { %v5175_v13 = vpack.c.bf16 %v5161_v49, %v5160_v12  ;;  %v5134_v0 = vsel %vm898_vm1, %v9632_v29, %v6434_v33  ;;  %v5152_v12 = vsel %vm5140_vm0, %v5135_v48, %v6455_v23 }
 0xbe2   : > { %v6508_v46 = vpop.permute.xlu0 %6507  ;;  %v5151_v51 = vsel %vm5140_vm0, %v5134_v0, %v6454_v2 }
 0xbe3   : > { %v6510_v1 = vunpack.i.h.bf16 %v6508_v46  ;;  %v6509_v20 = vunpack.i.l.bf16 %v6508_v46  ;;  %6292 = vmatmul.mubr.bf16.vlgmr.msra.gmra.mxu0 %v5175_v13  ;;  %v6485_v13 = vunpack.i.h.bf16 %v9279_v36 }
 0xbe5   : > { %v5162_v42 = vsel %vm5157_vm4, %v5145_v19, %v6509_v20  ;;  %v5163_v5 = vsel %vm5157_vm4, %v5146_v53, %v6510_v1  ;;  %v5136_v1 = vsel %vm898_vm1, %v9634_v50, %v6464_v52  ;;  %v5154_v7 = vsel %vm5140_vm0, %v5137_v45, %v6485_v13 }
 0xbe6   : > { %v6528_v28 = vpop.permute.xlu0 %6527  ;;  %v5176_v39 = vpack.c.bf16 %v5163_v5, %v5162_v42  ;;  %v5153_v53 = vsel %vm5140_vm0, %v5136_v1, %v6484_v26  ;;  %v6475_v5 = vunpack.i.h.bf16 %v9271_v34 }
 0xbe7   : > { %v6530_v22 = vunpack.i.h.bf16 %v6528_v28  ;;  %v6529_v55 = vunpack.i.l.bf16 %v6528_v28  ;;  %v9635_v28 = vld [vmem:[#allocation37_spill] sm:$0xff] }
 0xbe8   : > { %6295 = vmatprep.mubr.bf16.mxu0 %v5176_v39  ;;  %v5139_v39 = vsel %vm898_vm1, %v9635_v28, %v6475_v5 }
 0xbe9   : > { %v5165_v43 = vsel %vm5157_vm4, %v5148_v17, %v6530_v22  ;;  %v5164_v54 = vsel %vm5157_vm4, %v5147_v15, %v6529_v55  ;;  %v5155_v15 = vsel %vm5140_vm0, %v5138_v61, %v6494_v11  ;;  %v5156_v17 = vsel %vm5140_vm0, %v5139_v39, %v6495_v6 }
 0xbea   : > { %v5177_v38 = vpack.c.bf16 %v5165_v43, %v5164_v54  ;;  %v6513_v58 = vpop.permute.xlu1 %6512 }
 0xbeb   : > { %v6515_v40 = vunpack.i.h.bf16 %v6513_v58  ;;  %v6514_v41 = vunpack.i.l.bf16 %v6513_v58 }
 0xbec   : > { %6296 = vmatmul.mubr.bf16.gmra.mxu0 %v5177_v38 }
 0xbed   : > { %v5166_v21 = vsel %vm5157_vm4, %v5149_v4, %v6514_v41  ;;  %v5167_v9 = vsel %vm5157_vm4, %v5150_v60, %v6515_v40 }
 0xbee   : > { %v6518_v30 = vpop.permute.xlu1 %6517  ;;  %v5178_v63 = vpack.c.bf16 %v5167_v9, %v5166_v21 }
 0xbef   : > { %v6520_v37 = vunpack.i.h.bf16 %v6518_v30  ;;  %v6519_v49 = vunpack.i.l.bf16 %v6518_v30 }
 0xbf0   : > { %6299 = vmatprep.mubr.bf16.mxu1 %v5178_v63 }
 0xbf1   : > { %v5169_v44 = vsel %vm5157_vm4, %v5152_v12, %v6520_v37  ;;  %v5168_v46 = vsel %vm5157_vm4, %v5151_v51, %v6519_v49 }
 0xbf2   : > { %v5179_v27 = vpack.c.bf16 %v5169_v44, %v5168_v46  ;;  %v6523_v35 = vpop.permute.xlu1 %6522 }
 0xbf3   : > { %v6525_v20 = vunpack.i.h.bf16 %v6523_v35  ;;  %v6524_v19 = vunpack.i.l.bf16 %v6523_v35 }
 0xbf4   : > { %6300 = vmatmul.mubr.bf16.vlgmr.msra.gmra.mxu1 %v5179_v27 }
 0xbf5   : > { %v5170_v36 = vsel %vm5157_vm4, %v5153_v53, %v6524_v19  ;;  %v5171_v8 = vsel %vm5157_vm4, %v5154_v7, %v6525_v20 }
 0xbf6   : > { %v5180_v42 = vpack.c.bf16 %v5171_v8, %v5170_v36 }
 0xbf8   : > { %6303 = vmatprep.mubr.bf16.mxu1 %v5180_v42 }
 0xc2e   : > { %v6533_v57 = vpop.permute.xlu1 %6532 }
 0xc2f   : > { %v6535_v22 = vunpack.i.h.bf16 %v6533_v57  ;;  %v6534_v55 = vunpack.i.l.bf16 %v6533_v57 }
 0xc31   : > { %v5173_v34 = vsel %vm5157_vm4, %v5156_v17, %v6535_v22  ;;  %v5172_v47 = vsel %vm5157_vm4, %v5155_v15, %v6534_v55 }
 0xc32   : > { %v5181_v59 = vpack.c.bf16 %v5173_v34, %v5172_v47 }
 0xc34   : > { %6304 = vmatmul.mubr.bf16.gmra.mxu1 %v5181_v59 }
 0xc35   : > { %6969 = shalt.err (!%p6966_p7)
}
 0xc36   : > { %s6970_s11 = scalar_lea.hbm %s9358_s12, 8192  ;;  %s6974_s18 = scalar_lea.hbm %s9503_s7, 16384 }
 0xc37   : > { %p6971_p2 = scmp.ne.s32.totalorder %s9358_s12, %s6970_s11  ;;  %p6975_p11 = scmp.lt.s32.totalorder %s9358_s12, %s9503_s7 }
 0xc38   : > { %p6976_p10 = scmp.lt.s32.totalorder %s6974_s18, %s6970_s11 }
 0xc39   : > { %p6972_p0 = pnand %p6971_p2, %p9637_p3 }
 0xc3a   : > { %p6977_p6 = por %p6976_p10, %p6975_p11 }
 0xc3b   : > { %p6973_p8 = pneg %p6972_p0 }
 0xc3d   : > { %p6978_p12 = pnand %p6977_p6, %p6973_p8 }
 0xc3f   : > { %6981 = shalt.err (!%p6978_p12)
}
 0xc40   : > { %s7083_s19 = smov 128   ;;  %s7084_s26 = smov 8   ;;  %v9391_v14 = vld [vmem:[%s9501_s5] ss:$0 sm:$0xff]  ;;  %v6832_v33 = vld [vmem:[%s7305_s20 + $0x10] sm:$0xff]  ;;  %v6834_v41 = vld [vmem:[%s7305_s20 + $0x18] sm:$0xff] }
 0xc41   : > { %6336 = dma.vmem_to_hbm [thread:$0]  (%p9637_p3), %s9360_s21, 8192, %s9358_s12, %s5388_s2, %s7083_s19, %s7083_s19, %s7084_s26  }
 0xc42   : > { %s9398_s15 = scalar_lea.vmem [#allocation10], %s5579_s29  ;;  %v6833_v24 = vld [vmem:[%s7305_s20] sm:$0xff]  ;;  %v6835_v23 = vld [vmem:[%s7305_s20 + $0x8] sm:$0xff]  ;;  %v6836_v48 = vld [vmem:[%s7305_s20 + $0x30] sm:$0xff]  ;;  %s5696_s29 = sshll.u32 %s7147_s28, 11 }
 0xc43   : > { %v6837_v63 = vld [vmem:[%s7305_s20 + $0x20] sm:$0xff]  ;;  %v6838_v49 = vld [vmem:[%s7305_s20 + $0x38] sm:$0xff]  ;;  %v6839_v26 = vld [vmem:[%s7305_s20 + $0x28] sm:$0xff]  ;;  %s5402_s21 = sshll.u32 %s9398_s15, 4  ;;  %s9449_s23 = scalar_lea.hbm %s9502_s6, %s5696_s29  ;;  %s9451_s21 = int_to_ptr.vmem [resolvable:$true] %s5402_s21 }
 0xc44   : > { %v6840_v35 = vld [vmem:[%s7305_s20 + $0x50] sm:$0xff]  ;;  %v6841_v1 = vld [vmem:[%s7305_s20 + $0x40] sm:$0xff]  ;;  %v6842_v7 = vld [vmem:[%s7305_s20 + $0x58] sm:$0xff]  ;;  %s5383_s28 = scalar_lea.sflag [#allocation4], %s7299_s17  ;;  %s6982_s30 = scalar_lea.vmem %s9451_s21, 2048 }
 0xc45   : > { %v6843_v42 = vld [vmem:[%s7305_s20 + $0x48] sm:$0xff]  ;;  %v6844_v57 = vld [vmem:[%s7305_s20 + $0x70] sm:$0xff]  ;;  %v6845_v61 = vld [vmem:[%s7305_s20 + $0x60] sm:$0xff]  ;;  %p6983_p9 = scmp.ne.s32.totalorder %s9451_s21, %s6982_s30  ;;  %s7085_s11 = smov [#allocation10]  }
 0xc46   : > { %v6846_v17 = vld [vmem:[%s7305_s20 + $0x78] sm:$0xff]  ;;  %v6847_v59 = vld [vmem:[%s7305_s20 + $0x68] sm:$0xff]  ;;  %s6986_s20 = sshll.u32 %s7085_s11, 4  ;;  %s6987_s20 = int_to_ptr.vmem [resolvable:$false] %s6986_s20 }
 0xc47   : > { %p6984_p13 = pnand %p6983_p9, %p9637_p3  ;;  %s6988_s22 = scalar_lea.vmem %s6987_s20, 4096 }
 0xc48   : > { %p6989_p1 = scmp.lt.s32.totalorder %s9451_s21, %s6987_s20  ;;  %p6990_p4 = scmp.lt.s32.totalorder %s6988_s22, %s6982_s30 }
 0xc49   : > { %p6985_p5 = pneg %p6984_p13 }
 0xc4a   : > { %p6991_p7 = por %p6990_p4, %p6989_p1 }
 0xc4c   : > { %p6992_p2 = pnand %p6991_p7, %p6985_p5 }
 0xca3   : > { %v6293_v43 = vpop.f32.mrf.mxu0 }
 0xca4   : > { %v5296_v54 = vadd.f32 %v6293_v43, %v9391_v14 }
 0xca5   : > { %v5287_v32 = vpop.f32.mrf.mxu0 }
 0xca6   : > { %v5352_v38 = vadd.f32 %v6832_v33, %v5296_v54  ;;  %v5288_v58 = vadd.f32 %v9391_v14, %v5287_v32 }
 0xca7   : > { %v6294_v56 = vpop.f32.mrf.mxu0 }
 0xca8   : > { %5368 = vst [vmem:[%s9398_s15 + $0x10] sm:$0xff] %v5352_v38  ;;  %v5350_v3 = vadd.f32 %v6833_v24, %v5288_v58  ;;  %v5299_v16 = vadd.f32 %v6294_v56, %v9391_v14 }
 0xca9   : > { %v5290_v40 = vpop.f32.mrf.mxu0 }
 0xcaa   : > { %5366 = vst [vmem:[%s9398_s15] sm:$0xff] %v5350_v3  ;;  %v5353_v4 = vadd.f32 %v6834_v41, %v5299_v16  ;;  %v5291_v60 = vadd.f32 %v9391_v14, %v5290_v40 }
 0xcac   : > { %5369 = vst [vmem:[%s9398_s15 + $0x18] sm:$0xff] %v5353_v4  ;;  %v5351_v2 = vadd.f32 %v6835_v23, %v5291_v60  ;;  %v6297_v21 = vpop.f32.mrf.mxu0 }
 0xcad   : > { %v5312_v9 = vadd.f32 %v6297_v21, %v9391_v14 }
 0xcae   : > { %5367 = vst [vmem:[%s9398_s15 + $0x8] sm:$0xff] %v5351_v2  ;;  %v5303_v31 = vpop.f32.mrf.mxu0 }
 0xcaf   : > { %v5356_v29 = vadd.f32 %v6836_v48, %v5312_v9  ;;  %v5304_v0 = vadd.f32 %v9391_v14, %v5303_v31 }
 0xcb0   : > { %v6298_v30 = vpop.f32.mrf.mxu0 }
 0xcb1   : > { %5372 = vst [vmem:[%s9398_s15 + $0x30] sm:$0xff] %v5356_v29  ;;  %v5354_v62 = vadd.f32 %v6837_v63, %v5304_v0  ;;  %v5315_v52 = vadd.f32 %v6298_v30, %v9391_v14 }
 0xcb2   : > { %v5306_v37 = vpop.f32.mrf.mxu0 }
 0xcb3   : > { %5370 = vst [vmem:[%s9398_s15 + $0x20] sm:$0xff] %v5354_v62  ;;  %v5357_v51 = vadd.f32 %v6838_v49, %v5315_v52  ;;  %v5307_v12 = vadd.f32 %v9391_v14, %v5306_v37 }
 0xcb4   : > { %v6301_v13 = vpop.f32.mrf.mxu1 }
 0xcb5   : > { %5373 = vst [vmem:[%s9398_s15 + $0x38] sm:$0xff] %v5357_v51  ;;  %v5355_v44 = vadd.f32 %v6839_v26, %v5307_v12  ;;  %v5328_v46 = vadd.f32 %v6301_v13, %v9391_v14 }
 0xcb6   : > { %v5319_v27 = vpop.f32.mrf.mxu1 }
 0xcb7   : > { %5371 = vst [vmem:[%s9398_s15 + $0x28] sm:$0xff] %v5355_v44  ;;  %v5360_v18 = vadd.f32 %v6840_v35, %v5328_v46  ;;  %v5320_v45 = vadd.f32 %v9391_v14, %v5319_v27 }
 0xcb8   : > { %v6302_v50 = vpop.f32.mrf.mxu1 }
 0xcb9   : > { %5376 = vst [vmem:[%s9398_s15 + $0x50] sm:$0xff] %v5360_v18  ;;  %v5358_v20 = vadd.f32 %v6841_v1, %v5320_v45  ;;  %v5331_v19 = vadd.f32 %v6302_v50, %v9391_v14 }
 0xcba   : > { %v5322_v53 = vpop.f32.mrf.mxu1 }
 0xcbb   : > { %5374 = vst [vmem:[%s9398_s15 + $0x40] sm:$0xff] %v5358_v20  ;;  %v5361_v36 = vadd.f32 %v6842_v7, %v5331_v19  ;;  %v5323_v8 = vadd.f32 %v9391_v14, %v5322_v53 }
 0xcbd   : > { %5377 = vst [vmem:[%s9398_s15 + $0x58] sm:$0xff] %v5361_v36  ;;  %v5359_v5 = vadd.f32 %v6843_v42, %v5323_v8 }
 0xcbf   : > { %5375 = vst [vmem:[%s9398_s15 + $0x48] sm:$0xff] %v5359_v5 }
 0xcf4   : > { %v6305_v25 = vpop.f32.mrf.mxu1 }
 0xcf5   : > { %v5344_v6 = vadd.f32 %v6305_v25, %v9391_v14 }
 0xcf6   : > { %v5335_v11 = vpop.f32.mrf.mxu1 }
 0xcf7   : > { %v5364_v28 = vadd.f32 %v6844_v57, %v5344_v6  ;;  %v5336_v39 = vadd.f32 %v9391_v14, %v5335_v11 }
 0xcf8   : > { %v6306_v10 = vpop.f32.mrf.mxu1 }
 0xcf9   : > { %5380 = vst [vmem:[%s9398_s15 + $0x70] sm:$0xff] %v5364_v28  ;;  %v5362_v22 = vadd.f32 %v6845_v61, %v5336_v39  ;;  %v5347_v55 = vadd.f32 %v6306_v10, %v9391_v14 }
 0xcfa   : > { %v5338_v15 = vpop.f32.mrf.mxu1 }
 0xcfb   : > { %5378 = vst [vmem:[%s9398_s15 + $0x60] sm:$0xff] %v5362_v22  ;;  %v5365_v34 = vadd.f32 %v6846_v17, %v5347_v55  ;;  %v5339_v47 = vadd.f32 %v9391_v14, %v5338_v15 }
 0xcfd   : > { %5381 = vst [vmem:[%s9398_s15 + $0x78] sm:$0xff] %v5365_v34  ;;  %v5363_v43 = vadd.f32 %v6847_v59, %v5339_v47 }
 0xcff   : > { %5379 = vst [vmem:[%s9398_s15 + $0x68] sm:$0xff] %v5363_v43 }
 0xd00   : > { %6995 = shalt.err (!%p6992_p2)
}
 0xd01   : > { %s6996_s13 = scalar_lea.hbm %s9449_s23, 2048  ;;  %s7000_s0 = scalar_lea.hbm %s9502_s6, 4096 }
 0xd02   : > { %p6997_p0 = scmp.ne.s32.totalorder %s9449_s23, %s6996_s13  ;;  %p7001_p10 = scmp.lt.s32.totalorder %s9449_s23, %s9502_s6 }
 0xd03   : > { %p7002_p6 = scmp.lt.s32.totalorder %s7000_s0, %s6996_s13 }
 0xd04   : > { %p6998_p8 = pnand %p6997_p0, %p9637_p3 }
 0xd05   : > { %p7003_p12 = por %p7002_p6, %p7001_p10 }
 0xd06   : > { %p6999_p11 = pneg %p6998_p8 }
 0xd08   : > { %p7004_p9 = pnand %p7003_p12, %p6999_p11 }
 0xd0a   : > { %7007 = shalt.err (!%p7004_p9)
}
 0xd0b   : > { %6335 = dma.vmem_to_hbm [thread:$0]  (%p9637_p3), %s9451_s21, 2048, %s9449_s23, %s5383_s28, %s7083_s19, %s7083_s19, %s7084_s26  }
 0xd0c PF: > { %s5434_s9 = sand.u32 1, %s7050_s24   ;;  %p9638_p13 = scmp.ne.s32.totalorder %s9530_s8, 0 }
 0xd0d   : > { %p9639_p5 = scmp.ge.s32.totalorder %s7062_s27, 2  ;;  %s5435_s15 = scalar_lea.sflag [#allocation4], %s5434_s9 }
 0xd0f   : > { %p6354_p1 = pnand %p9639_p5, %p9638_p13 }
 0xd11   : > { %p6355_p4 = pneg %p6354_p1 }
 0xd13   : > { %7041 = dma.done.wait (%p6355_p4), %s5435_s15, 2048  }
 0xd14   : > { %7043 = vsyncadd (%p6355_p4), %s5435_s15, 4294965248  ;;  %s5444_s29 = scalar_lea.sflag [#allocation12], %s5434_s9 }
 0xd15   : > { %7045 = dma.done.wait (%p6355_p4), %s5444_s29, 8192  }
 0xd16   : > { %7047 = vsyncadd (%p6355_p4), %s5444_s29, 4294959104  ;;  %s9640_s16 = sld [smem:[#allocation19_spill]]  ;;  %p28_p3 = scmp.ge.s32.totalorder %s7198_s10, 4  }
 0xd17   : > { %s9641_s26 = sld [smem:[#allocation20_spill]]  ;;  %s9642_s24 = smov %s7054_s25 }
 0xd18   : > { %s9644_s27 = smov %s7198_s10  ;;  %30 = sbr.rel (!%p28_p3) target bundleno = 14 (0xe), region = 127 }
 0xd1c   : > { %s9643_s25 = smov %s9640_s16 }
 0xd1d   :  { %5449 = vsyncpa [#allocation3], 1 }
 0xd1e   :  { %5451 = vsyncpa [#allocation3 + $0x1], 1 }
 0xd1f   :  { %5452 = vsyncpa [#allocation6], 1 }
 0xd20   :  { %5454 = vsyncpa [#allocation6 + $0x1], 1 }
 0xd21   :  { %5455 = vsyncpa [#allocation9], 1 }
 0xd22   :  { %5456 = vsyncpa [#allocation4], 1 }
 0xd23   :  { %5458 = vsyncpa [#allocation4 + $0x1], 1 }
 0xd24   :  { %5459 = vsyncpa [#allocation12], 1 }
 0xd25   :  { %5461 = vsyncpa [#allocation12 + $0x1], 1 }

</bundles_post_ra>
